<compile_context>
chip_gen: v7x
topology: tpu7x:2x2x1
jax: 0.10.0
libtpu: 0.0.40
codegen_flags: <defaults>
</compile_context>

<pallas_src>
import jax
import jax.numpy as jnp
from jax.experimental import pallas as pl
from jax.experimental.pallas import tpu as pltpu


def _round_up(x, m):
    return ((x + m - 1) // m) * m


def _conv3x3(xp_ref, w_ref, H, W):
    """3x3 'same' conv of a zero-padded VMEM tile.

    xp_ref: (H+2, W+2, Cin)  f32 VMEM scratch (halo already zero-filled)
    w_ref:  (3, 3, Cin, Cout) bf16 VMEM ref (BN scale already folded in)
    returns (H*W, Cout) fp32 accumulator (no bias / activation yet).
    """
    Cin = xp_ref.shape[-1]
    Cout = w_ref.shape[-1]
    acc = jnp.zeros((H * W, Cout), jnp.float32)

    if Cin % 128 == 0:
        # Lane-aligned input channels: fold the 3 dx taps into the contraction
        # -> 3 MXU matmuls with K = 3*Cin instead of 9 with K = Cin.
        for dy in range(3):
            rows = xp_ref[dy:dy + H]                              # (H, W+2, Cin)
            patch = jnp.concatenate(
                [rows[:, 0:W], rows[:, 1:W + 1], rows[:, 2:W + 2]], axis=-1)
            acc = acc + jnp.dot(
                patch.reshape(H * W, 3 * Cin).astype(jnp.bfloat16),
                w_ref[dy].reshape(3 * Cin, Cout),
                preferred_element_type=jnp.float32)
    else:
        # Small / unaligned Cin (the network input): 9 shifted matmuls.
        for dy in range(3):
            for dx in range(3):
                patch = xp_ref[dy:dy + H, dx:dx + W, :].reshape(H * W, Cin)
                acc = acc + jnp.dot(
                    patch.astype(jnp.bfloat16), w_ref[dy, dx],
                    preferred_element_type=jnp.float32)
    return acc


def _double_conv_kernel(x_ref, w1_ref, b1_ref, w2_ref, b2_ref, o_ref,
                        xp_ref, hp_ref):
    """One batch element of (conv3x3 -> BN -> ReLU) x 2, fully fused.

    x_ref:  (1, H, W, Cin)          bf16 input tile
    w1_ref: (3, 3, Cin, Cmid_p)     bf16 (BN1 scale folded in)
    b1_ref: (1, Cmid_p)             f32  (BN1 folded bias)
    w2_ref: (3, 3, Cmid_p, Cout_p)  bf16 (BN2 scale folded in)
    b2_ref: (1, Cout_p)             f32  (BN2 folded bias)
    o_ref:  (1, H, W, Cout_p)       f32 output tile
    xp_ref: (H+2, W+2, Cin)         f32 VMEM scratch (padded input)
    hp_ref: (H+2, W+2, Cmid_p)      f32 VMEM scratch (padded intermediate)
    """
    H, W = o_ref.shape[1], o_ref.shape[2]

    # ---- Stage 1: halo in VMEM, conv, folded-BN bias, ReLU ------------------
    xp_ref[...] = jnp.zeros_like(xp_ref)
    xp_ref[1:H + 1, 1:W + 1, :] = x_ref[0].astype(xp_ref.dtype)
    h = _conv3x3(xp_ref, w1_ref, H, W)                  # (H*W, Cmid_p) f32
    h = jnp.maximum(h + b1_ref[...], 0.0)               # fp32 epilogue

    # Intermediate activation never leaves VMEM.
    hp_ref[...] = jnp.zeros_like(hp_ref)
    hp_ref[1:H + 1, 1:W + 1, :] = h.reshape(H, W, -1)

    # ---- Stage 2 -------------------------------------------------------------
    y = _conv3x3(hp_ref, w2_ref, H, W)                  # (H*W, Cout_p) f32
    y = jnp.maximum(y + b2_ref[...], 0.0)
    o_ref[0] = y.reshape(H, W, -1).astype(o_ref.dtype)


def _fold_bn(w_hwio, scale, bias, cin_pad, cout_pad):
    """Fold BN scale into conv weights, zero-pad channels, cast weights to bf16."""
    kh, kw, cin, cout = w_hwio.shape
    w = w_hwio.astype(jnp.float32) * scale.astype(jnp.float32)[None, None, None, :]
    w = jnp.pad(w, ((0, 0), (0, 0), (0, cin_pad - cin), (0, cout_pad - cout)))
    b = jnp.pad(bias.astype(jnp.float32), ((0, cout_pad - cout),))
    return w.astype(jnp.bfloat16), b.reshape(1, cout_pad)


def double_conv_nhwc(x_nhwc, params):
    """Fused DoubleConv on NHWC input; returns NHWC output (un-padded channels)."""
    N, H, W, Cin = x_nhwc.shape
    Cmid = params["w1"].shape[-1]
    Cout = params["w2"].shape[-1]
    # Pad mid/out channels to the 128-lane width -> dense MXU N dim, dense stores,
    # K = 3*128 contraction for stage 2.
    Cmid_p = _round_up(Cmid, 128)
    Cout_p = _round_up(Cout, 128)

    w1, b1 = _fold_bn(params["w1"], params["scale1"], params["bias1"], Cin, Cmid_p)
    w2, b2 = _fold_bn(params["w2"], params["scale2"], params["bias2"], Cmid_p, Cout_p)
    x_bf16 = x_nhwc.astype(jnp.bfloat16)   # halve HBM read bytes for activations

    out_p = pl.pallas_call(
        _double_conv_kernel,
        out_shape=jax.ShapeDtypeStruct((N, H, W, Cout_p), jnp.float32),
        grid_spec=pltpu.PrefetchScalarGridSpec(
            num_scalar_prefetch=0,
            grid=(N,),
            in_specs=[
                pl.BlockSpec((1, H, W, Cin), lambda n: (n, 0, 0, 0)),
                pl.BlockSpec((3, 3, Cin, Cmid_p), lambda n: (0, 0, 0, 0)),
                pl.BlockSpec((1, Cmid_p), lambda n: (0, 0)),
                pl.BlockSpec((3, 3, Cmid_p, Cout_p), lambda n: (0, 0, 0, 0)),
                pl.BlockSpec((1, Cout_p), lambda n: (0, 0)),
            ],
            out_specs=pl.BlockSpec((1, H, W, Cout_p), lambda n: (n, 0, 0, 0)),
            scratch_shapes=[
                pltpu.VMEM((H + 2, W + 2, Cin), jnp.float32),
                pltpu.VMEM((H + 2, W + 2, Cmid_p), jnp.float32),
            ],
        ),
        compiler_params=pltpu.CompilerParams(
            dimension_semantics=("parallel",),
            vmem_limit_bytes=32 * 1024 * 1024,
        ),
    )(x_bf16, w1, b1, w2, b2)

    return out_p[..., :Cout]


def double_conv(x_nchw, params):
    """PyTorch-parity entry point (NCHW in / NCHW out)."""
    x = jnp.transpose(x_nchw, (0, 2, 3, 1))   # NCHW -> NHWC
    y = double_conv_nhwc(x, params)
    return jnp.transpose(y, (0, 3, 1, 2))     # NHWC -> NCHW


def make_double_conv_params(key, in_channels, out_channels, mid_channels=None,
                            dtype=jnp.float32):
    """Deterministic synthetic parameters matching DoubleConv.__init__ shapes."""
    if mid_channels is None:
        mid_channels = out_channels
    ks = jax.random.split(key, 10)

    def he(k, cin, cout):
        # PyTorch Conv2d weight is (Cout, Cin, 3, 3); we store HWIO (3, 3, Cin, Cout).
        fan_in = cin * 9
        return jax.random.normal(k, (3, 3, cin, cout), dtype) * jnp.sqrt(2.0 / fan_in)

    eps = 1e-5
    p = {}
    p["w1"] = he(ks[0], in_channels, mid_channels)
    gamma1 = 1.0 + 0.1 * jax.random.normal(ks[1], (mid_channels,), dtype)
    beta1 = 0.1 * jax.random.normal(ks[2], (mid_channels,), dtype)
    mean1 = 0.05 * jax.random.normal(ks[3], (mid_channels,), dtype)
    var1 = 1.0 + 0.1 * jax.random.uniform(ks[4], (mid_channels,), dtype)
    p["scale1"] = gamma1 / jnp.sqrt(var1 + eps)
    p["bias1"] = beta1 - mean1 * p["scale1"]

    p["w2"] = he(ks[5], mid_channels, out_channels)
    gamma2 = 1.0 + 0.1 * jax.random.normal(ks[6], (out_channels,), dtype)
    beta2 = 0.1 * jax.random.normal(ks[7], (out_channels,), dtype)
    mean2 = 0.05 * jax.random.normal(ks[8], (out_channels,), dtype)
    var2 = 1.0 + 0.1 * jax.random.uniform(ks[9], (out_channels,), dtype)
    p["scale2"] = gamma2 / jnp.sqrt(var2 + eps)
    p["bias2"] = beta2 - mean2 * p["scale2"]
    return p


def _reference_double_conv(x_nchw, params):
    """Pure-JAX reference using the same folded-BN / bf16-matmul numerics."""
    x = jnp.transpose(x_nchw, (0, 2, 3, 1)).astype(jnp.bfloat16)
    Cin = x.shape[-1]
    Cmid = params["w1"].shape[-1]
    Cout = params["w2"].shape[-1]
    w1, b1 = _fold_bn(params["w1"], params["scale1"], params["bias1"], Cin, Cmid)
    w2, b2 = _fold_bn(params["w2"], params["scale2"], params["bias2"], Cmid, Cout)

    def conv(a, w):
        return jax.lax.conv_general_dilated(
            a, w, window_strides=(1, 1), padding="SAME",
            dimension_numbers=("NHWC", "HWIO", "NHWC"),
            preferred_element_type=jnp.float32)

    h = jnp.maximum(conv(x, w1) + b1.reshape(-1), 0.0).astype(jnp.bfloat16)
    y = jnp.maximum(conv(h, w2) + b2.reshape(-1), 0.0)
    return jnp.transpose(y, (0, 3, 1, 2))


if __name__ == "__main__":
    key = jax.random.PRNGKey(0)
    k_x, k_p = jax.random.split(key)

    N, Cin, H, W = 2, 4, 16, 16
    Cout = 8
    x = jax.random.normal(k_x, (N, Cin, H, W), jnp.float32)
    params = make_double_conv_params(k_p, Cin, Cout)

    out = jax.jit(double_conv)(x, params)
    out = jax.block_until_ready(out)

    assert out.shape == (N, Cout, H, W)
    assert bool(jnp.all(out >= 0.0))  # ReLU output

    ref = _reference_double_conv(x, params)
    err = float(jnp.max(jnp.abs(out - ref)))
    assert err < 1e-2, f"max abs error vs reference: {err}"

    print("KERNEL_OK")
</pallas_src>

<mosaic_0001>
module attributes {stable_mosaic.version = 11 : i64} {
  func.func @_double_conv_kernel(%arg0: i32, %arg1: memref<1x16x16x4xbf16, #tpu.memory_space<vmem>>, %arg2: memref<3x3x4x128xbf16, #tpu.memory_space<vmem>>, %arg3: memref<1x128xf32, #tpu.memory_space<vmem>>, %arg4: memref<3x3x128x128xbf16, #tpu.memory_space<vmem>>, %arg5: memref<1x128xf32, #tpu.memory_space<vmem>>, %arg6: memref<1x16x16x128xf32, #tpu.memory_space<vmem>>, %arg7: memref<18x18x4xf32, #tpu.memory_space<vmem>>, %arg8: memref<18x18x128xf32, #tpu.memory_space<vmem>>) attributes {dimension_semantics = [#tpu.dimension_semantics<parallel>], iteration_bounds = array<i64: 2>, scalar_prefetch = 0 : i64, scratch_operands = 2 : i64, tpu.core_type = #tpu.core_type<tc>, window_params = [{transform_indices = @transform_0, window_bounds = array<i64: 1, 16, 16, 4>}, {pipeline_mode = #tpu.pipeline_mode<synchronous>, transform_indices = @transform_1, window_bounds = array<i64: 3, 3, 4, 128>}, {pipeline_mode = #tpu.pipeline_mode<synchronous>, transform_indices = @transform_2, window_bounds = array<i64: 1, 128>}, {pipeline_mode = #tpu.pipeline_mode<synchronous>, transform_indices = @transform_3, window_bounds = array<i64: 3, 3, 128, 128>}, {pipeline_mode = #tpu.pipeline_mode<synchronous>, transform_indices = @transform_4, window_bounds = array<i64: 1, 128>}, {transform_indices = @transform_5, window_bounds = array<i64: 1, 16, 16, 128>}]} {
    %cst = arith.constant 0.000000e+00 : f32
    %0 = vector.broadcast %cst : f32 to vector<18x18x4xf32>
    %c0 = arith.constant 0 : index
    %c0_0 = arith.constant 0 : index
    %c0_1 = arith.constant 0 : index
    %1 = vector.load %arg7[%c0, %c0_0, %c0_1] : memref<18x18x4xf32, #tpu.memory_space<vmem>>, vector<18x18x4xf32>
    tpu.vector_store %arg7[%c0, %c0_0, %c0_1], %0 {strides = array<i32>} : memref<18x18x4xf32, #tpu.memory_space<vmem>>, vector<18x18x4xf32>,
    %c0_2 = arith.constant 0 : index
    %c0_3 = arith.constant 0 : index
    %c0_4 = arith.constant 0 : index
    %c0_5 = arith.constant 0 : index
    %2 = vector.load %arg1[%c0_2, %c0_3, %c0_4, %c0_5] : memref<1x16x16x4xbf16, #tpu.memory_space<vmem>>, vector<1x16x16x4xbf16>
    %3 = vector.shape_cast %2 : vector<1x16x16x4xbf16> to vector<16x16x4xbf16>
    %4 = arith.extf %3 : vector<16x16x4xbf16> to vector<16x16x4xf32>
    %c1 = arith.constant 1 : index
    %c1_6 = arith.constant 1 : index
    %c0_7 = arith.constant 0 : index
    %5 = vector.load %arg7[%c1, %c1_6, %c0_7] : memref<18x18x4xf32, #tpu.memory_space<vmem>>, vector<16x16x4xf32>
    tpu.vector_store %arg7[%c1, %c1_6, %c0_7], %4 {strides = array<i32>} : memref<18x18x4xf32, #tpu.memory_space<vmem>>, vector<16x16x4xf32>,
    %cst_8 = arith.constant 0.000000e+00 : f32
    %6 = vector.broadcast %cst_8 : f32 to vector<256x128xf32>
    %c0_9 = arith.constant 0 : index
    %c0_10 = arith.constant 0 : index
    %c0_11 = arith.constant 0 : index
    %7 = vector.load %arg7[%c0_9, %c0_10, %c0_11] : memref<18x18x4xf32, #tpu.memory_space<vmem>>, vector<16x16x4xf32>
    %8 = vector.shape_cast %7 : vector<16x16x4xf32> to vector<256x4xf32>
    %9 = arith.truncf %8 : vector<256x4xf32> to vector<256x4xbf16>
    %c0_12 = arith.constant 0 : index
    %c0_13 = arith.constant 0 : index
    %c0_14 = arith.constant 0 : index
    %c0_15 = arith.constant 0 : index
    %10 = vector.load %arg2[%c0_12, %c0_13, %c0_14, %c0_15] : memref<3x3x4x128xbf16, #tpu.memory_space<vmem>>, vector<1x1x4x128xbf16>
    %11 = vector.shape_cast %10 : vector<1x1x4x128xbf16> to vector<4x128xbf16>
    %cst_16 = arith.constant dense<0.000000e+00> : vector<256x128xf32>
    %12 = tpu.matmul %9, %11, %cst_16 {dimension_numbers = #tpu.dot_dimension_numbers<[1], [0], [0], [1], [0, 0, 1, 1], [], []>} : vector<256x4xbf16>, vector<4x128xbf16>, vector<256x128xf32> -> vector<256x128xf32>
    %13 = arith.addf %6, %12 : vector<256x128xf32>
    %c0_17 = arith.constant 0 : index
    %c1_18 = arith.constant 1 : index
    %c0_19 = arith.constant 0 : index
    %14 = vector.load %arg7[%c0_17, %c1_18, %c0_19] : memref<18x18x4xf32, #tpu.memory_space<vmem>>, vector<16x16x4xf32>
    %15 = vector.shape_cast %14 : vector<16x16x4xf32> to vector<256x4xf32>
    %16 = arith.truncf %15 : vector<256x4xf32> to vector<256x4xbf16>
    %c0_20 = arith.constant 0 : index
    %c1_21 = arith.constant 1 : index
    %c0_22 = arith.constant 0 : index
    %c0_23 = arith.constant 0 : index
    %17 = vector.load %arg2[%c0_20, %c1_21, %c0_22, %c0_23] : memref<3x3x4x128xbf16, #tpu.memory_space<vmem>>, vector<1x1x4x128xbf16>
    %18 = vector.shape_cast %17 : vector<1x1x4x128xbf16> to vector<4x128xbf16>
    %cst_24 = arith.constant dense<0.000000e+00> : vector<256x128xf32>
    %19 = tpu.matmul %16, %18, %cst_24 {dimension_numbers = #tpu.dot_dimension_numbers<[1], [0], [0], [1], [0, 0, 1, 1], [], []>} : vector<256x4xbf16>, vector<4x128xbf16>, vector<256x128xf32> -> vector<256x128xf32>
    %20 = arith.addf %13, %19 : vector<256x128xf32>
    %c0_25 = arith.constant 0 : index
    %c2 = arith.constant 2 : index
    %c0_26 = arith.constant 0 : index
    %21 = vector.load %arg7[%c0_25, %c2, %c0_26] : memref<18x18x4xf32, #tpu.memory_space<vmem>>, vector<16x16x4xf32>
    %22 = vector.shape_cast %21 : vector<16x16x4xf32> to vector<256x4xf32>
    %23 = arith.truncf %22 : vector<256x4xf32> to vector<256x4xbf16>
    %c0_27 = arith.constant 0 : index
    %c2_28 = arith.constant 2 : index
    %c0_29 = arith.constant 0 : index
    %c0_30 = arith.constant 0 : index
    %24 = vector.load %arg2[%c0_27, %c2_28, %c0_29, %c0_30] : memref<3x3x4x128xbf16, #tpu.memory_space<vmem>>, vector<1x1x4x128xbf16>
    %25 = vector.shape_cast %24 : vector<1x1x4x128xbf16> to vector<4x128xbf16>
    %cst_31 = arith.constant dense<0.000000e+00> : vector<256x128xf32>
    %26 = tpu.matmul %23, %25, %cst_31 {dimension_numbers = #tpu.dot_dimension_numbers<[1], [0], [0], [1], [0, 0, 1, 1], [], []>} : vector<256x4xbf16>, vector<4x128xbf16>, vector<256x128xf32> -> vector<256x128xf32>
    %27 = arith.addf %20, %26 : vector<256x128xf32>
    %c1_32 = arith.constant 1 : index
    %c0_33 = arith.constant 0 : index
    %c0_34 = arith.constant 0 : index
    %28 = vector.load %arg7[%c1_32, %c0_33, %c0_34] : memref<18x18x4xf32, #tpu.memory_space<vmem>>, vector<16x16x4xf32>
    %29 = vector.shape_cast %28 : vector<16x16x4xf32> to vector<256x4xf32>
    %30 = arith.truncf %29 : vector<256x4xf32> to vector<256x4xbf16>
    %c1_35 = arith.constant 1 : index
    %c0_36 = arith.constant 0 : index
    %c0_37 = arith.constant 0 : index
    %c0_38 = arith.constant 0 : index
    %31 = vector.load %arg2[%c1_35, %c0_36, %c0_37, %c0_38] : memref<3x3x4x128xbf16, #tpu.memory_space<vmem>>, vector<1x1x4x128xbf16>
    %32 = vector.shape_cast %31 : vector<1x1x4x128xbf16> to vector<4x128xbf16>
    %cst_39 = arith.constant dense<0.000000e+00> : vector<256x128xf32>
    %33 = tpu.matmul %30, %32, %cst_39 {dimension_numbers = #tpu.dot_dimension_numbers<[1], [0], [0], [1], [0, 0, 1, 1], [], []>} : vector<256x4xbf16>, vector<4x128xbf16>, vector<256x128xf32> -> vector<256x128xf32>
    %34 = arith.addf %27, %33 : vector<256x128xf32>
    %c1_40 = arith.constant 1 : index
    %c1_41 = arith.constant 1 : index
    %c0_42 = arith.constant 0 : index
    %35 = vector.load %arg7[%c1_40, %c1_41, %c0_42] : memref<18x18x4xf32, #tpu.memory_space<vmem>>, vector<16x16x4xf32>
    %36 = vector.shape_cast %35 : vector<16x16x4xf32> to vector<256x4xf32>
    %37 = arith.truncf %36 : vector<256x4xf32> to vector<256x4xbf16>
    %c1_43 = arith.constant 1 : index
    %c1_44 = arith.constant 1 : index
    %c0_45 = arith.constant 0 : index
    %c0_46 = arith.constant 0 : index
    %38 = vector.load %arg2[%c1_43, %c1_44, %c0_45, %c0_46] : memref<3x3x4x128xbf16, #tpu.memory_space<vmem>>, vector<1x1x4x128xbf16>
    %39 = vector.shape_cast %38 : vector<1x1x4x128xbf16> to vector<4x128xbf16>
    %cst_47 = arith.constant dense<0.000000e+00> : vector<256x128xf32>
    %40 = tpu.matmul %37, %39, %cst_47 {dimension_numbers = #tpu.dot_dimension_numbers<[1], [0], [0], [1], [0, 0, 1, 1], [], []>} : vector<256x4xbf16>, vector<4x128xbf16>, vector<256x128xf32> -> vector<256x128xf32>
    %41 = arith.addf %34, %40 : vector<256x128xf32>
    %c1_48 = arith.constant 1 : index
    %c2_49 = arith.constant 2 : index
    %c0_50 = arith.constant 0 : index
    %42 = vector.load %arg7[%c1_48, %c2_49, %c0_50] : memref<18x18x4xf32, #tpu.memory_space<vmem>>, vector<16x16x4xf32>
    %43 = vector.shape_cast %42 : vector<16x16x4xf32> to vector<256x4xf32>
    %44 = arith.truncf %43 : vector<256x4xf32> to vector<256x4xbf16>
    %c1_51 = arith.constant 1 : index
    %c2_52 = arith.constant 2 : index
    %c0_53 = arith.constant 0 : index
    %c0_54 = arith.constant 0 : index
    %45 = vector.load %arg2[%c1_51, %c2_52, %c0_53, %c0_54] : memref<3x3x4x128xbf16, #tpu.memory_space<vmem>>, vector<1x1x4x128xbf16>
    %46 = vector.shape_cast %45 : vector<1x1x4x128xbf16> to vector<4x128xbf16>
    %cst_55 = arith.constant dense<0.000000e+00> : vector<256x128xf32>
    %47 = tpu.matmul %44, %46, %cst_55 {dimension_numbers = #tpu.dot_dimension_numbers<[1], [0], [0], [1], [0, 0, 1, 1], [], []>} : vector<256x4xbf16>, vector<4x128xbf16>, vector<256x128xf32> -> vector<256x128xf32>
    %48 = arith.addf %41, %47 : vector<256x128xf32>
    %c2_56 = arith.constant 2 : index
    %c0_57 = arith.constant 0 : index
    %c0_58 = arith.constant 0 : index
    %49 = vector.load %arg7[%c2_56, %c0_57, %c0_58] : memref<18x18x4xf32, #tpu.memory_space<vmem>>, vector<16x16x4xf32>
    %50 = vector.shape_cast %49 : vector<16x16x4xf32> to vector<256x4xf32>
    %51 = arith.truncf %50 : vector<256x4xf32> to vector<256x4xbf16>
    %c2_59 = arith.constant 2 : index
    %c0_60 = arith.constant 0 : index
    %c0_61 = arith.constant 0 : index
    %c0_62 = arith.constant 0 : index
    %52 = vector.load %arg2[%c2_59, %c0_60, %c0_61, %c0_62] : memref<3x3x4x128xbf16, #tpu.memory_space<vmem>>, vector<1x1x4x128xbf16>
    %53 = vector.shape_cast %52 : vector<1x1x4x128xbf16> to vector<4x128xbf16>
    %cst_63 = arith.constant dense<0.000000e+00> : vector<256x128xf32>
    %54 = tpu.matmul %51, %53, %cst_63 {dimension_numbers = #tpu.dot_dimension_numbers<[1], [0], [0], [1], [0, 0, 1, 1], [], []>} : vector<256x4xbf16>, vector<4x128xbf16>, vector<256x128xf32> -> vector<256x128xf32>
    %55 = arith.addf %48, %54 : vector<256x128xf32>
    %c2_64 = arith.constant 2 : index
    %c1_65 = arith.constant 1 : index
    %c0_66 = arith.constant 0 : index
    %56 = vector.load %arg7[%c2_64, %c1_65, %c0_66] : memref<18x18x4xf32, #tpu.memory_space<vmem>>, vector<16x16x4xf32>
    %57 = vector.shape_cast %56 : vector<16x16x4xf32> to vector<256x4xf32>
    %58 = arith.truncf %57 : vector<256x4xf32> to vector<256x4xbf16>
    %c2_67 = arith.constant 2 : index
    %c1_68 = arith.constant 1 : index
    %c0_69 = arith.constant 0 : index
    %c0_70 = arith.constant 0 : index
    %59 = vector.load %arg2[%c2_67, %c1_68, %c0_69, %c0_70] : memref<3x3x4x128xbf16, #tpu.memory_space<vmem>>, vector<1x1x4x128xbf16>
    %60 = vector.shape_cast %59 : vector<1x1x4x128xbf16> to vector<4x128xbf16>
    %cst_71 = arith.constant dense<0.000000e+00> : vector<256x128xf32>
    %61 = tpu.matmul %58, %60, %cst_71 {dimension_numbers = #tpu.dot_dimension_numbers<[1], [0], [0], [1], [0, 0, 1, 1], [], []>} : vector<256x4xbf16>, vector<4x128xbf16>, vector<256x128xf32> -> vector<256x128xf32>
    %62 = arith.addf %55, %61 : vector<256x128xf32>
    %c2_72 = arith.constant 2 : index
    %c2_73 = arith.constant 2 : index
    %c0_74 = arith.constant 0 : index
    %63 = vector.load %arg7[%c2_72, %c2_73, %c0_74] : memref<18x18x4xf32, #tpu.memory_space<vmem>>, vector<16x16x4xf32>
    %64 = vector.shape_cast %63 : vector<16x16x4xf32> to vector<256x4xf32>
    %65 = arith.truncf %64 : vector<256x4xf32> to vector<256x4xbf16>
    %c2_75 = arith.constant 2 : index
    %c2_76 = arith.constant 2 : index
    %c0_77 = arith.constant 0 : index
    %c0_78 = arith.constant 0 : index
    %66 = vector.load %arg2[%c2_75, %c2_76, %c0_77, %c0_78] : memref<3x3x4x128xbf16, #tpu.memory_space<vmem>>, vector<1x1x4x128xbf16>
    %67 = vector.shape_cast %66 : vector<1x1x4x128xbf16> to vector<4x128xbf16>
    %cst_79 = arith.constant dense<0.000000e+00> : vector<256x128xf32>
    %68 = tpu.matmul %65, %67, %cst_79 {dimension_numbers = #tpu.dot_dimension_numbers<[1], [0], [0], [1], [0, 0, 1, 1], [], []>} : vector<256x4xbf16>, vector<4x128xbf16>, vector<256x128xf32> -> vector<256x128xf32>
    %69 = arith.addf %62, %68 : vector<256x128xf32>
    %c0_80 = arith.constant 0 : index
    %c0_81 = arith.constant 0 : index
    %70 = vector.load %arg3[%c0_80, %c0_81] : memref<1x128xf32, #tpu.memory_space<vmem>>, vector<1x128xf32>
    %71 = vector.broadcast %70 : vector<1x128xf32> to vector<256x128xf32>
    %72 = arith.addf %69, %71 : vector<256x128xf32>
    %cst_82 = arith.constant 0.000000e+00 : f32
    %73 = vector.broadcast %cst_82 : f32 to vector<256x128xf32>
    %74 = arith.maximumf %72, %73 : vector<256x128xf32>
    %cst_83 = arith.constant 0.000000e+00 : f32
    %75 = vector.broadcast %cst_83 : f32 to vector<18x18x128xf32>
    %c0_84 = arith.constant 0 : index
    %c0_85 = arith.constant 0 : index
    %c0_86 = arith.constant 0 : index
    %76 = vector.load %arg8[%c0_84, %c0_85, %c0_86] : memref<18x18x128xf32, #tpu.memory_space<vmem>>, vector<18x18x128xf32>
    tpu.vector_store %arg8[%c0_84, %c0_85, %c0_86], %75 {strides = array<i32>} : memref<18x18x128xf32, #tpu.memory_space<vmem>>, vector<18x18x128xf32>,
    %77 = vector.shape_cast %74 : vector<256x128xf32> to vector<16x16x128xf32>
    %c1_87 = arith.constant 1 : index
    %c1_88 = arith.constant 1 : index
    %c0_89 = arith.constant 0 : index
    %78 = vector.load %arg8[%c1_87, %c1_88, %c0_89] : memref<18x18x128xf32, #tpu.memory_space<vmem>>, vector<16x16x128xf32>
    tpu.vector_store %arg8[%c1_87, %c1_88, %c0_89], %77 {strides = array<i32>} : memref<18x18x128xf32, #tpu.memory_space<vmem>>, vector<16x16x128xf32>,
    %cst_90 = arith.constant 0.000000e+00 : f32
    %79 = vector.broadcast %cst_90 : f32 to vector<256x128xf32>
    %c0_91 = arith.constant 0 : index
    %c0_92 = arith.constant 0 : index
    %c0_93 = arith.constant 0 : index
    %80 = vector.load %arg8[%c0_91, %c0_92, %c0_93] : memref<18x18x128xf32, #tpu.memory_space<vmem>>, vector<16x18x128xf32>
    %81 = vector.extract_strided_slice %80 {offsets = [0, 0, 0], sizes = [16, 16, 128], strides = [1, 1, 1]} : vector<16x18x128xf32> to vector<16x16x128xf32>
    %82 = vector.extract_strided_slice %80 {offsets = [0, 1, 0], sizes = [16, 16, 128], strides = [1, 1, 1]} : vector<16x18x128xf32> to vector<16x16x128xf32>
    %83 = vector.extract_strided_slice %80 {offsets = [0, 2, 0], sizes = [16, 16, 128], strides = [1, 1, 1]} : vector<16x18x128xf32> to vector<16x16x128xf32>
    %84 = tpu.concatenate %81, %82, %83 in 2 : vector<16x16x128xf32>, vector<16x16x128xf32>, vector<16x16x128xf32> -> vector<16x16x384xf32>
    %85 = vector.shape_cast %84 : vector<16x16x384xf32> to vector<256x384xf32>
    %86 = arith.truncf %85 : vector<256x384xf32> to vector<256x384xbf16>
    %c0_94 = arith.constant 0 : index
    %c0_95 = arith.constant 0 : index
    %c0_96 = arith.constant 0 : index
    %c0_97 = arith.constant 0 : index
    %87 = vector.load %arg4[%c0_94, %c0_95, %c0_96, %c0_97] : memref<3x3x128x128xbf16, #tpu.memory_space<vmem>>, vector<1x3x128x128xbf16>
    %88 = vector.shape_cast %87 : vector<1x3x128x128xbf16> to vector<3x128x128xbf16>
    %89 = vector.shape_cast %88 : vector<3x128x128xbf16> to vector<384x128xbf16>
    %cst_98 = arith.constant dense<0.000000e+00> : vector<256x128xf32>
    %90 = tpu.matmul %86, %89, %cst_98 {dimension_numbers = #tpu.dot_dimension_numbers<[1], [0], [0], [1], [0, 0, 1, 1], [], []>} : vector<256x384xbf16>, vector<384x128xbf16>, vector<256x128xf32> -> vector<256x128xf32>
    %91 = arith.addf %79, %90 : vector<256x128xf32>
    %c1_99 = arith.constant 1 : index
    %c0_100 = arith.constant 0 : index
    %c0_101 = arith.constant 0 : index
    %92 = vector.load %arg8[%c1_99, %c0_100, %c0_101] : memref<18x18x128xf32, #tpu.memory_space<vmem>>, vector<16x18x128xf32>
    %93 = vector.extract_strided_slice %92 {offsets = [0, 0, 0], sizes = [16, 16, 128], strides = [1, 1, 1]} : vector<16x18x128xf32> to vector<16x16x128xf32>
    %94 = vector.extract_strided_slice %92 {offsets = [0, 1, 0], sizes = [16, 16, 128], strides = [1, 1, 1]} : vector<16x18x128xf32> to vector<16x16x128xf32>
    %95 = vector.extract_strided_slice %92 {offsets = [0, 2, 0], sizes = [16, 16, 128], strides = [1, 1, 1]} : vector<16x18x128xf32> to vector<16x16x128xf32>
    %96 = tpu.concatenate %93, %94, %95 in 2 : vector<16x16x128xf32>, vector<16x16x128xf32>, vector<16x16x128xf32> -> vector<16x16x384xf32>
    %97 = vector.shape_cast %96 : vector<16x16x384xf32> to vector<256x384xf32>
    %98 = arith.truncf %97 : vector<256x384xf32> to vector<256x384xbf16>
    %c1_102 = arith.constant 1 : index
    %c0_103 = arith.constant 0 : index
    %c0_104 = arith.constant 0 : index
    %c0_105 = arith.constant 0 : index
    %99 = vector.load %arg4[%c1_102, %c0_103, %c0_104, %c0_105] : memref<3x3x128x128xbf16, #tpu.memory_space<vmem>>, vector<1x3x128x128xbf16>
    %100 = vector.shape_cast %99 : vector<1x3x128x128xbf16> to vector<3x128x128xbf16>
    %101 = vector.shape_cast %100 : vector<3x128x128xbf16> to vector<384x128xbf16>
    %cst_106 = arith.constant dense<0.000000e+00> : vector<256x128xf32>
    %102 = tpu.matmul %98, %101, %cst_106 {dimension_numbers = #tpu.dot_dimension_numbers<[1], [0], [0], [1], [0, 0, 1, 1], [], []>} : vector<256x384xbf16>, vector<384x128xbf16>, vector<256x128xf32> -> vector<256x128xf32>
    %103 = arith.addf %91, %102 : vector<256x128xf32>
    %c2_107 = arith.constant 2 : index
    %c0_108 = arith.constant 0 : index
    %c0_109 = arith.constant 0 : index
    %104 = vector.load %arg8[%c2_107, %c0_108, %c0_109] : memref<18x18x128xf32, #tpu.memory_space<vmem>>, vector<16x18x128xf32>
    %105 = vector.extract_strided_slice %104 {offsets = [0, 0, 0], sizes = [16, 16, 128], strides = [1, 1, 1]} : vector<16x18x128xf32> to vector<16x16x128xf32>
    %106 = vector.extract_strided_slice %104 {offsets = [0, 1, 0], sizes = [16, 16, 128], strides = [1, 1, 1]} : vector<16x18x128xf32> to vector<16x16x128xf32>
    %107 = vector.extract_strided_slice %104 {offsets = [0, 2, 0], sizes = [16, 16, 128], strides = [1, 1, 1]} : vector<16x18x128xf32> to vector<16x16x128xf32>
    %108 = tpu.concatenate %105, %106, %107 in 2 : vector<16x16x128xf32>, vector<16x16x128xf32>, vector<16x16x128xf32> -> vector<16x16x384xf32>
    %109 = vector.shape_cast %108 : vector<16x16x384xf32> to vector<256x384xf32>
    %110 = arith.truncf %109 : vector<256x384xf32> to vector<256x384xbf16>
    %c2_110 = arith.constant 2 : index
    %c0_111 = arith.constant 0 : index
    %c0_112 = arith.constant 0 : index
    %c0_113 = arith.constant 0 : index
    %111 = vector.load %arg4[%c2_110, %c0_111, %c0_112, %c0_113] : memref<3x3x128x128xbf16, #tpu.memory_space<vmem>>, vector<1x3x128x128xbf16>
    %112 = vector.shape_cast %111 : vector<1x3x128x128xbf16> to vector<3x128x128xbf16>
    %113 = vector.shape_cast %112 : vector<3x128x128xbf16> to vector<384x128xbf16>
    %cst_114 = arith.constant dense<0.000000e+00> : vector<256x128xf32>
    %114 = tpu.matmul %110, %113, %cst_114 {dimension_numbers = #tpu.dot_dimension_numbers<[1], [0], [0], [1], [0, 0, 1, 1], [], []>} : vector<256x384xbf16>, vector<384x128xbf16>, vector<256x128xf32> -> vector<256x128xf32>
    %115 = arith.addf %103, %114 : vector<256x128xf32>
    %c0_115 = arith.constant 0 : index
    %c0_116 = arith.constant 0 : index
    %116 = vector.load %arg5[%c0_115, %c0_116] : memref<1x128xf32, #tpu.memory_space<vmem>>, vector<1x128xf32>
    %117 = vector.broadcast %116 : vector<1x128xf32> to vector<256x128xf32>
    %118 = arith.addf %115, %117 : vector<256x128xf32>
    %cst_117 = arith.constant 0.000000e+00 : f32
    %119 = vector.broadcast %cst_117 : f32 to vector<256x128xf32>
    %120 = arith.maximumf %118, %119 : vector<256x128xf32>
    %121 = vector.shape_cast %120 : vector<256x128xf32> to vector<16x16x128xf32>
    %c0_118 = arith.constant 0 : index
    %c0_119 = arith.constant 0 : index
    %c0_120 = arith.constant 0 : index
    %c0_121 = arith.constant 0 : index
    %122 = vector.load %arg6[%c0_118, %c0_119, %c0_120, %c0_121] : memref<1x16x16x128xf32, #tpu.memory_space<vmem>>, vector<1x16x16x128xf32>
    %123 = vector.shape_cast %122 : vector<1x16x16x128xf32> to vector<16x16x128xf32>
    %124 = vector.shape_cast %121 : vector<16x16x128xf32> to vector<1x16x16x128xf32>
    tpu.vector_store %arg6[%c0_118, %c0_119, %c0_120, %c0_121], %124 {strides = array<i32>} : memref<1x16x16x128xf32, #tpu.memory_space<vmem>>, vector<1x16x16x128xf32>,
    return
  }
  func.func @transform_0(%arg0: i32) -> (i32, i32, i32, i32) {
    %c0_i32 = arith.constant 0 : i32
    %c0_i32_0 = arith.constant 0 : i32
    %c0_i32_1 = arith.constant 0 : i32
    %c0_i32_2 = arith.constant 0 : i32
    return %arg0, %c0_i32, %c0_i32_0, %c0_i32_1 : i32, i32, i32, i32
  }
  func.func @transform_1(%arg0: i32) -> (i32, i32, i32, i32) {
    %c0_i32 = arith.constant 0 : i32
    %c0_i32_0 = arith.constant 0 : i32
    %c0_i32_1 = arith.constant 0 : i32
    %c0_i32_2 = arith.constant 0 : i32
    %c0_i32_3 = arith.constant 0 : i32
    return %c0_i32, %c0_i32_0, %c0_i32_1, %c0_i32_2 : i32, i32, i32, i32
  }
  func.func @transform_2(%arg0: i32) -> (i32, i32) {
    %c0_i32 = arith.constant 0 : i32
    %c0_i32_0 = arith.constant 0 : i32
    %c0_i32_1 = arith.constant 0 : i32
    return %c0_i32, %c0_i32_0 : i32, i32
  }
  func.func @transform_3(%arg0: i32) -> (i32, i32, i32, i32) {
    %c0_i32 = arith.constant 0 : i32
    %c0_i32_0 = arith.constant 0 : i32
    %c0_i32_1 = arith.constant 0 : i32
    %c0_i32_2 = arith.constant 0 : i32
    %c0_i32_3 = arith.constant 0 : i32
    return %c0_i32, %c0_i32_0, %c0_i32_1, %c0_i32_2 : i32, i32, i32, i32
  }
  func.func @transform_4(%arg0: i32) -> (i32, i32) {
    %c0_i32 = arith.constant 0 : i32
    %c0_i32_0 = arith.constant 0 : i32
    %c0_i32_1 = arith.constant 0 : i32
    return %c0_i32, %c0_i32_0 : i32, i32
  }
  func.func @transform_5(%arg0: i32) -> (i32, i32, i32, i32) {
    %c0_i32 = arith.constant 0 : i32
    %c0_i32_0 = arith.constant 0 : i32
    %c0_i32_1 = arith.constant 0 : i32
    %c0_i32_2 = arith.constant 0 : i32
    return %arg0, %c0_i32, %c0_i32_0, %c0_i32_1 : i32, i32, i32, i32
  }
}

</mosaic_0001>

<bundles_post_ra>
// kernel: double_conv.1
= control target key start
LH: loop header
LB: loop body
LE: loop exit
PB: predicated region body
PF: predicated region fallthrough
CT: control target
= control target key end

     0   :  { %s7963_s18 = smov 0   ;;  %s10568_s0 = inlined_call_operand.vmem [shape: bf16[2,16,16,4], index: 0, kind: input, shape index: {}]   ;;  %s10569_s1 = inlined_call_operand.vmem [shape: bf16[3,3,4,128], index: 1, kind: input, shape index: {}]   ;;  %s10570_s2 = inlined_call_operand.vmem [shape: f32[1,128], index: 2, kind: input, shape index: {}]   ;;  %s10571_s3 = inlined_call_operand.vmem [shape: bf16[3,3,128,128], index: 3, kind: input, shape index: {}]   ;;  %s10572_s4 = inlined_call_operand.vmem [shape: f32[1,128], index: 4, kind: input, shape index: {}]   ;;  %s10573_s5 = inlined_call_operand.vmem [shape: f32[2,16,16,128], index: 5, kind: output, shape index: {}]  }
   0x1 LB: > { %s5961_s19 = sadd.s32 4294967295, %s7930_s18   ;;  %p5965_p0 = scmp.ge.s32.totalorder %s7930_s18, 1  ;;  %s7930_s18 = sphi %s7963_s18, %s15_s18  }
   0x2   : > { %p187_p1 = scmp.lt.s32.totalorder %s7930_s18, 3 }
   0x4   : > { %p188_p2 = pnand %p5965_p0, %p187_p1 }
   0x6   : > { %191 = sbr.rel (%p188_p2) target bundleno = 1604 (0x644), region = 40 }
   0xd   : > { %v5970_v0 = vld [vmem:[%s10569_s1 + $0x2] sm:$0x3]  ;;  %vm526_vm0 = vcmask 1041408   ;;  %vm226_vm1 = vcmask 31744   ;;  %vm229_vm2 = vcmask 25600   ;;  %v7932_v2 = vmov 0.0  }
   0xe   : > { %7818 = vmatprep.subr.msk.bf16.mxu0 %vm526_vm0, %v5970_v0  ;;  %v7976_v1 = vsel %vm526_vm0, %v5970_v0, 0  ;;  %227 = vst.msk [vmem:[#allocation2] sm:$0xff] %vm226_vm1, %v7932_v2  ;;  %228 = vst.msk [vmem:[#allocation2 + $0x8] sm:$0xff] %vm226_vm1, %v7932_v2  ;;  %v8140_v3 = vld [vmem:[%s10569_s1] sm:$0x3]  ;;  %p215_p3 = scmp.lt.s32.totalorder %s5961_s19, 1 }
   0xf   : > { %230 = vst.msk [vmem:[#allocation2 + $0x10] sm:$0x3] %vm229_vm2, %v7932_v2  ;;  %233 = vst.msk [vmem:[#allocation2 + $0x28] sm:$0x3] %vm229_vm2, %v7932_v2  ;;  %6937 = vmatpush3.bf16.msra.mxu0 %v7976_v1  ;;  %v740_v56 = vsel %vm526_vm0, %v8140_v3, 0  ;;  %vm3216_vm3 = vcmask 1046528  }
  0x10   : > { %231 = vst.msk [vmem:[#allocation2 + $0x18] sm:$0xff] %vm226_vm1, %v7932_v2  ;;  %232 = vst.msk [vmem:[#allocation2 + $0x20] sm:$0xff] %vm226_vm1, %v7932_v2  ;;  %7819 = vmatprep.subr.msk.bf16.mxu0 %vm526_vm0, %v8140_v3  ;;  %s11097_s19 = smov (!%p215_p3, %s5961_s19), 1  ;;  %v8212_v59 = vld [vmem:[%s10569_s1 + $0x4] sm:$0x3]  ;;  %vm3329_vm4 = vcmask 1045504  }
  0x11   : > { %234 = vst.msk [vmem:[#allocation2 + $0x30] sm:$0xff] %vm226_vm1, %v7932_v2  ;;  %235 = vst.msk [vmem:[#allocation2 + $0x38] sm:$0xff] %vm226_vm1, %v7932_v2  ;;  %s6294_s24 = sshll.u32 %s11097_s19, 7  ;;  %s6295_s29 = sshll.u32 %s11097_s19, 8 }
  0x12   : > { %236 = vst.msk [vmem:[#allocation2 + $0x40] sm:$0x3] %vm229_vm2, %v7932_v2  ;;  %239 = vst.msk [vmem:[#allocation2 + $0x58] sm:$0x3] %vm229_vm2, %v7932_v2  ;;  %s8155_s27 = scalar_lea.vmem %s10568_s0, %s6294_s24  ;;  %s10471_s7 = scalar_lea.vmem %s10573_s5, %s6295_s29 }
  0x13   : > { %237 = vst.msk [vmem:[#allocation2 + $0x48] sm:$0xff] %vm226_vm1, %v7932_v2  ;;  %238 = vst.msk [vmem:[#allocation2 + $0x50] sm:$0xff] %vm226_vm1, %v7932_v2  ;;  %v6297_v4 = vld [vmem:[%s8155_s27] sm:$0xff]   ;;  %v6360_v5 = vld [vmem:[%s8155_s27 + $0x8] sm:$0xff]  }
  0x14   : > { %240 = vst.msk [vmem:[#allocation2 + $0x60] sm:$0xff] %vm226_vm1, %v7932_v2  ;;  %241 = vst.msk [vmem:[#allocation2 + $0x68] sm:$0xff] %vm226_vm1, %v7932_v2  ;;  %v6361_v6 = vld [vmem:[%s8155_s27 + $0x10] sm:$0xff]   ;;  %v6298_v9 = vunpack.c.l.bf16 %v6297_v4  ;;  %v6299_v10 = vunpack.c.h.bf16 %v6297_v4  ;;  %v6302_v11 = vunpack.c.l.bf16 %v6360_v5  ;;  %v6303_v12 = vunpack.c.h.bf16 %v6360_v5  ;;  %v6362_v13 = vld [vmem:[%s8155_s27 + $0x18] sm:$0xff]  }
  0x15   : > { %242 = vst.msk [vmem:[#allocation2 + $0x70] sm:$0x3] %vm229_vm2, %v7932_v2  ;;  %245 = vst.msk [vmem:[#allocation2 + $0x88] sm:$0x3] %vm229_vm2, %v7932_v2  ;;  %v428_v7 = vld [vmem:[#allocation2 + $0x1] sm:$0xff]  ;;  %v6306_v15 = vunpack.c.l.bf16 %v6361_v6  ;;  %v6307_v16 = vunpack.c.h.bf16 %v6361_v6  ;;  %v6310_v17 = vunpack.c.l.bf16 %v6362_v13  ;;  %v6365_v20 = vld [vmem:[%s8155_s27 + $0x30] sm:$0xff]   ;;  %v6311_v21 = vunpack.c.h.bf16 %v6362_v13 }
  0x16   : > { %243 = vst.msk [vmem:[#allocation2 + $0x78] sm:$0xff] %vm226_vm1, %v7932_v2  ;;  %244 = vst.msk [vmem:[#allocation2 + $0x80] sm:$0xff] %vm226_vm1, %v7932_v2  ;;  %v429_v8 = vld [vmem:[#allocation2 + $0x9] sm:$0xff]  ;;  %v6363_v18 = vld [vmem:[%s8155_s27 + $0x20] sm:$0xff]   ;;  %v6322_v29 = vunpack.c.l.bf16 %v6365_v20  ;;  %v6323_v30 = vunpack.c.h.bf16 %v6365_v20 }
  0x17   : > { %246 = vst.msk [vmem:[#allocation2 + $0x90] sm:$0xff] %vm226_vm1, %v7932_v2  ;;  %247 = vst.msk [vmem:[#allocation2 + $0x98] sm:$0xff] %vm226_vm1, %v7932_v2  ;;  %v460_v14 = vpack.c.bf16 %v429_v8, %v428_v7  ;;  %v6364_v19 = vld [vmem:[%s8155_s27 + $0x28] sm:$0xff]   ;;  %v6314_v22 = vunpack.c.l.bf16 %v6363_v18  ;;  %v6315_v23 = vunpack.c.h.bf16 %v6363_v18  ;;  %v6366_v25 = vld [vmem:[%s8155_s27 + $0x38] sm:$0xff]  }
  0x18   : > { %248 = vst.msk [vmem:[#allocation2 + $0xa0] sm:$0x3] %vm229_vm2, %v7932_v2  ;;  %251 = vst.msk [vmem:[#allocation2 + $0xb8] sm:$0x3] %vm229_vm2, %v7932_v2  ;;  %v6318_v24 = vunpack.c.l.bf16 %v6364_v19  ;;  %v6367_v26 = vld [vmem:[%s8155_s27 + $0x40] sm:$0xff]   ;;  %v6368_v27 = vld [vmem:[%s8155_s27 + $0x48] sm:$0xff]   ;;  %v6319_v28 = vunpack.c.h.bf16 %v6364_v19  ;;  %v6326_v31 = vunpack.c.l.bf16 %v6366_v25  ;;  %v6327_v35 = vunpack.c.h.bf16 %v6366_v25 }
  0x19   : > { %249 = vst.msk [vmem:[#allocation2 + $0xa8] sm:$0xff] %vm226_vm1, %v7932_v2  ;;  %250 = vst.msk [vmem:[#allocation2 + $0xb0] sm:$0xff] %vm226_vm1, %v7932_v2  ;;  %6938 = vmatprep.mubr.msk.bf16.mxu0 %vm226_vm1, %v460_v14  ;;  %v6369_v32 = vld [vmem:[%s8155_s27 + $0x50] sm:$0xff]   ;;  %v6370_v33 = vld [vmem:[%s8155_s27 + $0x58] sm:$0xff]   ;;  %v6330_v36 = vunpack.c.l.bf16 %v6367_v26  ;;  %v6331_v37 = vunpack.c.h.bf16 %v6367_v26  ;;  %v6334_v38 = vunpack.c.l.bf16 %v6368_v27  ;;  %v6335_v41 = vunpack.c.h.bf16 %v6368_v27 }
  0x1a   : > { %252 = vst.msk [vmem:[#allocation2 + $0xc0] sm:$0xff] %vm226_vm1, %v7932_v2  ;;  %253 = vst.msk [vmem:[#allocation2 + $0xc8] sm:$0xff] %vm226_vm1, %v7932_v2  ;;  %v6371_v34 = vld [vmem:[%s8155_s27 + $0x60] sm:$0xff]   ;;  %v6372_v39 = vld [vmem:[%s8155_s27 + $0x68] sm:$0xff]   ;;  %v6338_v42 = vunpack.c.l.bf16 %v6369_v32  ;;  %v6339_v43 = vunpack.c.h.bf16 %v6369_v32  ;;  %v6342_v44 = vunpack.c.l.bf16 %v6370_v33  ;;  %v6343_v45 = vunpack.c.h.bf16 %v6370_v33 }
  0x1b   : > { %254 = vst.msk [vmem:[#allocation2 + $0xd0] sm:$0x3] %vm229_vm2, %v7932_v2  ;;  %257 = vst.msk [vmem:[#allocation2 + $0xe8] sm:$0x3] %vm229_vm2, %v7932_v2  ;;  %v6373_v40 = vld [vmem:[%s8155_s27 + $0x70] sm:$0xff]   ;;  %v6346_v46 = vunpack.c.l.bf16 %v6371_v34  ;;  %v6347_v47 = vunpack.c.h.bf16 %v6371_v34  ;;  %v6350_v48 = vunpack.c.l.bf16 %v6372_v39  ;;  %v6351_v49 = vunpack.c.h.bf16 %v6372_v39  ;;  %v379_v32 = vld [vmem:[#allocation2] sm:$0xff] }
  0x1c   : > { %255 = vst.msk [vmem:[#allocation2 + $0xd8] sm:$0xff] %vm226_vm1, %v7932_v2  ;;  %256 = vst.msk [vmem:[#allocation2 + $0xe0] sm:$0xff] %vm226_vm1, %v7932_v2  ;;  %v6354_v50 = vunpack.c.l.bf16 %v6373_v40  ;;  %v6355_v51 = vunpack.c.h.bf16 %v6373_v40  ;;  %v380_v33 = vld [vmem:[#allocation2 + $0x8] sm:$0xff] }
  0x1d   : > { %258 = vst.msk [vmem:[#allocation2 + $0xf0] sm:$0xff] %vm226_vm1, %v7932_v2  ;;  %259 = vst.msk [vmem:[#allocation2 + $0xf8] sm:$0xff] %vm226_vm1, %v7932_v2 }
  0x1e   : > { %260 = vst.msk [vmem:[#allocation2 + $0x100] sm:$0x3] %vm229_vm2, %v7932_v2  ;;  %263 = vst.msk [vmem:[#allocation2 + $0x118] sm:$0x3] %vm229_vm2, %v7932_v2 }
  0x1f   : > { %261 = vst.msk [vmem:[#allocation2 + $0x108] sm:$0xff] %vm226_vm1, %v7932_v2  ;;  %262 = vst.msk [vmem:[#allocation2 + $0x110] sm:$0xff] %vm226_vm1, %v7932_v2 }
  0x20   : > { %264 = vst.msk [vmem:[#allocation2 + $0x120] sm:$0xff] %vm226_vm1, %v7932_v2  ;;  %265 = vst.msk [vmem:[#allocation2 + $0x128] sm:$0xff] %vm226_vm1, %v7932_v2 }
  0x21   : > { %266 = vst.msk [vmem:[#allocation2 + $0x130] sm:$0x3] %vm229_vm2, %v7932_v2  ;;  %269 = vst.msk [vmem:[#allocation2 + $0x148] sm:$0x3] %vm229_vm2, %v7932_v2 }
  0x22   : > { %267 = vst.msk [vmem:[#allocation2 + $0x138] sm:$0xff] %vm226_vm1, %v7932_v2  ;;  %268 = vst.msk [vmem:[#allocation2 + $0x140] sm:$0xff] %vm226_vm1, %v7932_v2 }
  0x23   : > { %270 = vst.msk [vmem:[#allocation2 + $0x150] sm:$0xff] %vm226_vm1, %v7932_v2  ;;  %271 = vst.msk [vmem:[#allocation2 + $0x158] sm:$0xff] %vm226_vm1, %v7932_v2 }
  0x24   : > { %272 = vst.msk [vmem:[#allocation2 + $0x160] sm:$0x3] %vm229_vm2, %v7932_v2  ;;  %275 = vst.msk [vmem:[#allocation2 + $0x178] sm:$0x3] %vm229_vm2, %v7932_v2 }
  0x25   : > { %273 = vst.msk [vmem:[#allocation2 + $0x168] sm:$0xff] %vm226_vm1, %v7932_v2  ;;  %274 = vst.msk [vmem:[#allocation2 + $0x170] sm:$0xff] %vm226_vm1, %v7932_v2 }
  0x26   : > { %276 = vst.msk [vmem:[#allocation2 + $0x180] sm:$0xff] %vm226_vm1, %v7932_v2  ;;  %277 = vst.msk [vmem:[#allocation2 + $0x188] sm:$0xff] %vm226_vm1, %v7932_v2 }
  0x27   : > { %278 = vst.msk [vmem:[#allocation2 + $0x190] sm:$0x3] %vm229_vm2, %v7932_v2  ;;  %281 = vst.msk [vmem:[#allocation2 + $0x1a8] sm:$0x3] %vm229_vm2, %v7932_v2 }
  0x28   : > { %279 = vst.msk [vmem:[#allocation2 + $0x198] sm:$0xff] %vm226_vm1, %v7932_v2  ;;  %280 = vst.msk [vmem:[#allocation2 + $0x1a0] sm:$0xff] %vm226_vm1, %v7932_v2 }
  0x29   : > { %3033 = vst [vmem:[#allocation3] sm:$0xff] %v7932_v2  ;;  %3035 = vst [vmem:[#allocation3 + $0x10] sm:$0x3] %v7932_v2 }
  0x2a   : > { %3036 = vst [vmem:[#allocation3 + $0x18] sm:$0xff] %v7932_v2  ;;  %3037 = vst [vmem:[#allocation3 + $0x20] sm:$0xff] %v7932_v2 }
  0x2b   : > { %3038 = vst [vmem:[#allocation3 + $0x28] sm:$0x3] %v7932_v2  ;;  %3039 = vst [vmem:[#allocation3 + $0x30] sm:$0xff] %v7932_v2 }
  0x2c   : > { %3040 = vst [vmem:[#allocation3 + $0x38] sm:$0xff] %v7932_v2  ;;  %3041 = vst [vmem:[#allocation3 + $0x40] sm:$0x3] %v7932_v2 }
  0x2d   : > { %3042 = vst [vmem:[#allocation3 + $0x48] sm:$0xff] %v7932_v2  ;;  %3043 = vst [vmem:[#allocation3 + $0x50] sm:$0xff] %v7932_v2 }
  0x2e   : > { %3044 = vst [vmem:[#allocation3 + $0x58] sm:$0x3] %v7932_v2  ;;  %3045 = vst [vmem:[#allocation3 + $0x60] sm:$0xff] %v7932_v2 }
  0x2f   : > { %3046 = vst [vmem:[#allocation3 + $0x68] sm:$0xff] %v7932_v2  ;;  %3047 = vst [vmem:[#allocation3 + $0x70] sm:$0x3] %v7932_v2 }
  0x30   : > { %3048 = vst [vmem:[#allocation3 + $0x78] sm:$0xff] %v7932_v2  ;;  %3049 = vst [vmem:[#allocation3 + $0x80] sm:$0xff] %v7932_v2 }
  0x31   : > { %3050 = vst [vmem:[#allocation3 + $0x88] sm:$0x3] %v7932_v2  ;;  %3051 = vst [vmem:[#allocation3 + $0x90] sm:$0xff] %v7932_v2 }
  0x32   : > { %3052 = vst [vmem:[#allocation3 + $0x98] sm:$0xff] %v7932_v2  ;;  %3053 = vst [vmem:[#allocation3 + $0xa0] sm:$0x3] %v7932_v2 }
  0x33   : > { %3054 = vst [vmem:[#allocation3 + $0xa8] sm:$0xff] %v7932_v2  ;;  %3055 = vst [vmem:[#allocation3 + $0xb0] sm:$0xff] %v7932_v2 }
  0x34   : > { %3056 = vst [vmem:[#allocation3 + $0xb8] sm:$0x3] %v7932_v2  ;;  %3057 = vst [vmem:[#allocation3 + $0xc0] sm:$0xff] %v7932_v2 }
  0x35   : > { %3058 = vst [vmem:[#allocation3 + $0xc8] sm:$0xff] %v7932_v2  ;;  %3059 = vst [vmem:[#allocation3 + $0xd0] sm:$0x3] %v7932_v2 }
  0x36   : > { %3060 = vst [vmem:[#allocation3 + $0xd8] sm:$0xff] %v7932_v2  ;;  %3061 = vst [vmem:[#allocation3 + $0xe0] sm:$0xff] %v7932_v2 }
  0x37   : > { %3062 = vst [vmem:[#allocation3 + $0xe8] sm:$0x3] %v7932_v2  ;;  %3063 = vst [vmem:[#allocation3 + $0xf0] sm:$0xff] %v7932_v2 }
  0x38   : > { %3064 = vst [vmem:[#allocation3 + $0xf8] sm:$0xff] %v7932_v2  ;;  %3065 = vst [vmem:[#allocation3 + $0x100] sm:$0x3] %v7932_v2 }
  0x39   : > { %3066 = vst [vmem:[#allocation3 + $0x108] sm:$0xff] %v7932_v2  ;;  %3067 = vst [vmem:[#allocation3 + $0x110] sm:$0xff] %v7932_v2 }
  0x3a   : > { %3068 = vst [vmem:[#allocation3 + $0x118] sm:$0x3] %v7932_v2  ;;  %3069 = vst [vmem:[#allocation3 + $0x120] sm:$0xff] %v7932_v2 }
  0x3b   : > { %3070 = vst [vmem:[#allocation3 + $0x128] sm:$0xff] %v7932_v2  ;;  %3071 = vst [vmem:[#allocation3 + $0x130] sm:$0x3] %v7932_v2 }
  0x3c   : > { %3072 = vst [vmem:[#allocation3 + $0x138] sm:$0xff] %v7932_v2  ;;  %3073 = vst [vmem:[#allocation3 + $0x140] sm:$0xff] %v7932_v2 }
  0x3d   : > { %3074 = vst [vmem:[#allocation3 + $0x148] sm:$0x3] %v7932_v2  ;;  %3075 = vst [vmem:[#allocation3 + $0x150] sm:$0xff] %v7932_v2 }
  0x3e   : > { %3076 = vst [vmem:[#allocation3 + $0x158] sm:$0xff] %v7932_v2  ;;  %3077 = vst [vmem:[#allocation3 + $0x160] sm:$0x3] %v7932_v2 }
  0x3f   : > { %3078 = vst [vmem:[#allocation3 + $0x168] sm:$0xff] %v7932_v2  ;;  %3079 = vst [vmem:[#allocation3 + $0x170] sm:$0xff] %v7932_v2 }
  0x40   : > { %3080 = vst [vmem:[#allocation3 + $0x178] sm:$0x3] %v7932_v2  ;;  %3081 = vst [vmem:[#allocation3 + $0x180] sm:$0xff] %v7932_v2 }
  0x41   : > { %3082 = vst [vmem:[#allocation3 + $0x188] sm:$0xff] %v7932_v2  ;;  %3083 = vst [vmem:[#allocation3 + $0x190] sm:$0x3] %v7932_v2 }
  0x42   : > { %3086 = vst [vmem:[#allocation3 + $0x1a8] sm:$0x3] %v7932_v2  ;;  %347 = vst.msk [vmem:[#allocation2 + $0x19] sm:$0xff] %vm226_vm1, %v6298_v9 }
  0x43   : > { %348 = vst.msk [vmem:[#allocation2 + $0x21] sm:$0xff] %vm226_vm1, %v6299_v10  ;;  %349 = vst.msk [vmem:[#allocation2 + $0x31] sm:$0xff] %vm226_vm1, %v6302_v11 }
  0x44   : > { %350 = vst.msk [vmem:[#allocation2 + $0x39] sm:$0xff] %vm226_vm1, %v6303_v12  ;;  %351 = vst.msk [vmem:[#allocation2 + $0x49] sm:$0xff] %vm226_vm1, %v6306_v15 }
  0x45   : > { %352 = vst.msk [vmem:[#allocation2 + $0x51] sm:$0xff] %vm226_vm1, %v6307_v16  ;;  %353 = vst.msk [vmem:[#allocation2 + $0x61] sm:$0xff] %vm226_vm1, %v6310_v17 }
  0x46   : > { %354 = vst.msk [vmem:[#allocation2 + $0x69] sm:$0xff] %vm226_vm1, %v6311_v21  ;;  %355 = vst.msk [vmem:[#allocation2 + $0x79] sm:$0xff] %vm226_vm1, %v6314_v22 }
  0x47   : > { %356 = vst.msk [vmem:[#allocation2 + $0x81] sm:$0xff] %vm226_vm1, %v6315_v23  ;;  %357 = vst.msk [vmem:[#allocation2 + $0x91] sm:$0xff] %vm226_vm1, %v6318_v24 }
  0x48   : > { %358 = vst.msk [vmem:[#allocation2 + $0x99] sm:$0xff] %vm226_vm1, %v6319_v28  ;;  %359 = vst.msk [vmem:[#allocation2 + $0xa9] sm:$0xff] %vm226_vm1, %v6322_v29 }
  0x49   : > { %360 = vst.msk [vmem:[#allocation2 + $0xb1] sm:$0xff] %vm226_vm1, %v6323_v30  ;;  %361 = vst.msk [vmem:[#allocation2 + $0xc1] sm:$0xff] %vm226_vm1, %v6326_v31  ;;  %v430_v52 = vld [vmem:[#allocation2 + $0x19] sm:$0xff] }
  0x4a   : > { %362 = vst.msk [vmem:[#allocation2 + $0xc9] sm:$0xff] %vm226_vm1, %v6327_v35  ;;  %363 = vst.msk [vmem:[#allocation2 + $0xd9] sm:$0xff] %vm226_vm1, %v6330_v36  ;;  %v431_v53 = vld [vmem:[#allocation2 + $0x21] sm:$0xff]  ;;  %v432_v54 = vld [vmem:[#allocation2 + $0x31] sm:$0xff] }
  0x4b   : > { %364 = vst.msk [vmem:[#allocation2 + $0xe1] sm:$0xff] %vm226_vm1, %v6331_v37  ;;  %365 = vst.msk [vmem:[#allocation2 + $0xf1] sm:$0xff] %vm226_vm1, %v6334_v38  ;;  %v8203_v55 = vpack.c.bf16 %v431_v53, %v430_v52  ;;  %v433_v57 = vld [vmem:[#allocation2 + $0x39] sm:$0xff]  ;;  %v434_v60 = vld [vmem:[#allocation2 + $0x49] sm:$0xff]  ;;  %v411_v37 = vpack.c.bf16 %v380_v33, %v379_v32 }
  0x4c   : > { %366 = vst.msk [vmem:[#allocation2 + $0xf9] sm:$0xff] %vm226_vm1, %v6335_v41  ;;  %367 = vst.msk [vmem:[#allocation2 + $0x109] sm:$0xff] %vm226_vm1, %v6338_v42  ;;  %v8207_v58 = vpack.c.bf16 %v433_v57, %v432_v54  ;;  %v435_v61 = vld [vmem:[#allocation2 + $0x51] sm:$0xff]  ;;  %v436_v62 = vld [vmem:[#allocation2 + $0x61] sm:$0xff]  ;;  %v1002_v41 = vsel %vm526_vm0, %v8212_v59, 0 }
  0x4d   : > { %368 = vst.msk [vmem:[#allocation2 + $0x111] sm:$0xff] %vm226_vm1, %v6339_v43  ;;  %369 = vst.msk [vmem:[#allocation2 + $0x121] sm:$0xff] %vm226_vm1, %v6342_v44  ;;  %6939 = vmatmul.mubr.msk.bf16.vlgmr.msra.gmra.mrb[0].mxu0 %vm226_vm1, %v8203_v55  ;;  %v437_v63 = vld [vmem:[#allocation2 + $0x69] sm:$0xff]  ;;  %v8220_v0 = vpack.c.bf16 %v435_v61, %v434_v60  ;;  %v438_v2 = vld [vmem:[#allocation2 + $0x79] sm:$0xff] }
  0x4e   : > { %370 = vst.msk [vmem:[#allocation2 + $0x129] sm:$0xff] %vm226_vm1, %v6343_v45  ;;  %371 = vst.msk [vmem:[#allocation2 + $0x139] sm:$0xff] %vm226_vm1, %v6346_v46  ;;  %6971 = vmatpush3.bf16.msra.mxu0 %v740_v56  ;;  %6942 = vmatprep.mubr.msk.bf16.mxu0 %vm226_vm1, %v8207_v58  ;;  %v8222_v1 = vpack.c.bf16 %v437_v63, %v436_v62  ;;  %v439_v3 = vld [vmem:[#allocation2 + $0x81] sm:$0xff]  ;;  %v440_v4 = vld [vmem:[#allocation2 + $0x91] sm:$0xff] }
  0x4f   : > { %372 = vst.msk [vmem:[#allocation2 + $0x141] sm:$0xff] %vm226_vm1, %v6347_v47  ;;  %373 = vst.msk [vmem:[#allocation2 + $0x151] sm:$0xff] %vm226_vm1, %v6350_v48  ;;  %7820 = vmatprep.subr.msk.bf16.mxu0 %vm526_vm0, %v8212_v59  ;;  %v441_v5 = vld [vmem:[#allocation2 + $0x99] sm:$0xff]  ;;  %v8228_v6 = vpack.c.bf16 %v439_v3, %v438_v2  ;;  %v442_v8 = vld [vmem:[#allocation2 + $0xa9] sm:$0xff] }
  0x50   : > { %374 = vst.msk [vmem:[#allocation2 + $0x159] sm:$0xff] %vm226_vm1, %v6351_v49  ;;  %375 = vst.msk [vmem:[#allocation2 + $0x169] sm:$0xff] %vm226_vm1, %v6354_v50  ;;  %v8230_v7 = vpack.c.bf16 %v441_v5, %v440_v4  ;;  %v443_v9 = vld [vmem:[#allocation2 + $0xb1] sm:$0xff]  ;;  %v444_v10 = vld [vmem:[#allocation2 + $0xc1] sm:$0xff] }
  0x51   : > { %376 = vst.msk [vmem:[#allocation2 + $0x171] sm:$0xff] %vm226_vm1, %v6355_v51  ;;  %v445_v11 = vld [vmem:[#allocation2 + $0xc9] sm:$0xff]  ;;  %v8236_v12 = vpack.c.bf16 %v443_v9, %v442_v8  ;;  %v446_v14 = vld [vmem:[#allocation2 + $0xd9] sm:$0xff]  ;;  %v8282_v45 = vld [vmem:[%s10569_s1 + $0x6] sm:$0x3] }
  0x52   : > { %v8238_v13 = vpack.c.bf16 %v445_v11, %v444_v10  ;;  %v447_v15 = vld [vmem:[#allocation2 + $0xe1] sm:$0xff]  ;;  %v448_v16 = vld [vmem:[#allocation2 + $0xf1] sm:$0xff] }
  0x53   : > { %v449_v17 = vld [vmem:[#allocation2 + $0xf9] sm:$0xff]  ;;  %v8244_v18 = vpack.c.bf16 %v447_v15, %v446_v14  ;;  %v450_v20 = vld [vmem:[#allocation2 + $0x109] sm:$0xff] }
  0x54   : > { %v8246_v19 = vpack.c.bf16 %v449_v17, %v448_v16  ;;  %v451_v21 = vld [vmem:[#allocation2 + $0x111] sm:$0xff]  ;;  %v452_v22 = vld [vmem:[#allocation2 + $0x121] sm:$0xff] }
  0x55   : > { %6943 = vmatmul.mubr.msk.bf16.gmra.mrb[4].mxu0 %vm226_vm1, %v8220_v0  ;;  %v453_v23 = vld [vmem:[#allocation2 + $0x129] sm:$0xff]  ;;  %v8252_v24 = vpack.c.bf16 %v451_v21, %v450_v20  ;;  %v454_v26 = vld [vmem:[#allocation2 + $0x139] sm:$0xff] }
  0x56   : > { %6946 = vmatprep.mubr.msk.bf16.mxu0 %vm226_vm1, %v8222_v1  ;;  %v8254_v25 = vpack.c.bf16 %v453_v23, %v452_v22  ;;  %v455_v27 = vld [vmem:[#allocation2 + $0x141] sm:$0xff]  ;;  %v456_v28 = vld [vmem:[#allocation2 + $0x151] sm:$0xff] }
  0x57   : > { %v457_v29 = vld [vmem:[#allocation2 + $0x159] sm:$0xff]  ;;  %v8260_v30 = vpack.c.bf16 %v455_v27, %v454_v26  ;;  %v458_v34 = vld [vmem:[#allocation2 + $0x169] sm:$0xff] }
  0x58   : > { %v8262_v31 = vpack.c.bf16 %v457_v29, %v456_v28  ;;  %v459_v35 = vld [vmem:[#allocation2 + $0x171] sm:$0xff]  ;;  %v382_v39 = vld [vmem:[#allocation2 + $0x20] sm:$0xff]  ;;  %v385_v46 = vld [vmem:[#allocation2 + $0x48] sm:$0xff] }
  0x59   : > { %v8268_v36 = vpack.c.bf16 %v459_v35, %v458_v34  ;;  %v381_v38 = vld [vmem:[#allocation2 + $0x18] sm:$0xff]  ;;  %v383_v40 = vld [vmem:[#allocation2 + $0x30] sm:$0xff]  ;;  %v387_v48 = vld [vmem:[#allocation2 + $0x60] sm:$0xff] }
  0x5a   : > { %v384_v42 = vld [vmem:[#allocation2 + $0x38] sm:$0xff]  ;;  %v8275_v43 = vpack.c.bf16 %v382_v39, %v381_v38  ;;  %v386_v47 = vld [vmem:[#allocation2 + $0x50] sm:$0xff]  ;;  %v388_v49 = vld [vmem:[#allocation2 + $0x68] sm:$0xff] }
  0x5b   : > { %v8277_v44 = vpack.c.bf16 %v384_v42, %v383_v40  ;;  %v8290_v50 = vpack.c.bf16 %v386_v47, %v385_v46  ;;  %v8292_v51 = vpack.c.bf16 %v388_v49, %v387_v48  ;;  %v389_v52 = vld [vmem:[#allocation2 + $0x78] sm:$0xff]  ;;  %v390_v53 = vld [vmem:[#allocation2 + $0x80] sm:$0xff]  ;;  %v391_v54 = vld [vmem:[#allocation2 + $0x90] sm:$0xff] }
  0x5c   : > { %v392_v56 = vld [vmem:[#allocation2 + $0x98] sm:$0xff]  ;;  %v8298_v57 = vpack.c.bf16 %v390_v53, %v389_v52  ;;  %v393_v60 = vld [vmem:[#allocation2 + $0xa8] sm:$0xff]  ;;  %v394_v61 = vld [vmem:[#allocation2 + $0xb0] sm:$0xff]  ;;  %v1296_v53 = vsel %vm526_vm0, %v8282_v45, 0 }
  0x5d   : > { %6947 = vmatmul.mubr.msk.bf16.gmra.mrb[8].mxu0 %vm226_vm1, %v8228_v6  ;;  %v8300_v59 = vpack.c.bf16 %v392_v56, %v391_v54  ;;  %v395_v62 = vld [vmem:[#allocation2 + $0xc0] sm:$0xff]  ;;  %v396_v63 = vld [vmem:[#allocation2 + $0xc8] sm:$0xff]  ;;  %v8306_v2 = vpack.c.bf16 %v394_v61, %v393_v60  ;;  %v397_v4 = vld [vmem:[#allocation2 + $0xd8] sm:$0xff] }
  0x5e   : > { %6950 = vmatprep.mubr.msk.bf16.mxu0 %vm226_vm1, %v8230_v7  ;;  %v8308_v3 = vpack.c.bf16 %v396_v63, %v395_v62  ;;  %v398_v5 = vld [vmem:[#allocation2 + $0xe0] sm:$0xff]  ;;  %v399_v8 = vld [vmem:[#allocation2 + $0xf0] sm:$0xff]  ;;  %v400_v9 = vld [vmem:[#allocation2 + $0xf8] sm:$0xff] }
  0x5f   : > { %v8314_v10 = vpack.c.bf16 %v398_v5, %v397_v4  ;;  %v8316_v11 = vpack.c.bf16 %v400_v9, %v399_v8  ;;  %v401_v14 = vld [vmem:[#allocation2 + $0x108] sm:$0xff]  ;;  %v402_v15 = vld [vmem:[#allocation2 + $0x110] sm:$0xff]  ;;  %v403_v16 = vld [vmem:[#allocation2 + $0x120] sm:$0xff] }
  0x60   : > { %v404_v17 = vld [vmem:[#allocation2 + $0x128] sm:$0xff]  ;;  %v8322_v20 = vpack.c.bf16 %v402_v15, %v401_v14  ;;  %v405_v22 = vld [vmem:[#allocation2 + $0x138] sm:$0xff]  ;;  %v406_v23 = vld [vmem:[#allocation2 + $0x140] sm:$0xff] }
  0x61   : > { %v8324_v21 = vpack.c.bf16 %v404_v17, %v403_v16  ;;  %v407_v26 = vld [vmem:[#allocation2 + $0x150] sm:$0xff]  ;;  %v408_v27 = vld [vmem:[#allocation2 + $0x158] sm:$0xff]  ;;  %v8331_v29 = vpack.c.bf16 %v406_v23, %v405_v22  ;;  %v409_v35 = vld [vmem:[#allocation2 + $0x168] sm:$0xff] }
  0x62   : > { %v6374_v28 = vld [vmem:[%s8155_s27 + $0x78] sm:$0xff]   ;;  %v8333_v34 = vpack.c.bf16 %v408_v27, %v407_v26  ;;  %v903_v38 = vld [vmem:[#allocation2 + $0x2] sm:$0xff]  ;;  %v904_v39 = vld [vmem:[#allocation2 + $0xa] sm:$0xff] }
  0x63   : > { %v6358_v32 = vunpack.c.l.bf16 %v6374_v28  ;;  %v6359_v33 = vunpack.c.h.bf16 %v6374_v28  ;;  %v905_v42 = vld [vmem:[#allocation2 + $0x1a] sm:$0xff]  ;;  %v906_v46 = vld [vmem:[#allocation2 + $0x22] sm:$0xff]  ;;  %v907_v47 = vld [vmem:[#allocation2 + $0x32] sm:$0xff] }
  0x64   : > { %v908_v48 = vld [vmem:[#allocation2 + $0x3a] sm:$0xff]  ;;  %v8346_v49 = vpack.c.bf16 %v906_v46, %v905_v42  ;;  %v6037_v54 = vld [vmem:[%s10569_s1 + $0x8] sm:$0x3]  ;;  %v909_v56 = vld [vmem:[#allocation2 + $0x4a] sm:$0xff] }
  0x65   : > { %6951 = vmatmul.mubr.msk.bf16.gmra.mrb[12].mxu0 %vm226_vm1, %v8236_v12  ;;  %377 = vst.msk [vmem:[#allocation2 + $0x181] sm:$0xff] %vm226_vm1, %v6358_v32  ;;  %378 = vst.msk [vmem:[#allocation2 + $0x189] sm:$0xff] %vm226_vm1, %v6359_v33  ;;  %v8348_v52 = vpack.c.bf16 %v908_v48, %v907_v47  ;;  %v910_v60 = vld [vmem:[#allocation2 + $0x52] sm:$0xff]  ;;  %v911_v61 = vld [vmem:[#allocation2 + $0x62] sm:$0xff] }
  0x66   : > { %6954 = vmatprep.mubr.msk.bf16.mxu0 %vm226_vm1, %v8238_v13  ;;  %v912_v62 = vld [vmem:[#allocation2 + $0x6a] sm:$0xff]  ;;  %v8360_v63 = vpack.c.bf16 %v910_v60, %v909_v56  ;;  %v913_v4 = vld [vmem:[#allocation2 + $0x7a] sm:$0xff]  ;;  %v914_v5 = vld [vmem:[#allocation2 + $0x82] sm:$0xff] }
  0x67   : > { %v915_v8 = vld [vmem:[#allocation2 + $0x92] sm:$0xff]  ;;  %v916_v9 = vld [vmem:[#allocation2 + $0x9a] sm:$0xff]  ;;  %v8368_v14 = vpack.c.bf16 %v914_v5, %v913_v4  ;;  %v917_v16 = vld [vmem:[#allocation2 + $0xaa] sm:$0xff] }
  0x68   : > { %v8370_v15 = vpack.c.bf16 %v916_v9, %v915_v8  ;;  %v918_v17 = vld [vmem:[#allocation2 + $0xb2] sm:$0xff]  ;;  %v919_v22 = vld [vmem:[#allocation2 + $0xc2] sm:$0xff]  ;;  %v920_v23 = vld [vmem:[#allocation2 + $0xca] sm:$0xff] }
  0x69   : > { %v8376_v26 = vpack.c.bf16 %v918_v17, %v917_v16  ;;  %v8378_v27 = vpack.c.bf16 %v920_v23, %v919_v22  ;;  %v921_v28 = vld [vmem:[#allocation2 + $0xda] sm:$0xff]  ;;  %v922_v32 = vld [vmem:[#allocation2 + $0xe2] sm:$0xff]  ;;  %v923_v33 = vld [vmem:[#allocation2 + $0xf2] sm:$0xff]  ;;  %v1590_v16 = vsel %vm526_vm0, %v6037_v54, 0 }
  0x6a   : > { %v927_v42 = vld [vmem:[#allocation2 + $0x122] sm:$0xff]  ;;  %v928_v46 = vld [vmem:[#allocation2 + $0x12a] sm:$0xff]  ;;  %v931_v60 = vld [vmem:[#allocation2 + $0x152] sm:$0xff] }
  0x6b   : > { %v8394_v48 = vpack.c.bf16 %v928_v46, %v927_v42  ;;  %v930_v56 = vld [vmem:[#allocation2 + $0x142] sm:$0xff]  ;;  %v933_v5 = vld [vmem:[#allocation2 + $0x16a] sm:$0xff]  ;;  %v934_v8 = vld [vmem:[#allocation2 + $0x172] sm:$0xff] }
  0x6c   : > { %v8408_v9 = vpack.c.bf16 %v934_v8, %v933_v5  ;;  %v6054_v17 = vld [vmem:[%s10569_s1 + $0xa] sm:$0x3]  ;;  %v7841_v46 = vld [vmem:[%s10571_s3 + $0xd0] sm:$0xff]  }
  0x6d   : > { %6955 = vmatmul.mubr.msk.bf16.gmra.mrb[16].mxu0 %vm226_vm1, %v8244_v18  ;;  %v1884_v23 = vsel %vm526_vm0, %v6054_v17, 0 }
  0x6e   : > { %6958 = vmatprep.mubr.msk.bf16.mxu0 %vm226_vm1, %v8246_v19 }
  0x75   : > { %6959 = vmatmul.mubr.msk.bf16.gmra.mrb[20].mxu0 %vm226_vm1, %v8252_v24 }
  0x76   : > { %6962 = vmatprep.mubr.msk.bf16.mxu0 %vm226_vm1, %v8254_v25 }
  0x7d   : > { %6963 = vmatmul.mubr.msk.bf16.gmra.mrb[24].mxu0 %vm226_vm1, %v8260_v30 }
  0x7e   : > { %6966 = vmatprep.mubr.msk.bf16.mxu0 %vm226_vm1, %v8262_v31 }
  0x85   : > { %6967 = vmatmul.mubr.msk.bf16.gmra.mrb[28].mxu0 %vm226_vm1, %v8268_v36 }
  0x86   : > { %6972 = vmatprep.mubr.msk.bf16.mxu0 %vm226_vm1, %v411_v37  ;;  %v410_v37 = vld [vmem:[#allocation2 + $0x170] sm:$0xff] }
  0x87   : > { %v8341_v40 = vpack.c.bf16 %v410_v37, %v409_v35  ;;  %v924_v35 = vld [vmem:[#allocation2 + $0xfa] sm:$0xff]  ;;  %v8384_v37 = vpack.c.bf16 %v922_v32, %v921_v28  ;;  %v6071_v28 = vld [vmem:[%s10569_s1 + $0xc] sm:$0x3] }
  0x8d   : > { %6973 = vmatmul.mubr.msk.bf16.vlgmr.msra.gmra.mrb[0].mxu0 %vm226_vm1, %v8275_v43 }
  0x8e   : > { %7005 = vmatpush3.bf16.msra.mxu0 %v1002_v41  ;;  %6976 = vmatprep.mubr.msk.bf16.mxu0 %vm226_vm1, %v8277_v44  ;;  %v935_v41 = vpack.c.bf16 %v904_v39, %v903_v38  ;;  %v8386_v38 = vpack.c.bf16 %v924_v35, %v923_v33  ;;  %v925_v39 = vld [vmem:[#allocation2 + $0x10a] sm:$0xff] }
  0x8f   : > { %7821 = vmatprep.subr.msk.bf16.mxu0 %vm526_vm0, %v8282_v45  ;;  %v8362_v45 = vpack.c.bf16 %v912_v62, %v911_v61  ;;  %v932_v61 = vld [vmem:[#allocation2 + $0x15a] sm:$0xff]  ;;  %v6105_v33 = vld [vmem:[%s10569_s1 + $0x10] sm:$0x3] }
  0x90   : > { %v8402_v4 = vpack.c.bf16 %v932_v61, %v931_v60  ;;  %v2767_v42 = vsel %vm526_vm0, %v6105_v33, 0  ;;  %v2382_v60 = vld [vmem:[#allocation2 + $0x91] sm:$0xff]  ;;  %v2383_v61 = vld [vmem:[#allocation2 + $0x99] sm:$0xff] }
  0x91   : > { %v2410_v8 = vpack.c.bf16 %v2383_v61, %v2382_v60 }
  0x95   : > { %6977 = vmatmul.mubr.msk.bf16.gmra.mrb[4].mxu0 %vm226_vm1, %v8290_v50 }
  0x96   : > { %6980 = vmatprep.mubr.msk.bf16.mxu0 %vm226_vm1, %v8292_v51 }
  0x9d   : > { %6981 = vmatmul.mubr.msk.bf16.gmra.mrb[8].mxu0 %vm226_vm1, %v8298_v57 }
  0x9e   : > { %6984 = vmatprep.mubr.msk.bf16.mxu0 %vm226_vm1, %v8300_v59 }
  0xa5   : > { %6985 = vmatmul.mubr.msk.bf16.gmra.mrb[12].mxu0 %vm226_vm1, %v8306_v2 }
  0xa6   : > { %6988 = vmatprep.mubr.msk.bf16.mxu0 %vm226_vm1, %v8308_v3 }
  0xad   : > { %6989 = vmatmul.mubr.msk.bf16.gmra.mrb[16].mxu0 %vm226_vm1, %v8314_v10 }
  0xae   : > { %6992 = vmatprep.mubr.msk.bf16.mxu0 %vm226_vm1, %v8316_v11 }
  0xb5   : > { %6993 = vmatmul.mubr.msk.bf16.gmra.mrb[20].mxu0 %vm226_vm1, %v8322_v20 }
  0xb6   : > { %6996 = vmatprep.mubr.msk.bf16.mxu0 %vm226_vm1, %v8324_v21 }
  0xbd   : > { %6997 = vmatmul.mubr.msk.bf16.gmra.mrb[24].mxu0 %vm226_vm1, %v8331_v29 }
  0xbe   : > { %7000 = vmatprep.mubr.msk.bf16.mxu0 %vm226_vm1, %v8333_v34 }
  0xc5   : > { %7001 = vmatmul.mubr.msk.bf16.gmra.mrb[28].mxu0 %vm226_vm1, %v8341_v40 }
  0xc6   : > { %7006 = vmatprep.mubr.msk.bf16.mxu0 %vm226_vm1, %v935_v41  ;;  %v926_v41 = vld [vmem:[#allocation2 + $0x112] sm:$0xff] }
  0xc7   : > { %v8392_v47 = vpack.c.bf16 %v926_v41, %v925_v39  ;;  %v7840_v39 = vld [vmem:[%s10571_s3 + $0x110] sm:$0xff]  }
  0xcd   : > { %7007 = vmatmul.mubr.msk.bf16.vlgmr.msra.gmra.mrb[0].mxu0 %vm226_vm1, %v8346_v49 }
  0xce   : > { %7039 = vmatpush3.bf16.msra.mxu0 %v1296_v53  ;;  %7010 = vmatprep.mubr.msk.bf16.mxu0 %vm226_vm1, %v8348_v52  ;;  %v929_v53 = vld [vmem:[#allocation2 + $0x13a] sm:$0xff] }
  0xcf   : > { %7822 = vmatprep.subr.msk.bf16.mxu0 %vm526_vm0, %v6037_v54  ;;  %v8400_v62 = vpack.c.bf16 %v930_v56, %v929_v53  ;;  %v1228_v54 = vld [vmem:[#allocation2 + $0x188] sm:$0xff]  ;;  %v2380_v53 = vld [vmem:[#allocation2 + $0x79] sm:$0xff] }
  0xd0   : > { %v2381_v56 = vld [vmem:[#allocation2 + $0x81] sm:$0xff] }
  0xd1   : > { %v2409_v5 = vpack.c.bf16 %v2381_v56, %v2380_v53 }
  0xd5   : > { %7011 = vmatmul.mubr.msk.bf16.gmra.mrb[4].mxu0 %vm226_vm1, %v8360_v63 }
  0xd6   : > { %7014 = vmatprep.mubr.msk.bf16.mxu0 %vm226_vm1, %v8362_v45 }
  0xdd   : > { %7015 = vmatmul.mubr.msk.bf16.gmra.mrb[8].mxu0 %vm226_vm1, %v8368_v14 }
  0xde   : > { %7018 = vmatprep.mubr.msk.bf16.mxu0 %vm226_vm1, %v8370_v15 }
  0xe5   : > { %7019 = vmatmul.mubr.msk.bf16.gmra.mrb[12].mxu0 %vm226_vm1, %v8376_v26 }
  0xe6   : > { %7022 = vmatprep.mubr.msk.bf16.mxu0 %vm226_vm1, %v8378_v27 }
  0xed   : > { %7023 = vmatmul.mubr.msk.bf16.gmra.mrb[16].mxu0 %vm226_vm1, %v8384_v37 }
  0xee   : > { %7026 = vmatprep.mubr.msk.bf16.mxu0 %vm226_vm1, %v8386_v38 }
  0xf5   : > { %7027 = vmatmul.mubr.msk.bf16.gmra.mrb[20].mxu0 %vm226_vm1, %v8392_v47 }
  0xf6   : > { %7030 = vmatprep.mubr.msk.bf16.mxu0 %vm226_vm1, %v8394_v48 }
  0xfd   : > { %7031 = vmatmul.mubr.msk.bf16.gmra.mrb[24].mxu0 %vm226_vm1, %v8400_v62 }
  0xfe   : > { %7034 = vmatprep.mubr.msk.bf16.mxu0 %vm226_vm1, %v8402_v4 }
 0x105   : > { %7035 = vmatmul.mubr.msk.bf16.gmra.mrb[28].mxu0 %vm226_vm1, %v8408_v9 }
 0x106   : > { %7040 = vmatprep.mubr.msk.bf16.mxu0 %vm226_vm1, %v8275_v43  ;;  %v1227_v43 = vld [vmem:[#allocation2 + $0x180] sm:$0xff] }
 0x107   : > { %v8447_v22 = vpack.c.bf16 %v1228_v54, %v1227_v43 }
 0x10d   : > { %7041 = vmatmul.mubr.msk.bf16.vlgmr.msra.gmra.mrb[0].mxu0 %vm226_vm1, %v8277_v44 }
 0x10e   : > { %7073 = vmatpush3.bf16.msra.mxu0 %v1590_v16  ;;  %7044 = vmatprep.mubr.msk.bf16.mxu0 %vm226_vm1, %v8290_v50  ;;  %v2384_v16 = vld [vmem:[#allocation2 + $0xa9] sm:$0xff] }
 0x10f   : > { %7823 = vmatprep.subr.msk.bf16.mxu0 %vm526_vm0, %v6054_v17  ;;  %v2385_v17 = vld [vmem:[#allocation2 + $0xb1] sm:$0xff] }
 0x110   : > { %v2411_v43 = vpack.c.bf16 %v2385_v17, %v2384_v16 }
 0x115   : > { %7045 = vmatmul.mubr.msk.bf16.gmra.mrb[4].mxu0 %vm226_vm1, %v8292_v51 }
 0x116   : > { %7048 = vmatprep.mubr.msk.bf16.mxu0 %vm226_vm1, %v8298_v57 }
 0x11d   : > { %7049 = vmatmul.mubr.msk.bf16.gmra.mrb[8].mxu0 %vm226_vm1, %v8300_v59 }
 0x11e   : > { %7052 = vmatprep.mubr.msk.bf16.mxu0 %vm226_vm1, %v8306_v2 }
 0x125   : > { %7053 = vmatmul.mubr.msk.bf16.gmra.mrb[12].mxu0 %vm226_vm1, %v8308_v3 }
 0x126   : > { %7056 = vmatprep.mubr.msk.bf16.mxu0 %vm226_vm1, %v8314_v10 }
 0x12d   : > { %7057 = vmatmul.mubr.msk.bf16.gmra.mrb[16].mxu0 %vm226_vm1, %v8316_v11 }
 0x12e   : > { %7060 = vmatprep.mubr.msk.bf16.mxu0 %vm226_vm1, %v8322_v20 }
 0x135   : > { %7061 = vmatmul.mubr.msk.bf16.gmra.mrb[20].mxu0 %vm226_vm1, %v8324_v21 }
 0x136   : > { %7064 = vmatprep.mubr.msk.bf16.mxu0 %vm226_vm1, %v8331_v29 }
 0x13d   : > { %7065 = vmatmul.mubr.msk.bf16.gmra.mrb[24].mxu0 %vm226_vm1, %v8333_v34 }
 0x13e   : > { %7068 = vmatprep.mubr.msk.bf16.mxu0 %vm226_vm1, %v8341_v40 }
 0x145   : > { %7069 = vmatmul.mubr.msk.bf16.gmra.mrb[28].mxu0 %vm226_vm1, %v8447_v22 }
 0x146   : > { %7074 = vmatprep.mubr.msk.bf16.mxu0 %vm226_vm1, %v8203_v55  ;;  %v1521_v55 = vld [vmem:[#allocation2 + $0x181] sm:$0xff] }
 0x14d   : > { %7075 = vmatmul.mubr.msk.bf16.vlgmr.msra.gmra.mrb[0].mxu0 %vm226_vm1, %v8207_v58  ;;  %v1522_v58 = vld [vmem:[#allocation2 + $0x189] sm:$0xff] }
 0x14e   : > { %7107 = vmatpush3.bf16.msra.mxu0 %v1884_v23  ;;  %7078 = vmatprep.mubr.msk.bf16.mxu0 %vm226_vm1, %v8220_v0  ;;  %v8486_v0 = vpack.c.bf16 %v1522_v58, %v1521_v55 }
 0x14f   : > { %7824 = vmatprep.subr.msk.bf16.mxu0 %vm526_vm0, %v6071_v28 }
 0x155   : > { %7079 = vmatmul.mubr.msk.bf16.gmra.mrb[4].mxu0 %vm226_vm1, %v8222_v1  ;;  %v2179_v1 = vsel %vm526_vm0, %v6071_v28, 0 }
 0x156   : > { %7082 = vmatprep.mubr.msk.bf16.mxu0 %vm226_vm1, %v8228_v6  ;;  %v6088_v6 = vld [vmem:[%s10569_s1 + $0xe] sm:$0x3] }
 0x157   : > { %v2473_v32 = vsel %vm526_vm0, %v6088_v6, 0 }
 0x15d   : > { %7083 = vmatmul.mubr.msk.bf16.gmra.mrb[8].mxu0 %vm226_vm1, %v8230_v7  ;;  %v1815_v7 = vld [vmem:[#allocation2 + $0x182] sm:$0xff] }
 0x15e   : > { %7086 = vmatprep.mubr.msk.bf16.mxu0 %vm226_vm1, %v8236_v12  ;;  %v1816_v12 = vld [vmem:[#allocation2 + $0x18a] sm:$0xff] }
 0x165   : > { %7087 = vmatmul.mubr.msk.bf16.gmra.mrb[12].mxu0 %vm226_vm1, %v8238_v13 }
 0x166   : > { %7090 = vmatprep.mubr.msk.bf16.mxu0 %vm226_vm1, %v8244_v18 }
 0x16d   : > { %7091 = vmatmul.mubr.msk.bf16.gmra.mrb[16].mxu0 %vm226_vm1, %v8246_v19 }
 0x16e   : > { %7094 = vmatprep.mubr.msk.bf16.mxu0 %vm226_vm1, %v8252_v24 }
 0x175   : > { %7095 = vmatmul.mubr.msk.bf16.gmra.mrb[20].mxu0 %vm226_vm1, %v8254_v25 }
 0x176   : > { %7098 = vmatprep.mubr.msk.bf16.mxu0 %vm226_vm1, %v8260_v30 }
 0x17d   : > { %7099 = vmatmul.mubr.msk.bf16.gmra.mrb[24].mxu0 %vm226_vm1, %v8262_v31 }
 0x17e   : > { %7102 = vmatprep.mubr.msk.bf16.mxu0 %vm226_vm1, %v8268_v36 }
 0x185   : > { %7103 = vmatmul.mubr.msk.bf16.gmra.mrb[28].mxu0 %vm226_vm1, %v8486_v0 }
 0x186   : > { %7108 = vmatprep.mubr.msk.bf16.mxu0 %vm226_vm1, %v8346_v49  ;;  %v8525_v49 = vpack.c.bf16 %v1816_v12, %v1815_v7 }
 0x18d   : > { %7109 = vmatmul.mubr.msk.bf16.vlgmr.msra.gmra.mrb[0].mxu0 %vm226_vm1, %v8348_v52 }
 0x18e   : > { %7141 = vmatpush3.bf16.msra.mxu0 %v2179_v1  ;;  %7112 = vmatprep.mubr.msk.bf16.mxu0 %vm226_vm1, %v8360_v63 }
 0x18f   : > { %7825 = vmatprep.subr.msk.bf16.mxu0 %vm526_vm0, %v6088_v6 }
 0x195   : > { %7113 = vmatmul.mubr.msk.bf16.gmra.mrb[4].mxu0 %vm226_vm1, %v8362_v45 }
 0x196   : > { %7116 = vmatprep.mubr.msk.bf16.mxu0 %vm226_vm1, %v8368_v14 }
 0x19d   : > { %7117 = vmatmul.mubr.msk.bf16.gmra.mrb[8].mxu0 %vm226_vm1, %v8370_v15 }
 0x19e   : > { %7120 = vmatprep.mubr.msk.bf16.mxu0 %vm226_vm1, %v8376_v26 }
 0x1a5   : > { %7121 = vmatmul.mubr.msk.bf16.gmra.mrb[12].mxu0 %vm226_vm1, %v8378_v27 }
 0x1a6   : > { %7124 = vmatprep.mubr.msk.bf16.mxu0 %vm226_vm1, %v8384_v37 }
 0x1ad   : > { %7125 = vmatmul.mubr.msk.bf16.gmra.mrb[16].mxu0 %vm226_vm1, %v8386_v38 }
 0x1ae   : > { %7128 = vmatprep.mubr.msk.bf16.mxu0 %vm226_vm1, %v8392_v47 }
 0x1b5   : > { %7129 = vmatmul.mubr.msk.bf16.gmra.mrb[20].mxu0 %vm226_vm1, %v8394_v48 }
 0x1b6   : > { %7132 = vmatprep.mubr.msk.bf16.mxu0 %vm226_vm1, %v8400_v62 }
 0x1bd   : > { %7133 = vmatmul.mubr.msk.bf16.gmra.mrb[24].mxu0 %vm226_vm1, %v8402_v4 }
 0x1be   : > { %7136 = vmatprep.mubr.msk.bf16.mxu0 %vm226_vm1, %v8408_v9 }
 0x1c5   : > { %7137 = vmatmul.mubr.msk.bf16.gmra.mrb[28].mxu0 %vm226_vm1, %v8525_v49 }
 0x1c6   : > { %7142 = vmatprep.mubr.msk.bf16.mxu0 %vm226_vm1, %v8277_v44  ;;  %v2110_v44 = vld [vmem:[#allocation2 + $0x198] sm:$0xff] }
 0x1cd   : > { %7143 = vmatmul.mubr.msk.bf16.vlgmr.msra.gmra.mrb[0].mxu0 %vm226_vm1, %v8290_v50  ;;  %v2111_v50 = vld [vmem:[#allocation2 + $0x1a0] sm:$0xff] }
 0x1ce   : > { %7175 = vmatpush3.bf16.msra.mxu0 %v2473_v32  ;;  %7146 = vmatprep.mubr.msk.bf16.mxu0 %vm226_vm1, %v8292_v51  ;;  %v2374_v51 = vld [vmem:[#allocation2 + $0x31] sm:$0xff] }
 0x1cf   : > { %7826 = vmatprep.subr.msk.bf16.mxu0 %vm526_vm0, %v6105_v33 }
 0x1d5   : > { %7147 = vmatmul.mubr.msk.bf16.gmra.mrb[4].mxu0 %vm226_vm1, %v8298_v57  ;;  %v2375_v57 = vld [vmem:[#allocation2 + $0x39] sm:$0xff] }
 0x1d6   : > { %7150 = vmatprep.mubr.msk.bf16.mxu0 %vm226_vm1, %v8300_v59  ;;  %v2127_v59 = vpack.c.bf16 %v2111_v50, %v2110_v44 }
 0x1dd   : > { %7151 = vmatmul.mubr.msk.bf16.gmra.mrb[8].mxu0 %vm226_vm1, %v8306_v2  ;;  %v2406_v2 = vpack.c.bf16 %v2375_v57, %v2374_v51 }
 0x1de   : > { %7154 = vmatprep.mubr.msk.bf16.mxu0 %vm226_vm1, %v8308_v3  ;;  %v7836_v3 = vld [vmem:[%s10571_s3 + $0x100] sm:$0xff]  }
 0x1df   : > { %7386 = vmatprep.subr.bf16.mxu1 %v7836_v3 }
 0x1e5   : > { %7155 = vmatmul.mubr.msk.bf16.gmra.mrb[12].mxu0 %vm226_vm1, %v8314_v10  ;;  %v7837_v10 = vld [vmem:[%s10571_s3 + $0xc0] sm:$0xff]  }
 0x1e6   : > { %7158 = vmatprep.mubr.msk.bf16.mxu0 %vm226_vm1, %v8316_v11  ;;  %v7838_v11 = vld [vmem:[%s10571_s3 + $0x108] sm:$0xff]   ;;  %7394 = vmatpush3.bf16.msra.mxu1 %v7837_v10 }
 0x1e7   : > { %7387 = vmatprep.subr.bf16.mxu1 %v7838_v11 }
 0x1ed   : > { %7159 = vmatmul.mubr.msk.bf16.gmra.mrb[16].mxu0 %vm226_vm1, %v8322_v20  ;;  %v2376_v20 = vld [vmem:[#allocation2 + $0x49] sm:$0xff] }
 0x1ee   : > { %7162 = vmatprep.mubr.msk.bf16.mxu0 %vm226_vm1, %v8324_v21  ;;  %v2377_v21 = vld [vmem:[#allocation2 + $0x51] sm:$0xff] }
 0x1ef   : > { %v2407_v35 = vpack.c.bf16 %v2377_v21, %v2376_v20 }
 0x1f5   : > { %7163 = vmatmul.mubr.msk.bf16.gmra.mrb[20].mxu0 %vm226_vm1, %v8331_v29  ;;  %v2378_v29 = vld [vmem:[#allocation2 + $0x61] sm:$0xff] }
 0x1f6   : > { %7166 = vmatprep.mubr.msk.bf16.mxu0 %vm226_vm1, %v8333_v34  ;;  %v2379_v34 = vld [vmem:[#allocation2 + $0x69] sm:$0xff] }
 0x1f7   : > { %v2408_v41 = vpack.c.bf16 %v2379_v34, %v2378_v29 }
 0x1fd   : > { %7167 = vmatmul.mubr.msk.bf16.gmra.mrb[24].mxu0 %vm226_vm1, %v8341_v40  ;;  %v7839_v40 = vld [vmem:[%s10571_s3 + $0xc8] sm:$0xff]  }
 0x1fe   : > { %7170 = vmatprep.mubr.msk.bf16.mxu0 %vm226_vm1, %v8447_v22  ;;  %7395 = vmatpush3.bf16.msra.mxu1 %v7839_v40 }
 0x1ff   : > { %7388 = vmatprep.subr.bf16.mxu1 %v7840_v39 }
 0x202   : > { %7396 = vmatpush3.bf16.msra.mxu1 %v7841_v46 }
 0x205   : > { %7171 = vmatmul.mubr.msk.bf16.gmra.mrb[28].mxu0 %vm226_vm1, %v2127_v59 }
 0x206   : > { %7176 = vmatprep.mubr.msk.bf16.mxu0 %vm226_vm1, %v2406_v2 }
 0x20d   : > { %7177 = vmatmul.mubr.msk.bf16.vlgmr.msra.gmra.mrb[0].mxu0 %vm226_vm1, %v2407_v35 }
 0x20e   : > { %7209 = vmatpush3.bf16.msra.mxu0 %v2767_v42  ;;  %7180 = vmatprep.mubr.msk.bf16.mxu0 %vm226_vm1, %v2408_v41 }
 0x20f   : > { %6528 = vmatprep.subr.bf16.mxu0 %v7836_v3 }
 0x215   : > { %7181 = vmatmul.mubr.msk.bf16.gmra.mrb[4].mxu0 %vm226_vm1, %v2409_v5 }
 0x216   : > { %7184 = vmatprep.mubr.msk.bf16.mxu0 %vm226_vm1, %v2410_v8 }
 0x21d   : > { %7185 = vmatmul.mubr.msk.bf16.gmra.mrb[8].mxu0 %vm226_vm1, %v2411_v43 }
 0x21e   : > { %7188 = vmatprep.mubr.msk.bf16.mxu0 %vm226_vm1, %v8238_v13  ;;  %v2404_v13 = vld [vmem:[#allocation2 + $0x199] sm:$0xff] }
 0x225   : > { %7189 = vmatmul.mubr.msk.bf16.gmra.mrb[12].mxu0 %vm226_vm1, %v8244_v18  ;;  %v2405_v18 = vld [vmem:[#allocation2 + $0x1a1] sm:$0xff] }
 0x226   : > { %7192 = vmatprep.mubr.msk.bf16.mxu0 %vm226_vm1, %v8246_v19  ;;  %v2421_v19 = vpack.c.bf16 %v2405_v18, %v2404_v13 }
 0x22d   : > { %7193 = vmatmul.mubr.msk.bf16.gmra.mrb[16].mxu0 %vm226_vm1, %v8252_v24  ;;  %v2698_v24 = vld [vmem:[#allocation2 + $0x19a] sm:$0xff] }
 0x22e   : > { %7196 = vmatprep.mubr.msk.bf16.mxu0 %vm226_vm1, %v8254_v25  ;;  %v2699_v25 = vld [vmem:[#allocation2 + $0x1a2] sm:$0xff] }
 0x235   : > { %7197 = vmatmul.mubr.msk.bf16.gmra.mrb[20].mxu0 %vm226_vm1, %v8260_v30  ;;  %v2715_v30 = vpack.c.bf16 %v2699_v25, %v2698_v24 }
 0x236   : > { %7200 = vmatprep.mubr.msk.bf16.mxu0 %vm226_vm1, %v8262_v31  ;;  %v7842_v31 = vld [vmem:[%s10571_s3 + $0x118] sm:$0xff]  }
 0x237   : > { %7389 = vmatprep.subr.bf16.mxu1 %v7842_v31 }
 0x23d   : > { %7201 = vmatmul.mubr.msk.bf16.gmra.mrb[24].mxu0 %vm226_vm1, %v8268_v36  ;;  %v7843_v36 = vld [vmem:[%s10571_s3 + $0xd8] sm:$0xff]  }
 0x23e   : > { %7204 = vmatprep.mubr.msk.bf16.mxu0 %vm226_vm1, %v8486_v0  ;;  %7397 = vmatpush3.bf16.msra.mxu1 %v7843_v36 }
 0x245   : > { %7205 = vmatmul.mubr.msk.bf16.gmra.mrb[28].mxu0 %vm226_vm1, %v2421_v19 }
 0x246   : > { %7210 = vmatprep.mubr.msk.bf16.mxu0 %vm226_vm1, %v8348_v52  ;;  %v7844_v52 = vld [vmem:[%s10571_s3 + $0x120] sm:$0xff]  }
 0x247   : > { %7390 = vmatprep.subr.bf16.mxu1 %v7844_v52 }
 0x24d   : > { %7211 = vmatmul.mubr.msk.bf16.vlgmr.msra.gmra.mrb[0].mxu0 %vm226_vm1, %v8360_v63  ;;  %v7845_v63 = vld [vmem:[%s10571_s3 + $0xe0] sm:$0xff]  }
 0x24e   : > { %7214 = vmatprep.mubr.msk.bf16.mxu0 %vm226_vm1, %v8362_v45  ;;  %6529 = vmatpush3.bf16.msra.mxu0 %v7837_v10  ;;  %v7846_v45 = vld [vmem:[%s10571_s3 + $0x128] sm:$0xff]  }
 0x24f   : > { %6530 = vmatprep.subr.bf16.mxu0 %v7838_v11  ;;  %7398 = vmatpush3.bf16.msra.mxu1 %v7845_v63 }
 0x250   : > { %7391 = vmatprep.subr.bf16.mxu1 %v7846_v45 }
 0x252   : > { %6531 = vmatpush3.bf16.msra.mxu0 %v7839_v40 }
 0x253   : > { %6532 = vmatprep.subr.bf16.mxu0 %v7840_v39 }
 0x255   : > { %7215 = vmatmul.mubr.msk.bf16.gmra.mrb[4].mxu0 %vm226_vm1, %v8368_v14  ;;  %v7847_v14 = vld [vmem:[%s10571_s3 + $0xe8] sm:$0xff]  }
 0x256   : > { %7218 = vmatprep.mubr.msk.bf16.mxu0 %vm226_vm1, %v8370_v15  ;;  %6533 = vmatpush3.bf16.msra.mxu0 %v7841_v46  ;;  %v7848_v15 = vld [vmem:[%s10571_s3 + $0x130] sm:$0xff]  }
 0x257   : > { %6534 = vmatprep.subr.bf16.mxu0 %v7842_v31  ;;  %7399 = vmatpush3.bf16.msra.mxu1 %v7847_v14 }
 0x258   : > { %7392 = vmatprep.subr.bf16.mxu1 %v7848_v15 }
 0x25a   : > { %6535 = vmatpush3.bf16.msra.mxu0 %v7843_v36  ;;  %v7853_v36 = vld [vmem:[%s10571_s3 + $0x148] sm:$0xff]  }
 0x25b   : > { %6536 = vmatprep.subr.bf16.mxu0 %v7844_v52 }
 0x25d   : > { %7219 = vmatmul.mubr.msk.bf16.gmra.mrb[8].mxu0 %vm226_vm1, %v8376_v26  ;;  %v7849_v26 = vld [vmem:[%s10571_s3 + $0xf0] sm:$0xff]  }
 0x25e   : > { %7222 = vmatprep.mubr.msk.bf16.mxu0 %vm226_vm1, %v8378_v27  ;;  %6537 = vmatpush3.bf16.msra.mxu0 %v7845_v63  ;;  %v7850_v27 = vld [vmem:[%s10571_s3 + $0x138] sm:$0xff]  }
 0x25f   : > { %6538 = vmatprep.subr.bf16.mxu0 %v7846_v45  ;;  %7400 = vmatpush3.bf16.msra.mxu1 %v7849_v26 }
 0x260   : > { %7393 = vmatprep.subr.bf16.mxu1 %v7850_v27 }
 0x262   : > { %6539 = vmatpush3.bf16.msra.mxu0 %v7847_v14 }
 0x263   : > { %6540 = vmatprep.subr.bf16.mxu0 %v7848_v15 }
 0x265   : > { %7223 = vmatmul.mubr.msk.bf16.gmra.mrb[12].mxu0 %vm226_vm1, %v8384_v37  ;;  %v7851_v37 = vld [vmem:[%s10571_s3 + $0xf8] sm:$0xff]  }
 0x266   : > { %7226 = vmatprep.mubr.msk.bf16.mxu0 %vm226_vm1, %v8386_v38  ;;  %6541 = vmatpush3.bf16.msra.mxu0 %v7849_v26  ;;  %v8673_v38 = vld [vmem:[%s10571_s3 + $0x140] sm:$0xff]  }
 0x267   : > { %6542 = vmatprep.subr.bf16.mxu0 %v7850_v27  ;;  %7401 = vmatpush3.bf16.msra.mxu1 %v7851_v37 }
 0x268   : > { %7242 = vmatprep.subr.bf16.mxu1 %v8673_v38 }
 0x26a   : > { %6543 = vmatpush3.bf16.msra.mxu0 %v7851_v37 }
 0x26d   : > { %7227 = vmatmul.mubr.msk.bf16.gmra.mrb[16].mxu0 %vm226_vm1, %v8392_v47  ;;  %v8679_v47 = vld [vmem:[%s10570_s2] ss:$0 sm:$0xff] }
 0x26e   : > { %7230 = vmatprep.mubr.msk.bf16.mxu0 %vm226_vm1, %v8394_v48 }
 0x275   : > { %7231 = vmatmul.mubr.msk.bf16.gmra.mrb[20].mxu0 %vm226_vm1, %v8400_v62 }
 0x276   : > { %7234 = vmatprep.mubr.msk.bf16.mxu0 %vm226_vm1, %v8402_v4 }
 0x27d   : > { %7235 = vmatmul.mubr.msk.bf16.gmra.mrb[24].mxu0 %vm226_vm1, %v8408_v9 }
 0x27e   : > { %7238 = vmatprep.mubr.msk.bf16.mxu0 %vm226_vm1, %v8525_v49 }
 0x285   : > { %7239 = vmatmul.mubr.msk.bf16.gmra.mrb[28].mxu0 %vm226_vm1, %v2715_v30 }
 0x320   : > { %v7212_v48 = vpop.f32.mrb[0].mxu0 }
 0x321   : > { %v2971_v62 = vadd.f32 %v7212_v48, %v8679_v47  ;;  %v2803_v4 = vpop.f32.mrb[1].mxu0 }
 0x322   : > { %v2969_v9 = vadd.f32 %v8679_v47, %v2803_v4  ;;  %v7213_v54 = vpop.f32.mrb[2].mxu0 }
 0x323   : > { %v3003_v22 = vmax.f32 %v2971_v62, 0.0  ;;  %v2972_v23 = vadd.f32 %v7213_v54, %v8679_v47  ;;  %v2806_v28 = vpop.f32.mrb[3].mxu0  ;;  %v7854_v54 = vld [vmem:[%s10571_s3 + $0x150] sm:$0xff]  }
 0x324   : > { %v3001_v55 = vmax.f32 %v2969_v9, 0.0  ;;  %v2970_v58 = vadd.f32 %v8679_v47, %v2806_v28 }
 0x325   : > { %3090 = vst [vmem:[#allocation3 + $0x31] sm:$0xff] %v3003_v22  ;;  %v3004_v0 = vmax.f32 %v2972_v23, 0.0 }
 0x326   : > { %3088 = vst [vmem:[#allocation3 + $0x19] sm:$0xff] %v3001_v55  ;;  %v3002_v1 = vmax.f32 %v2970_v58, 0.0 }
 0x327   : > { %3091 = vst [vmem:[#allocation3 + $0x39] sm:$0xff] %v3004_v0 }
 0x328   : > { %3089 = vst [vmem:[#allocation3 + $0x21] sm:$0xff] %v3002_v1  ;;  %v7216_v6 = vpop.f32.mrb[4].mxu0 }
 0x329   : > { %v2975_v7 = vadd.f32 %v7216_v6, %v8679_v47  ;;  %v2819_v12 = vpop.f32.mrb[5].mxu0 }
 0x32a   : > { %v2973_v49 = vadd.f32 %v8679_v47, %v2819_v12  ;;  %v7217_v32 = vpop.f32.mrb[6].mxu0 }
 0x32b   : > { %v3007_v33 = vmax.f32 %v2975_v7, 0.0  ;;  %v2976_v44 = vadd.f32 %v7217_v32, %v8679_v47  ;;  %v2822_v50 = vpop.f32.mrb[7].mxu0 }
 0x32c   : > { %v3005_v51 = vmax.f32 %v2973_v49, 0.0  ;;  %v2974_v57 = vadd.f32 %v8679_v47, %v2822_v50  ;;  %v3541_v59 = vld [vmem:[#allocation3 + $0x30] sm:$0xff] }
 0x32d   : > { %3094 = vst [vmem:[#allocation3 + $0x61] sm:$0xff] %v3007_v33  ;;  %v3008_v2 = vmax.f32 %v2976_v44, 0.0  ;;  %v3538_v3 = vld [vmem:[#allocation3 + $0x18] sm:$0xff]  ;;  %v3639_v21 = vrot.slane %v3541_v59, 1  ;;  %v3751_v42 = vrot.slane %v3541_v59, 2 }
 0x32e   : > { %3092 = vst [vmem:[#allocation3 + $0x49] sm:$0xff] %v3005_v51  ;;  %v3006_v10 = vmax.f32 %v2974_v57, 0.0  ;;  %v3542_v11 = vld [vmem:[#allocation3 + $0x38] sm:$0xff]  ;;  %v3543_v20 = vld [vmem:[#allocation3 + $0x40] sm:$0x3]  ;;  %v3634_v53 = vrot.slane %v3538_v3, 1 }
 0x32f   : > { %3095 = vst [vmem:[#allocation3 + $0x69] sm:$0xff] %v3008_v2  ;;  %v3640_v29 = vrot.slane %v3542_v11, 1  ;;  %v3642_v34 = vrot.slane %v3543_v20, 1  ;;  %v3752_v40 = vrot.slane %v3542_v11, 2  ;;  %v3754_v35 = vrot.slane %v3543_v20, 2  ;;  %v3539_v39 = vld [vmem:[#allocation3 + $0x20] sm:$0xff] }
 0x330   : > { %3093 = vst [vmem:[#allocation3 + $0x51] sm:$0xff] %v3006_v10  ;;  %v7220_v41 = vpop.f32.mrb[8].mxu0  ;;  %v8689_v46 = vld [vmem:[#allocation3 + $0x28] sm:$0x3]  ;;  %v8691_v56 = vrot.slane %v3539_v39, 1  ;;  %v3861_v31 = vpack.c.bf16 %v3542_v11, %v3541_v59  ;;  %v8720_v62 = vpack.c.bf16 %v3539_v39, %v3538_v3 }
 0x331   : > { %10745 = vst [vmem:[#allocation4_spill] sm:$0xff] %v8689_v46  ;;  %v2979_v60 = vadd.f32 %v7220_v41, %v8679_v47  ;;  %v2835_v61 = vpop.f32.mrb[9].mxu0  ;;  %v3641_v5 = vsel %vm3216_vm3, %v3639_v21, %v3640_v29  ;;  %v3643_v8 = vsel %vm3216_vm3, %v3640_v29, %v3642_v34  ;;  %v8697_v16 = vsel %vm3329_vm4, %v3752_v40, %v3754_v35  ;;  %v7855_v29 = vld [vmem:[%s10571_s3 + $0x158] sm:$0xff]  }
 0x332   : > { %10746 = vst [vmem:[#allocation5_spill] sm:$0xff] %v8697_v16  ;;  %v2977_v17 = vadd.f32 %v8679_v47, %v2835_v61  ;;  %v7221_v43 = vpop.f32.mrb[10].mxu0  ;;  %v3862_v13 = vpack.c.bf16 %v3643_v8, %v3641_v5  ;;  %v8702_v18 = vsel %vm3216_vm3, %v3634_v53, %v8691_v56  ;;  %v3637_v19 = vrot.slane %v8689_v46, 1  ;;  %10750 = vst [vmem:[#allocation9_spill] sm:$0xff] %v8720_v62 }
 0x333   : > { %10747 = vst [vmem:[#allocation6_spill] sm:$0xff] %v8702_v18  ;;  %v3011_v24 = vmax.f32 %v2979_v60, 0.0  ;;  %v2980_v25 = vadd.f32 %v7221_v43, %v8679_v47  ;;  %v2838_v30 = vpop.f32.mrb[11].mxu0  ;;  %v8715_v15 = vsel %vm3329_vm4, %v3751_v42, %v3752_v40 }
 0x334   : > { %v3009_v52 = vmax.f32 %v2977_v17, 0.0  ;;  %v2978_v63 = vadd.f32 %v8679_v47, %v2838_v30  ;;  %4139 = vmatprep.mubr.bf16.mxu1 %v3862_v13  ;;  %v3638_v45 = vsel %vm3216_vm3, %v8691_v56, %v3637_v19  ;;  %v8712_v14 = vld [vmem:[#allocation3 + $0x60] sm:$0xff]  ;;  %10748 = vst [vmem:[#allocation7_spill] sm:$0xff] %v8715_v15  ;;  %v7856_v19 = vld [vmem:[%s10571_s3 + $0x160] sm:$0xff]  }
 0x335   : > { %3098 = vst [vmem:[#allocation3 + $0x91] sm:$0xff] %v3011_v24  ;;  %v3012_v26 = vmax.f32 %v2980_v25, 0.0  ;;  %v3859_v27 = vpack.c.bf16 %v3638_v45, %v8702_v18  ;;  %4140 = vmatmul.mubr.bf16.vlgmr.msra.gmra.mrb[0].mxu1 %v3861_v31  ;;  %v8718_v37 = vld [vmem:[#allocation3 + $0x48] sm:$0xff]  ;;  %v3649_v55 = vrot.slane %v8712_v14, 1  ;;  %v3761_v39 = vrot.slane %v8712_v14, 2 }
 0x336   : > { %10749 = vst [vmem:[#allocation8_spill] sm:$0xff] %v8718_v37  ;;  %3096 = vst [vmem:[#allocation3 + $0x79] sm:$0xff] %v3009_v52  ;;  %v3010_v48 = vmax.f32 %v2978_v63, 0.0  ;;  %7243 = vmatpush3.bf16.msra.mxu1 %v8673_v38  ;;  %v8723_v4 = vld [vmem:[#allocation3 + $0x68] sm:$0xff]  ;;  %v3549_v9 = vld [vmem:[#allocation3 + $0x70] sm:$0x3] }
 0x337   : > { %3099 = vst [vmem:[#allocation3 + $0x99] sm:$0xff] %v3012_v26  ;;  %4131 = vmatprep.mubr.bf16.mxu0 %v3859_v27  ;;  %v8730_v23 = vld [vmem:[#allocation3 + $0x50] sm:$0xff]  ;;  %v8732_v28 = vld [vmem:[#allocation3 + $0x58] sm:$0x3]  ;;  %v8736_v38 = vrot.slane %v8723_v4, 1  ;;  %v3652_v58 = vrot.slane %v3549_v9, 1  ;;  %7244 = vmatprep.subr.bf16.mxu1 %v7853_v36 }
 0x338   : > { %10751 = vst [vmem:[#allocation10_spill] sm:$0xff] %v8730_v23  ;;  %10752 = vst [vmem:[#allocation11_spill] sm:$0xff] %v8732_v28  ;;  %4132 = vmatmul.mubr.bf16.vlgmr.msra.gmra.mrb[32].mxu0 %v8720_v62  ;;  %v7224_v0 = vpop.f32.mrb[12].mxu0  ;;  %v3644_v1 = vrot.slane %v8718_v37, 1  ;;  %v8741_v6 = vrot.slane %v8730_v23, 1  ;;  %v3647_v7 = vrot.slane %v8732_v28, 1  ;;  %v8763_v21 = vpack.c.bf16 %v8730_v23, %v8718_v37 }
 0x339   : > { %3097 = vst [vmem:[#allocation3 + $0x81] sm:$0xff] %v3010_v48  ;;  %v2983_v12 = vadd.f32 %v7224_v0, %v8679_v47  ;;  %v2851_v49 = vpop.f32.mrb[13].mxu0  ;;  %v8747_v32 = vsel %vm3216_vm3, %v3649_v55, %v8736_v38  ;;  %v3653_v57 = vsel %vm3216_vm3, %v8736_v38, %v3652_v58  ;;  %v8773_v41 = vrot.slane %v8723_v4, 2 }
 0x33a   : > { %v2981_v33 = vadd.f32 %v8679_v47, %v2851_v49  ;;  %v7225_v44 = vpop.f32.mrb[14].mxu0  ;;  %v8752_v50 = vsel %vm3216_vm3, %v3644_v1, %v8741_v6  ;;  %v3648_v51 = vsel %vm3216_vm3, %v8741_v6, %v3647_v7  ;;  %7245 = vmatpush3.bf16.msra.mxu1 %v7853_v36  ;;  %10753 = vst [vmem:[#allocation12_spill] sm:$0xff] %v8763_v21  ;;  %v3764_v53 = vrot.slane %v3549_v9, 2 }
 0x33b   : > { %v3015_v59 = vmax.f32 %v2983_v12, 0.0  ;;  %v2984_v2 = vadd.f32 %v7225_v44, %v8679_v47  ;;  %v2854_v3 = vpop.f32.mrb[15].mxu0  ;;  %v3865_v10 = vpack.c.bf16 %v3648_v51, %v8752_v50  ;;  %7246 = vmatprep.subr.bf16.mxu1 %v7854_v54  ;;  %v3868_v40 = vpack.c.bf16 %v3653_v57, %v8747_v32  ;;  %v7857_v12 = vld [vmem:[%s10571_s3 + $0x168] sm:$0xff]  }
 0x33c   : > { %v3013_v11 = vmax.f32 %v2981_v33, 0.0  ;;  %v2982_v20 = vadd.f32 %v8679_v47, %v2854_v3  ;;  %v8780_v5 = vsel %vm3329_vm4, %v3761_v39, %v8773_v41  ;;  %v8791_v24 = vsel %vm3329_vm4, %v8773_v41, %v3764_v53  ;;  %v8814_v7 = vld [vmem:[#allocation3 + $0x90] sm:$0xff] }
 0x33d   : > { %3102 = vst [vmem:[#allocation3 + $0xc1] sm:$0xff] %v3015_v59  ;;  %v3016_v34 = vmax.f32 %v2984_v2, 0.0  ;;  %4147 = vmatprep.mubr.bf16.mxu1 %v3865_v10  ;;  %v8769_v35 = vld [vmem:[#allocation3 + $0x78] sm:$0xff]  ;;  %10754 = vst [vmem:[#allocation13_spill] sm:$0xff] %v8791_v24  ;;  %v8810_v55 = vpack.c.bf16 %v8723_v4, %v8712_v14  ;;  %v3659_v3 = vrot.slane %v8814_v7, 1 }
 0x33e   : > { %3100 = vst [vmem:[#allocation3 + $0xa9] sm:$0xff] %v3013_v11  ;;  %v3014_v42 = vmax.f32 %v2982_v20, 0.0  ;;  %4148 = vmatmul.mubr.bf16.gmra.mrb[4].mxu1 %v8763_v21  ;;  %v3654_v17 = vrot.slane %v8769_v35, 1  ;;  %v8803_v26 = vld [vmem:[#allocation3 + $0x98] sm:$0xff]  ;;  %v8805_v27 = vld [vmem:[#allocation3 + $0xa0] sm:$0x3] }
 0x33f   : > { %3103 = vst [vmem:[#allocation3 + $0xc9] sm:$0xff] %v3016_v34  ;;  %4155 = vmatprep.mubr.bf16.mxu1 %v3868_v40  ;;  %7247 = vmatpush3.bf16.msra.mxu1 %v7854_v54  ;;  %10756 = vst [vmem:[#allocation15_spill] sm:$0xff] %v8803_v26  ;;  %v3766_v58 = vrot.slane %v8769_v35, 2  ;;  %v8824_v44 = vrot.slane %v8803_v26, 1  ;;  %v3662_v51 = vrot.slane %v8805_v27, 1  ;;  %v7858_v20 = vld [vmem:[%s10571_s3 + $0x170] sm:$0xff]  }
 0x340   : > { %v8776_v60 = vld [vmem:[#allocation3 + $0x80] sm:$0xff]  ;;  %v3552_v61 = vld [vmem:[#allocation3 + $0x88] sm:$0x3]  ;;  %3101 = vst [vmem:[#allocation3 + $0xb1] sm:$0xff] %v3014_v42  ;;  %v7228_v8 = vpop.f32.mrb[16].mxu0  ;;  %7248 = vmatprep.subr.bf16.mxu1 %v7855_v29  ;;  %10757 = vst [vmem:[#allocation16_spill] sm:$0xff] %v8805_v27 }
 0x341   : > { %v8784_v43 = vrot.slane %v8776_v60, 1  ;;  %v3657_v13 = vrot.slane %v3552_v61, 1  ;;  %v2987_v25 = vadd.f32 %v7228_v8, %v8679_v47  ;;  %v2867_v30 = vpop.f32.mrb[17].mxu0  ;;  %10758 = vst [vmem:[#allocation17_spill] sm:$0xff] %v8810_v55  ;;  %10759 = vst [vmem:[#allocation18_spill] sm:$0xff] %v8814_v7  ;;  %v8820_v49 = vrot.slane %v8776_v60, 2 }
 0x342   : > { %v2985_v36 = vadd.f32 %v8679_v47, %v2867_v30  ;;  %v7229_v52 = vpop.f32.mrb[18].mxu0  ;;  %v3769_v33 = vrot.slane %v3552_v61, 2  ;;  %v8845_v40 = vsel %vm3216_vm3, %v3659_v3, %v8824_v44  ;;  %v3663_v39 = vsel %vm3216_vm3, %v8824_v44, %v3662_v51  ;;  %v7860_v3 = vld [vmem:[%s10571_s3 + $0x40] sm:$0xff]  }
 0x343   : > { %v8799_v63 = vsel %vm3216_vm3, %v3654_v17, %v8784_v43  ;;  %v3658_v45 = vsel %vm3216_vm3, %v8784_v43, %v3657_v13  ;;  %v3019_v48 = vmax.f32 %v2987_v25, 0.0  ;;  %v2988_v9 = vadd.f32 %v7229_v52, %v8679_v47  ;;  %v2870_v54 = vpop.f32.mrb[19].mxu0  ;;  %7249 = vmatpush3.bf16.msra.mxu1 %v7855_v29  ;;  %10761 = vst [vmem:[#allocation20_spill] sm:$0xff] %v8845_v40 }
 0x344   : > { %10755 = vst [vmem:[#allocation14_spill] sm:$0xff] %v8799_v63  ;;  %v3017_v0 = vmax.f32 %v2985_v36, 0.0  ;;  %v2986_v1 = vadd.f32 %v8679_v47, %v2870_v54  ;;  %7250 = vmatprep.subr.bf16.mxu1 %v7856_v19  ;;  %v3871_v4 = vpack.c.bf16 %v3658_v45, %v8799_v63  ;;  %v8830_v59 = vsel %vm3329_vm4, %v3766_v58, %v8820_v49 }
 0x345   : > { %3106 = vst [vmem:[#allocation3 + $0xf1] sm:$0xff] %v3019_v48  ;;  %v3020_v14 = vmax.f32 %v2988_v9, 0.0  ;;  %v8834_v2 = vsel %vm3329_vm4, %v8820_v49, %v3769_v33  ;;  %v8850_v61 = vld [vmem:[#allocation3 + $0xa8] sm:$0xff]  ;;  %v8858_v52 = vpack.c.bf16 %v8776_v60, %v8769_v35  ;;  %v3874_v45 = vpack.c.bf16 %v3663_v39, %v8845_v40 }
 0x346   : > { %3104 = vst [vmem:[#allocation3 + $0xd9] sm:$0xff] %v3017_v0  ;;  %v3018_v57 = vmax.f32 %v2986_v1, 0.0  ;;  %4156 = vmatmul.mubr.bf16.gmra.mrb[8].mxu1 %v8810_v55  ;;  %10760 = vst [vmem:[#allocation19_spill] sm:$0xff] %v8834_v2  ;;  %v7859_v48 = vld [vmem:[%s10571_s3 + $0x178] sm:$0xff]   ;;  %v3776_v54 = vrot.slane %v8850_v61, 2  ;;  %v3664_v51 = vrot.slane %v8850_v61, 1 }
 0x347   : > { %3107 = vst [vmem:[#allocation3 + $0xf9] sm:$0xff] %v3020_v14  ;;  %4163 = vmatprep.mubr.bf16.mxu1 %v3871_v4  ;;  %7251 = vmatpush3.bf16.msra.mxu1 %v7856_v19  ;;  %v8852_v8 = vld [vmem:[#allocation3 + $0xb0] sm:$0xff]  ;;  %v3558_v17 = vld [vmem:[#allocation3 + $0xb8] sm:$0x3]  ;;  %10762 = vst [vmem:[#allocation21_spill] sm:$0xff] %v8858_v52 }
 0x348   : > { %3105 = vst [vmem:[#allocation3 + $0xe1] sm:$0xff] %v3018_v57  ;;  %v7232_v11 = vpop.f32.mrb[20].mxu0  ;;  %7252 = vmatprep.subr.bf16.mxu1 %v7857_v12  ;;  %v8866_v58 = vrot.slane %v8852_v8, 2  ;;  %v3779_v0 = vrot.slane %v3558_v17, 2  ;;  %v8870_v35 = vrot.slane %v8852_v8, 1  ;;  %v3667_v60 = vrot.slane %v3558_v17, 1 }
 0x349   : > { %v2991_v29 = vadd.f32 %v7232_v11, %v8679_v47  ;;  %v2883_v34 = vpop.f32.mrb[21].mxu0  ;;  %v3561_v33 = vld [vmem:[#allocation3 + $0xd0] sm:$0x3]  ;;  %v8879_v57 = vld [vmem:[#allocation3 + $0xc0] sm:$0xff] }
 0x34a   : > { %v2989_v42 = vadd.f32 %v8679_v47, %v2883_v34  ;;  %v7233_v53 = vpop.f32.mrb[22].mxu0  ;;  %v8876_v14 = vsel %vm3329_vm4, %v3776_v54, %v8866_v58  ;;  %v8886_v11 = vsel %vm3329_vm4, %v8866_v58, %v3779_v0  ;;  %v8891_v34 = vpack.c.bf16 %v8803_v26, %v8814_v7 }
 0x34b   : > { %v3023_v13 = vmax.f32 %v2991_v29, 0.0  ;;  %v2992_v19 = vadd.f32 %v7233_v53, %v8679_v47  ;;  %v2886_v25 = vpop.f32.mrb[23].mxu0  ;;  %7253 = vmatpush3.bf16.msra.mxu1 %v7857_v12  ;;  %v8872_v12 = vld [vmem:[#allocation3 + $0xc8] sm:$0xff]  ;;  %10763 = vst [vmem:[#allocation22_spill] sm:$0xff] %v8886_v11 }
 0x34c   : > { %v3021_v30 = vmax.f32 %v2989_v42, 0.0  ;;  %v2990_v36 = vadd.f32 %v8679_v47, %v2886_v25  ;;  %7254 = vmatprep.subr.bf16.mxu1 %v7858_v20  ;;  %10764 = vst [vmem:[#allocation23_spill] sm:$0xff] %v8891_v34  ;;  %v8894_v39 = vrot.slane %v8872_v12, 1  ;;  %v3672_v25 = vrot.slane %v3561_v33, 1 }
 0x34d   : > { %3110 = vst [vmem:[#allocation3 + $0x121] sm:$0xff] %v3023_v13  ;;  %v3024_v9 = vmax.f32 %v2992_v19, 0.0  ;;  %v8901_v13 = vsel %vm3216_vm3, %v3664_v51, %v8870_v35  ;;  %v3668_v19 = vsel %vm3216_vm3, %v8870_v35, %v3667_v60  ;;  %v3784_v42 = vrot.slane %v3561_v33, 2 }
 0x34e   : > { %3108 = vst [vmem:[#allocation3 + $0x109] sm:$0xff] %v3021_v30  ;;  %v3022_v1 = vmax.f32 %v2990_v36, 0.0  ;;  %4164 = vmatmul.mubr.bf16.gmra.mrb[12].mxu1 %v8858_v52  ;;  %v8905_v30 = vld [vmem:[#allocation3 + $0xd8] sm:$0xff] }
 0x34f   : > { %3111 = vst [vmem:[#allocation3 + $0x129] sm:$0xff] %v3024_v9  ;;  %4171 = vmatprep.mubr.bf16.mxu1 %v3874_v45  ;;  %7255 = vmatpush3.bf16.msra.mxu1 %v7858_v20  ;;  %v8907_v36 = vld [vmem:[#allocation3 + $0xe0] sm:$0xff]  ;;  %v8910_v0 = vld [vmem:[#allocation3 + $0xe8] sm:$0x3]  ;;  %v3786_v33 = vrot.slane %v8905_v30, 2 }
 0x350   : > { %3109 = vst [vmem:[#allocation3 + $0x111] sm:$0xff] %v3022_v1  ;;  %v7236_v4 = vpop.f32.mrb[24].mxu0  ;;  %7256 = vmatprep.subr.bf16.mxu1 %v7859_v48  ;;  %v3781_v1 = vrot.slane %v8879_v57, 2 }
 0x351   : > { %v2995_v20 = vadd.f32 %v7236_v4, %v8679_v47  ;;  %v2899_v29 = vpop.f32.mrb[25].mxu0  ;;  %v8914_v4 = vrot.slane %v8872_v12, 2 }
 0x352   : > { %v2993_v53 = vadd.f32 %v8679_v47, %v2899_v29  ;;  %v7237_v17 = vpop.f32.mrb[26].mxu0  ;;  %v3669_v29 = vrot.slane %v8879_v57, 1 }
 0x353   : > { %v3027_v45 = vmax.f32 %v2995_v20, 0.0  ;;  %v2996_v9 = vadd.f32 %v7237_v17, %v8679_v47  ;;  %v2902_v54 = vpop.f32.mrb[27].mxu0  ;;  %7257 = vmatpush3.bf16.msra.mxu1 %v7859_v48  ;;  %v3877_v17 = vpack.c.bf16 %v3668_v19, %v8901_v13  ;;  %v8921_v10 = vsel %vm3329_vm4, %v3781_v1, %v8914_v4 }
 0x354   : > { %v3025_v51 = vmax.f32 %v2993_v53, 0.0  ;;  %v2994_v60 = vadd.f32 %v8679_v47, %v2902_v54  ;;  %6664 = vmatprep.subr.bf16.mxu1 %v7860_v3  ;;  %10765 = vst [vmem:[#allocation24_spill] sm:$0xff] %v8921_v10  ;;  %v8924_v48 = vrot.slane %v8907_v36, 2  ;;  %v8929_v53 = vsel %vm3329_vm4, %v8914_v4, %v3784_v42  ;;  %v8941_v42 = vld [vmem:[#allocation3 + $0xf8] sm:$0xff] }
 0x355   : > { %3114 = vst [vmem:[#allocation3 + $0x151] sm:$0xff] %v3027_v45  ;;  %v3028_v20 = vmax.f32 %v2996_v9, 0.0  ;;  %10767 = vst [vmem:[#allocation26_spill] sm:$0xff] %v8929_v53  ;;  %v3789_v3 = vrot.slane %v8910_v0, 2  ;;  %v8935_v19 = vsel %vm3216_vm3, %v3669_v29, %v8894_v39  ;;  %v3673_v45 = vsel %vm3216_vm3, %v8894_v39, %v3672_v25 }
 0x356   : > { %10766 = vst [vmem:[#allocation25_spill] sm:$0xff] %v8924_v48  ;;  %3112 = vst [vmem:[#allocation3 + $0x139] sm:$0xff] %v3025_v51  ;;  %v3026_v31 = vmax.f32 %v2994_v60, 0.0  ;;  %4172 = vmatmul.mubr.bf16.gmra.mrb[16].mxu1 %v8891_v34  ;;  %v8945_v1 = vsel %vm3329_vm4, %v3786_v33, %v8924_v48  ;;  %v3880_v9 = vpack.c.bf16 %v3673_v45, %v8935_v19  ;;  %v3567_v33 = vld [vmem:[#allocation3 + $0x100] sm:$0x3]  ;;  %v8962_v52 = vrot.slane %v8941_v42, 1 }
 0x357   : > { %3115 = vst [vmem:[#allocation3 + $0x159] sm:$0xff] %v3028_v20  ;;  %4179 = vmatprep.mubr.bf16.mxu1 %v3877_v17  ;;  %10768 = vst [vmem:[#allocation27_spill] sm:$0xff] %v8945_v1  ;;  %v8948_v20 = vld [vmem:[#allocation3 + $0xf0] sm:$0xff]  ;;  %v8952_v29 = vsel %vm3329_vm4, %v8924_v48, %v3789_v3  ;;  %v8973_v45 = vrot.slane %v8941_v42, 2  ;;  %v3682_v62 = vrot.slane %v3567_v33, 1  ;;  %v3794_v53 = vrot.slane %v3567_v33, 2 }
 0x358   : > { %3113 = vst [vmem:[#allocation3 + $0x141] sm:$0xff] %v3026_v31  ;;  %v7240_v54 = vpop.f32.mrb[28].mxu0  ;;  %10769 = vst [vmem:[#allocation28_spill] sm:$0xff] %v8952_v29  ;;  %v8957_v31 = vpack.c.bf16 %v8852_v8, %v8850_v61  ;;  %v8964_v55 = vld [vmem:[#allocation3 + $0x110] sm:$0xff]  ;;  %v8969_v61 = vld [vmem:[#allocation3 + $0x108] sm:$0xff]  ;;  %v3791_v8 = vrot.slane %v8948_v20, 2  ;;  %v9091_v23 = vpack.c.bf16 %v8941_v42, %v8948_v20 }
 0x359   : > { %v2999_v51 = vadd.f32 %v7240_v54, %v8679_v47  ;;  %v2915_v60 = vpop.f32.mrb[29].mxu0  ;;  %10771 = vst [vmem:[#allocation30_spill] sm:$0xff] %v8973_v45  ;;  %v3796_v33 = vrot.slane %v8969_v61, 2  ;;  %v9000_v3 = vld [vmem:[#allocation3 + $0x128] sm:$0xff] }
 0x35a   : > { %v2997_v25 = vadd.f32 %v8679_v47, %v2915_v60  ;;  %v7241_v17 = vpop.f32.mrb[30].mxu0  ;;  %10770 = vst [vmem:[#allocation29_spill] sm:$0xff] %v8957_v31  ;;  %10786 = vst [vmem:[#allocation45_spill] sm:$0xff] %v9091_v23  ;;  %v3125_v1 = vld [vmem:[#allocation3 + $0x28] sm:$0x3] }
 0x35b   : > { %v3031_v22 = vmax.f32 %v2999_v51, 0.0  ;;  %v3000_v54 = vadd.f32 %v7241_v17, %v8679_v47  ;;  %v2918_v34 = vpop.f32.mrb[31].mxu0  ;;  %v8976_v17 = vrot.slane %v8907_v36, 1 }
 0x35c   : > { %v3029_v60 = vmax.f32 %v2997_v25, 0.0  ;;  %v2998_v21 = vadd.f32 %v8679_v47, %v2918_v34  ;;  %v3677_v47 = vrot.slane %v8910_v0, 1  ;;  %v8980_v34 = vld [vmem:[#allocation3 + $0x118] sm:$0x3]  ;;  %v8984_v25 = vsel %vm3329_vm4, %v3791_v8, %v8973_v45  ;;  %v8998_v8 = vld [vmem:[#allocation3 + $0x120] sm:$0xff]  ;;  %v9054_v27 = vld [vmem:[#allocation3 + $0x150] sm:$0xff] }
 0x35d   : > { %3118 = vst [vmem:[#allocation3 + $0x181] sm:$0xff] %v3031_v22  ;;  %v3032_v51 = vmax.f32 %v3000_v54, 0.0  ;;  %10772 = vst [vmem:[#allocation31_spill] sm:$0xff] %v8984_v25  ;;  %v8987_v22 = vrot.slane %v8964_v55, 2  ;;  %v8989_v54 = vld [vmem:[#allocation3 + $0x30] sm:$0xff]  ;;  %v3674_v0 = vrot.slane %v8905_v30, 1 }
 0x35e   : > { %3116 = vst [vmem:[#allocation3 + $0x169] sm:$0xff] %v3029_v60  ;;  %v3030_v11 = vmax.f32 %v2998_v21, 0.0  ;;  %4180 = vmatmul.mubr.bf16.gmra.mrb[20].mxu1 %v8957_v31  ;;  %v8993_v21 = vsel %vm3329_vm4, %v8973_v45, %v3794_v53  ;;  %v3679_v60 = vrot.slane %v8948_v20, 1  ;;  %v9002_v31 = vld [vmem:[#allocation3 + $0x130] sm:$0x3]  ;;  %v9008_v53 = vpack.c.bf16 %v8872_v12, %v8879_v57  ;;  %10780 = vst [vmem:[#allocation39_spill] sm:$0xff] %v9054_v27 }
 0x35f   : > { %10773 = vst [vmem:[#allocation32_spill] sm:$0xff] %v8987_v22  ;;  %3119 = vst [vmem:[#allocation3 + $0x189] sm:$0xff] %v3032_v51  ;;  %4187 = vmatprep.mubr.bf16.mxu1 %v3880_v9  ;;  %v9010_v51 = vld [vmem:[#allocation3 + $0x138] sm:$0xff]  ;;  %v9014_v29 = vld [vmem:[#allocation3 + $0x148] sm:$0x3]  ;;  %v9018_v2 = vsel %vm3329_vm4, %v3796_v33, %v8987_v22  ;;  %v3799_v24 = vrot.slane %v8980_v34, 2  ;;  %v9024_v9 = vsel %vm3216_vm3, %v3674_v0, %v8976_v17 }
 0x360   : > { %10774 = vst [vmem:[#allocation33_spill] sm:$0xff] %v8993_v21  ;;  %3117 = vst [vmem:[#allocation3 + $0x171] sm:$0xff] %v3030_v11  ;;  %v9012_v11 = vld [vmem:[#allocation3 + $0x140] sm:$0xff]  ;;  %v3678_v12 = vsel %vm3216_vm3, %v8976_v17, %v3677_v47  ;;  %v9030_v57 = vsel %vm3216_vm3, %v3679_v60, %v8962_v52  ;;  %v9034_v21 = vsel %vm3216_vm3, %v8962_v52, %v3682_v62  ;;  %v3801_v15 = vrot.slane %v8998_v8, 2  ;;  %v9056_v26 = vld [vmem:[#allocation3 + $0x158] sm:$0xff] }
 0x361   : > { %10775 = vst [vmem:[#allocation34_spill] sm:$0xff] %v9008_v53  ;;  %10776 = vst [vmem:[#allocation35_spill] sm:$0xff] %v9018_v2  ;;  %v9038_v33 = vsel %vm3329_vm4, %v8987_v22, %v3799_v24  ;;  %v9042_v0 = vrot.slane %v9000_v3, 2  ;;  %v3804_v16 = vrot.slane %v9002_v31, 2  ;;  %v3806_v60 = vrot.slane %v9010_v51, 2 }
 0x362   : > { %10777 = vst [vmem:[#allocation36_spill] sm:$0xff] %v9038_v33  ;;  %v9049_v7 = vrot.slane %v9012_v11, 2  ;;  %v3809_v62 = vrot.slane %v9014_v29, 2  ;;  %v3883_v24 = vpack.c.bf16 %v3678_v12, %v9024_v9  ;;  %v3689_v37 = vrot.slane %v8998_v8, 1  ;;  %10781 = vst [vmem:[#allocation40_spill] sm:$0xff] %v9056_v26 }
 0x363   : > { %10778 = vst [vmem:[#allocation37_spill] sm:$0xff] %v9042_v0  ;;  %v9060_v28 = vsel %vm3329_vm4, %v3801_v15, %v9042_v0  ;;  %v9064_v47 = vsel %vm3329_vm4, %v9042_v0, %v3804_v16  ;;  %v9068_v33 = vrot.slane %v8964_v55, 1  ;;  %v9070_v12 = vld [vmem:[#allocation3 + $0x160] sm:$0x3]  ;;  %v3684_v16 = vrot.slane %v8969_v61, 1 }
 0x364   : > { %10779 = vst [vmem:[#allocation38_spill] sm:$0xff] %v9049_v7  ;;  %10782 = vst [vmem:[#allocation41_spill] sm:$0xff] %v9060_v28  ;;  %v9076_v46 = vsel %vm3329_vm4, %v3806_v60, %v9049_v7  ;;  %v9080_v15 = vsel %vm3329_vm4, %v9049_v7, %v3809_v62  ;;  %v3692_v0 = vrot.slane %v9002_v31, 1  ;;  %v9101_v7 = vrot.slane %v9056_v26, 2  ;;  %v9110_v20 = vld [vmem:[#allocation3 + $0x180] sm:$0xff] }
 0x365   : > { %10783 = vst [vmem:[#allocation42_spill] sm:$0xff] %v9064_v47  ;;  %10784 = vst [vmem:[#allocation43_spill] sm:$0xff] %v9076_v46  ;;  %v9093_v60 = vld [vmem:[#allocation3 + $0x168] sm:$0xff]  ;;  %v9105_v31 = vpack.c.bf16 %v8907_v36, %v8905_v30  ;;  %v3886_v2 = vpack.c.bf16 %v9034_v21, %v9030_v57  ;;  %v3687_v42 = vrot.slane %v8980_v34, 1  ;;  %v3814_v28 = vrot.slane %v9070_v12, 2 }
 0x366   : > { %4188 = vmatmul.mubr.bf16.gmra.mrb[24].mxu1 %v9008_v53  ;;  %10785 = vst [vmem:[#allocation44_spill] sm:$0xff] %v9080_v15  ;;  %v9084_v53 = vrot.slane %v9000_v3, 1  ;;  %10787 = vst [vmem:[#allocation46_spill] sm:$0xff] %v9093_v60  ;;  %v9112_v15 = vld [vmem:[#allocation3 + $0x188] sm:$0xff]  ;;  %v9114_v46 = vld [vmem:[#allocation3 + $0x190] sm:$0x3]  ;;  %v9119_v22 = vsel %vm3216_vm3, %v3684_v16, %v9068_v33  ;;  %v9123_v30 = vpack.c.bf16 %v8964_v55, %v8969_v61 }
 0x367   : > { %4195 = vmatprep.mubr.bf16.mxu1 %v3883_v24  ;;  %v9095_v47 = vld [vmem:[#allocation3 + $0x170] sm:$0xff]  ;;  %v9097_v62 = vld [vmem:[#allocation3 + $0x178] sm:$0x3]  ;;  %v3811_v24 = vrot.slane %v9054_v27, 2  ;;  %10788 = vst [vmem:[#allocation47_spill] sm:$0xff] %v9101_v7  ;;  %10789 = vst [vmem:[#allocation48_spill] sm:$0xff] %v9105_v31  ;;  %v9134_v21 = vsel %vm3329_vm4, %v9101_v7, %v3814_v28  ;;  %v3688_v28 = vsel %vm3216_vm3, %v9068_v33, %v3687_v42 }
 0x368   : > { %10790 = vst [vmem:[#allocation49_spill] sm:$0xff] %v9110_v20  ;;  %10791 = vst [vmem:[#allocation50_spill] sm:$0xff] %v9112_v15  ;;  %v9126_v36 = vrot.slane %v9056_v26, 1  ;;  %v3816_v25 = vrot.slane %v9093_v60, 2  ;;  %v9138_v16 = vrot.slane %v9095_v47, 2  ;;  %v3819_v45 = vrot.slane %v9097_v62, 2 }
 0x369   : > { %10792 = vst [vmem:[#allocation51_spill] sm:$0xff] %v9114_v46  ;;  %v9130_v34 = vsel %vm3329_vm4, %v3811_v24, %v9101_v7  ;;  %10794 = vst [vmem:[#allocation53_spill] sm:$0xff] %v9134_v21  ;;  %v3821_v61 = vrot.slane %v9110_v20, 2  ;;  %v3822_v26 = vrot.slane %v9112_v15, 2  ;;  %v3824_v24 = vrot.slane %v9114_v46, 2 }
 0x36a   : > { %10793 = vst [vmem:[#allocation52_spill] sm:$0xff] %v9130_v34  ;;  %10795 = vst [vmem:[#allocation54_spill] sm:$0xff] %v9138_v16  ;;  %v3699_v7 = vrot.slane %v9054_v27, 1  ;;  %v9151_v48 = vsel %vm3329_vm4, %v3816_v25, %v9138_v16  ;;  %v9155_v10 = vsel %vm3329_vm4, %v9138_v16, %v3819_v45  ;;  %v3131_v55 = vld [vmem:[#allocation3 + $0x58] sm:$0x3]  ;;  %v9159_v21 = vrot.slane %v9012_v11, 1 }
 0x36b   : > { %10796 = vst [vmem:[#allocation55_spill] sm:$0xff] %v9151_v48  ;;  %10797 = vst [vmem:[#allocation56_spill] sm:$0xff] %v9155_v10  ;;  %v9164_v42 = vsel %vm3329_vm4, %v3821_v61, %v3822_v26  ;;  %v9167_v46 = vsel %vm3329_vm4, %v3822_v26, %v3824_v24  ;;  %v9169_v25 = vld [vmem:[#allocation3 + $0x70] sm:$0x3]  ;;  %v9171_v15 = vld [vmem:[#allocation3 + $0x88] sm:$0x3]  ;;  %v9175_v45 = vsel %vm3216_vm3, %v3689_v37, %v9084_v53 }
 0x36c   : > { %10798 = vst [vmem:[#allocation57_spill] sm:$0xff] %v9164_v42  ;;  %10799 = vst [vmem:[#allocation58_spill] sm:$0xff] %v9167_v46  ;;  %v3225_v20 = vrot.slane %v3125_v1, 1  ;;  %v3140_v10 = vld [vmem:[#allocation3 + $0xa0] sm:$0x3]  ;;  %v3889_v26 = vpack.c.bf16 %v3688_v28, %v9119_v22  ;;  %v3694_v24 = vrot.slane %v9010_v51, 1 }
 0x36d   : > { %v9190_v27 = vld [vmem:[#allocation3 + $0xb8] sm:$0x3]  ;;  %v9192_v48 = vld [vmem:[#allocation3 + $0xd0] sm:$0x3]  ;;  %v3235_v1 = vrot.slane %v3131_v55, 1  ;;  %v3240_v61 = vrot.slane %v9169_v25, 1 }
 0x36e   : > { %4196 = vmatmul.mubr.bf16.gmra.mrb[28].mxu1 %v9105_v31  ;;  %v9179_v31 = vsel %vm3216_vm3, %v9084_v53, %v3692_v0  ;;  %v9196_v0 = vsel %vm3216_vm3, %v8691_v56, %v3225_v20  ;;  %v3245_v28 = vrot.slane %v9171_v15, 1  ;;  %v9200_v42 = vld [vmem:[#allocation3 + $0xe8] sm:$0x3]  ;;  %v3704_v37 = vrot.slane %v9093_v60, 1  ;;  %v9209_v34 = vld [vmem:[#allocation3 + $0x100] sm:$0x3] }
 0x36f   : > { %4203 = vmatprep.mubr.bf16.mxu1 %v3886_v2  ;;  %v9187_v2 = vsel %vm3216_vm3, %v3699_v7, %v9126_v36  ;;  %10801 = vst [vmem:[#allocation60_spill] sm:$0xff] %v9196_v0  ;;  %v9204_v7 = vsel %vm3216_vm3, %v3694_v24, %v9159_v21  ;;  %v3250_v16 = vrot.slane %v3140_v10, 1  ;;  %v9211_v56 = vld [vmem:[#allocation3 + $0x118] sm:$0x3]  ;;  %v9214_v20 = vrot.slane %v9095_v47, 1 }
 0x370   : > { %10800 = vst [vmem:[#allocation59_spill] sm:$0xff] %v9187_v2  ;;  %10802 = vst [vmem:[#allocation61_spill] sm:$0xff] %v9204_v7  ;;  %v9218_v55 = vsel %vm3216_vm3, %v8741_v6, %v3235_v1  ;;  %v9222_v24 = vsel %vm3216_vm3, %v8736_v38, %v3240_v61  ;;  %v9226_v60 = vsel %vm3216_vm3, %v8784_v43, %v3245_v28  ;;  %v9228_v10 = vld [vmem:[#allocation3 + $0x130] sm:$0x3]  ;;  %v9230_v46 = vld [vmem:[#allocation3 + $0x148] sm:$0x3] }
 0x371   : > { %v9240_v38 = vsel %vm3216_vm3, %v8824_v44, %v3250_v16  ;;  %v9242_v61 = vld [vmem:[#allocation3 + $0x160] sm:$0x3]  ;;  %v3255_v1 = vrot.slane %v9190_v27, 1  ;;  %v3260_v28 = vrot.slane %v9192_v48, 1  ;;  %v3265_v18 = vrot.slane %v9200_v42, 1 }
 0x372   : > { %10803 = vst [vmem:[#allocation62_spill] sm:$0xff] %v9240_v38  ;;  %v3270_v0 = vrot.slane %v9209_v34, 1  ;;  %v3275_v6 = vrot.slane %v9211_v56, 1  ;;  %v3280_v44 = vrot.slane %v9228_v10, 1  ;;  %v3285_v16 = vrot.slane %v9230_v46, 1 }
 0x373   : > { %v9256_v43 = vsel %vm3216_vm3, %v8870_v35, %v3255_v1  ;;  %v9260_v40 = vsel %vm3216_vm3, %v8894_v39, %v3260_v28  ;;  %v3290_v38 = vrot.slane %v9242_v61, 1  ;;  %v9277_v39 = vld [vmem:[#allocation3 + $0x178] sm:$0x3] }
 0x374   : > { %v9275_v1 = vsel %vm3216_vm3, %v8962_v52, %v3270_v0  ;;  %v9279_v28 = vld [vmem:[#allocation3 + $0x38] sm:$0xff]  ;;  %v9287_v63 = vsel %vm3216_vm3, %v9068_v33, %v3275_v6  ;;  %v9291_v35 = vsel %vm3216_vm3, %v9084_v53, %v3280_v44  ;;  %v9295_v52 = vsel %vm3216_vm3, %v9159_v21, %v3285_v16 }
 0x375   : > { %10804 = vst [vmem:[#allocation63_spill] sm:$0xff] %v9295_v52  ;;  %v9305_v33 = vsel %vm3216_vm3, %v9126_v36, %v3290_v38  ;;  %v3697_v53 = vrot.slane %v9014_v29, 1  ;;  %v9310_v6 = vsel %vm3216_vm3, %v3704_v37, %v9214_v20  ;;  %v3295_v16 = vrot.slane %v9277_v39, 1 }
 0x376   : > { %4204 = vmatmul.mubr.bf16.gmra.mrb[32].mxu1 %v9091_v23  ;;  %v9264_v23 = vsel %vm3216_vm3, %v8976_v17, %v3265_v18  ;;  %v9281_v18 = vld [vmem:[#allocation3 + $0x40] sm:$0x3]  ;;  %10805 = vst [vmem:[#allocation64_spill] sm:$0xff] %v9305_v33  ;;  %10806 = vst [vmem:[#allocation65_spill] sm:$0xff] %v9310_v6  ;;  %v3340_v17 = vrot.slane %v8989_v54, 2  ;;  %v9319_v0 = vrot.slane %v9279_v28, 2 }
 0x377   : > { %4211 = vmatprep.mubr.bf16.mxu1 %v3889_v26  ;;  %v3892_v26 = vpack.c.bf16 %v9179_v31, %v9175_v45  ;;  %v3343_v38 = vrot.slane %v9281_v18, 2  ;;  %v9324_v29 = vsel %vm3216_vm3, %v9214_v20, %v3295_v16  ;;  %v3353_v37 = vrot.slane %v9169_v25, 2 }
 0x378   : > { %10807 = vst [vmem:[#allocation66_spill] sm:$0xff] %v9324_v29  ;;  %v10808_v44 = vrot.slane %v9070_v12, 1  ;;  %v9336_v52 = vsel %vm3329_vm4, %v3340_v17, %v9319_v0  ;;  %v3698_v25 = vsel %vm3216_vm3, %v9159_v21, %v3697_v53  ;;  %v9356_v17 = vpack.c.bf16 %v9012_v11, %v9010_v51  ;;  %v10826_v12 = vld [vmem:[#allocation37_spill] sm:$0xff] }
 0x379   : > { %10809 = vst [vmem:[#allocation67_spill] sm:$0xff] %v9336_v52  ;;  %v9340_v16 = vsel %vm3329_vm4, %v9319_v0, %v3343_v38  ;;  %v3358_v21 = vrot.slane %v9171_v15, 2  ;;  %v3368_v38 = vrot.slane %v9190_v27, 2  ;;  %v9376_v11 = vrot.slane %v9279_v28, 1  ;;  %v10819_v27 = vld [vmem:[#allocation27_spill] sm:$0xff] }
 0x37a   : > { %v3703_v31 = vsel %vm3216_vm3, %v9126_v36, %v10808_v44  ;;  %10810 = vst [vmem:[#allocation68_spill] sm:$0xff] %v9340_v16  ;;  %v9348_v36 = vsel %vm3329_vm4, %v8773_v41, %v3353_v37  ;;  %v9352_v44 = vpack.c.bf16 %v9000_v3, %v8998_v8  ;;  %10812 = vst [vmem:[#allocation70_spill] sm:$0xff] %v9356_v17  ;;  %v3707_v3 = vrot.slane %v9097_v62, 1  ;;  %v10857_v16 = vld [vmem:[#allocation18_spill] sm:$0xff] }
 0x37b   : > { %10811 = vst [vmem:[#allocation69_spill] sm:$0xff] %v9348_v36  ;;  %v3898_v53 = vpack.c.bf16 %v3703_v31, %v9187_v2  ;;  %v3895_v41 = vpack.c.bf16 %v3698_v25, %v9204_v7  ;;  %v9366_v37 = vsel %vm3329_vm4, %v8820_v49, %v3358_v21  ;;  %v9373_v51 = vsel %vm3329_vm4, %v8866_v58, %v3368_v38  ;;  %v10816_v58 = vld [vmem:[#allocation24_spill] sm:$0xff]  ;;  %v10817_v21 = vld [vmem:[#allocation25_spill] sm:$0xff]  ;;  %v9569_v7 = vld [vmem:[#allocation3 + $0xe0] sm:$0xff] }
 0x37c   : > { %10813 = vst [vmem:[#allocation71_spill] sm:$0xff] %v9366_v37  ;;  %10814 = vst [vmem:[#allocation72_spill] sm:$0xff] %v9373_v51  ;;  %v3373_v15 = vrot.slane %v9192_v48, 2  ;;  %v3378_v49 = vrot.slane %v9200_v42, 2  ;;  %v3383_v31 = vrot.slane %v9209_v34, 2  ;;  %v10820_v42 = vld [vmem:[#allocation30_spill] sm:$0xff] }
 0x37d   : > { %v3393_v25 = vrot.slane %v9228_v10, 2  ;;  %v3398_v48 = vrot.slane %v9230_v46, 2  ;;  %v10828_v34 = vld [vmem:[#allocation41_spill] sm:$0xff]  ;;  %v10831_v10 = vld [vmem:[#allocation43_spill] sm:$0xff]  ;;  %v10855_v37 = vld [vmem:[#allocation16_spill] sm:$0xff]  ;;  %10880 = vst [vmem:[#allocation76_spill] sm:$0xff] %v9569_v7 }
 0x37e   : > { %4212 = vmatmul.mubr.bf16.gmra.mrb[36].mxu1 %v9123_v30  ;;  %v9385_v62 = vsel %vm3329_vm4, %v8914_v4, %v3373_v15  ;;  %v9392_v38 = vsel %vm3329_vm4, %v10817_v21, %v3378_v49  ;;  %v9398_v8 = vsel %vm3329_vm4, %v10820_v42, %v3383_v31  ;;  %v3388_v4 = vrot.slane %v9211_v56, 2  ;;  %v10822_v15 = vld [vmem:[#allocation31_spill] sm:$0xff]  ;;  %v9416_v42 = vld [vmem:[#allocation3 + $0x40] sm:$0x3] }
 0x37f   : > { %4219 = vmatprep.mubr.bf16.mxu1 %v3892_v26  ;;  %10815 = vst [vmem:[#allocation73_spill] sm:$0xff] %v9385_v62  ;;  %10818 = vst [vmem:[#allocation24_spill] sm:$0xff] %v9392_v38  ;;  %v10825_v49 = vld [vmem:[#allocation35_spill] sm:$0xff]  ;;  %v9413_v31 = vsel %vm3329_vm4, %v10826_v12, %v3393_v25  ;;  %v3403_v56 = vrot.slane %v9242_v61, 2  ;;  %v3408_v61 = vrot.slane %v9277_v39, 2  ;;  %v10834_v25 = vrot.slane %v8989_v54, 1 }
 0x380   : > { %10821 = vst [vmem:[#allocation25_spill] sm:$0xff] %v9398_v8  ;;  %10827 = vst [vmem:[#allocation30_spill] sm:$0xff] %v9413_v31  ;;  %v10832_v21 = vld [vmem:[#allocation47_spill] sm:$0xff]  ;;  %v4987_v31 = vrot.slane %v9416_v42, 1  ;;  %v10849_v62 = vld [vmem:[#allocation4_spill] sm:$0xff]  ;;  %v3774_v36 = vrot.slane %v10855_v37, 2 }
 0x381   : > { %v9429_v12 = vsel %vm3329_vm4, %v10832_v21, %v3403_v56  ;;  %v9436_v33 = vsel %vm3216_vm3, %v10834_v25, %v9376_v11  ;;  %v10838_v21 = vld [vmem:[#allocation55_spill] sm:$0xff]  ;;  %v10846_v25 = vld [vmem:[#allocation46_spill] sm:$0xff]  ;;  %v3749_v51 = vrot.slane %v10849_v62, 2 }
 0x382   : > { %v9449_v39 = vsel %vm3216_vm3, %v9376_v11, %v4987_v31  ;;  %v10845_v31 = vld [vmem:[#allocation49_spill] sm:$0xff] }
 0x383   : > { %10839 = vst [vmem:[#allocation37_spill] sm:$0xff] %v9449_v39  ;;  %v3709_v38 = vrot.slane %v10845_v31, 1  ;;  %v9468_v39 = vpack.c.bf16 %v9095_v47, %v10846_v25  ;;  %v10851_v47 = vld [vmem:[#allocation10_spill] sm:$0xff]  ;;  %v10853_v25 = vld [vmem:[#allocation11_spill] sm:$0xff] }
 0x386   : > { %4220 = vmatmul.mubr.bf16.gmra.mrb[40].mxu1 %v9352_v44 }
 0x387   : > { %4227 = vmatprep.mubr.bf16.mxu1 %v3895_v41  ;;  %v10823_v41 = vld [vmem:[#allocation32_spill] sm:$0xff] }
 0x388   : > { %v9405_v26 = vsel %vm3329_vm4, %v10823_v41, %v3388_v4  ;;  %v10829_v4 = vld [vmem:[#allocation38_spill] sm:$0xff]  ;;  %10833 = vst [vmem:[#allocation32_spill] sm:$0xff] %v9429_v12  ;;  %v10841_v12 = vld [vmem:[#allocation40_spill] sm:$0xff] }
 0x389   : > { %10824 = vst [vmem:[#allocation27_spill] sm:$0xff] %v9405_v26  ;;  %v9422_v41 = vsel %vm3329_vm4, %v10829_v4, %v3398_v48  ;;  %v10835_v48 = vld [vmem:[#allocation52_spill] sm:$0xff]  ;;  %v10836_v26 = vld [vmem:[#allocation54_spill] sm:$0xff]  ;;  %v10840_v4 = vld [vmem:[#allocation39_spill] sm:$0xff] }
 0x38a   : > { %10830 = vst [vmem:[#allocation31_spill] sm:$0xff] %v9422_v41  ;;  %v9443_v46 = vsel %vm3329_vm4, %v10836_v26, %v3408_v61  ;;  %v9457_v41 = vpack.c.bf16 %v10841_v12, %v10840_v4  ;;  %v10843_v61 = vld [vmem:[#allocation50_spill] sm:$0xff]  ;;  %10847 = vst [vmem:[#allocation38_spill] sm:$0xff] %v9468_v39 }
 0x38b   : > { %10837 = vst [vmem:[#allocation35_spill] sm:$0xff] %v9443_v46  ;;  %v3710_v56 = vrot.slane %v10843_v61, 1  ;;  %v10844_v46 = vld [vmem:[#allocation51_spill] sm:$0xff]  ;;  %v7908_v4 = vld [vmem:[#allocation3 + $0x20] sm:$0xff]  ;;  %v3903_v62 = vpack.c.bf16 %v10843_v61, %v10845_v31 }
 0x38c   : > { %10842 = vst [vmem:[#allocation41_spill] sm:$0xff] %v9457_v41  ;;  %v3712_v8 = vrot.slane %v10844_v46, 1  ;;  %v7909_v46 = vld [vmem:[#allocation3 + $0x18] sm:$0xff]  ;;  %v9503_v31 = vld [vmem:[#allocation3 + $0x60] sm:$0xff] }
 0x38d   : > { %10859 = vst [vmem:[#allocation55_spill] sm:$0xff] %v9503_v31 }
 0x38e   : > { %4228 = vmatmul.mubr.bf16.gmra.mrb[44].mxu1 %v9356_v17  ;;  %v9567_v17 = vld [vmem:[#allocation3 + $0xd8] sm:$0xff] }
 0x38f   : > { %4235 = vmatprep.mubr.bf16.mxu1 %v3898_v53  ;;  %v3708_v53 = vsel %vm3216_vm3, %v9214_v20, %v3707_v3  ;;  %v3711_v20 = vsel %vm3216_vm3, %v3709_v38, %v3710_v56  ;;  %v3713_v3 = vsel %vm3216_vm3, %v3710_v56, %v3712_v8  ;;  %v9481_v56 = vrot.slane %v10851_v47, 2 }
 0x390   : > { %v3901_v26 = vpack.c.bf16 %v3708_v53, %v9310_v6  ;;  %v3904_v12 = vpack.c.bf16 %v3713_v3, %v3711_v20  ;;  %v9471_v53 = vrot.slane %v7908_v4, 2  ;;  %v3759_v20 = vrot.slane %v10853_v25, 2  ;;  %v10854_v3 = vld [vmem:[#allocation15_spill] sm:$0xff]  ;;  %v9509_v25 = vld [vmem:[#allocation3 + $0x90] sm:$0xff] }
 0x391   : > { %10852 = vst [vmem:[#allocation52_spill] sm:$0xff] %v9481_v56  ;;  %v3772_v4 = vrot.slane %v10854_v3, 2  ;;  %10862 = vst [vmem:[#allocation50_spill] sm:$0xff] %v9509_v25  ;;  %v5099_v3 = vrot.slane %v9416_v42, 2  ;;  %v7861_v42 = vld [vmem:[%s10571_s3] sm:$0xff]  }
 0x392   : > { %10848 = vst [vmem:[#allocation43_spill] sm:$0xff] %v9471_v53  ;;  %v3750_v8 = vsel %vm3329_vm4, %v9471_v53, %v3749_v51  ;;  %v3760_v47 = vsel %vm3329_vm4, %v9481_v56, %v3759_v20  ;;  %v9516_v20 = vld [vmem:[#allocation3 + $0x88] sm:$0x3] }
 0x393   : > { %v9501_v61 = vsel %vm3329_vm4, %v3772_v4, %v3774_v36  ;;  %10865 = vst [vmem:[#allocation46_spill] sm:$0xff] %v9516_v20  ;;  %v5114_v29 = vrot.slane %v9516_v20, 2  ;;  %v10876_v20 = vld [vmem:[#allocation7_spill] sm:$0xff] }
 0x394   : > { %10879 = vst [vmem:[#allocation7_spill] sm:$0xff] %v9567_v17 }
 0x396   : > { %4236 = vmatmul.mubr.bf16.gmra.mrb[48].mxu1 %v9457_v41  ;;  %v10875_v41 = vld [vmem:[#allocation5_spill] sm:$0xff] }
 0x397   : > { %4243 = vmatprep.mubr.bf16.mxu1 %v3901_v26  ;;  %v3746_v26 = vrot.slane %v7909_v46, 2  ;;  %v10856_v46 = vld [vmem:[#allocation8_spill] sm:$0xff]  ;;  %v10877_v2 = vpack.c.bf16 %v10875_v41, %v10876_v20  ;;  %v9583_v41 = vld [vmem:[#allocation3 + $0xe8] sm:$0x3] }
 0x398   : > { %10883 = vst [vmem:[#allocation79_spill] sm:$0xff] %v9583_v41  ;;  %v9585_v20 = vld [vmem:[#allocation3 + $0xf0] sm:$0xff] }
 0x399   : > { %v9476_v38 = vsel %vm3329_vm4, %v3746_v26, %v9471_v53  ;;  %v3756_v26 = vrot.slane %v10856_v46, 2  ;;  %v9523_v46 = vld [vmem:[#allocation3 + $0xa0] sm:$0x3]  ;;  %10884 = vst [vmem:[#allocation80_spill] sm:$0xff] %v9585_v20 }
 0x39a   : > { %10850 = vst [vmem:[#allocation47_spill] sm:$0xff] %v9476_v38  ;;  %10866 = vst [vmem:[#allocation4_spill] sm:$0xff] %v9523_v46 }
 0x39b   : > { %v9493_v51 = vsel %vm3329_vm4, %v3756_v26, %v9481_v56  ;;  %v9527_v26 = vsel %vm3329_vm4, %v9319_v0, %v5099_v3  ;;  %v9532_v56 = vld [vmem:[#allocation3 + $0xa8] sm:$0xff]  ;;  %v7862_v0 = vld [vmem:[%s10571_s3 + $0x48] sm:$0xff]   ;;  %v9542_v3 = vld [vmem:[#allocation3 + $0xb0] sm:$0xff] }
 0x39c   : > { %10858 = vst [vmem:[#allocation54_spill] sm:$0xff] %v9493_v51  ;;  %10867 = vst [vmem:[#allocation10_spill] sm:$0xff] %v9527_v26  ;;  %v9548_v26 = vld [vmem:[#allocation3 + $0xb8] sm:$0x3] }
 0x39d   : > { %10868 = vst [vmem:[#allocation11_spill] sm:$0xff] %v9532_v56  ;;  %10869 = vst [vmem:[#allocation15_spill] sm:$0xff] %v9542_v3 }
 0x39e   : > { %4244 = vmatmul.mubr.bf16.gmra.mrb[52].mxu1 %v9468_v39  ;;  %v3771_v39 = vrot.slane %v10857_v16, 2  ;;  %v9507_v16 = vld [vmem:[#allocation3 + $0x70] sm:$0x3]  ;;  %10870 = vst [vmem:[#allocation16_spill] sm:$0xff] %v9548_v26 }
 0x39f   : > { %4251 = vmatprep.mubr.bf16.mxu1 %v3904_v12  ;;  %v3860_v12 = vpack.c.bf16 %v3750_v8, %v9476_v38  ;;  %v9505_v8 = vld [vmem:[#allocation3 + $0x68] sm:$0xff]  ;;  %10861 = vst [vmem:[#allocation40_spill] sm:$0xff] %v9507_v16  ;;  %v5109_v38 = vrot.slane %v9507_v16, 2 }
 0x3a0   : > { %v9498_v37 = vsel %vm3329_vm4, %v3771_v39, %v3772_v4  ;;  %10860 = vst [vmem:[#allocation39_spill] sm:$0xff] %v9505_v8  ;;  %v3866_v39 = vpack.c.bf16 %v3760_v47, %v9493_v51  ;;  %v9521_v4 = vld [vmem:[#allocation3 + $0x98] sm:$0xff]  ;;  %v5106_v51 = vrot.slane %v9503_v31, 2  ;;  %v5107_v36 = vrot.slane %v9505_v8, 2  ;;  %v9550_v31 = vld [vmem:[#allocation3 + $0xc0] sm:$0xff]  ;;  %v9552_v8 = vld [vmem:[#allocation3 + $0xc8] sm:$0xff] }
 0x3a1   : > { %v5116_v47 = vrot.slane %v9509_v25, 2  ;;  %10871 = vst [vmem:[#allocation8_spill] sm:$0xff] %v9550_v31  ;;  %10872 = vst [vmem:[#allocation18_spill] sm:$0xff] %v9552_v8  ;;  %v9565_v25 = vld [vmem:[#allocation3 + $0xd0] sm:$0x3] }
 0x3a2   : > { %v9555_v16 = vsel %vm3329_vm4, %v5106_v51, %v5107_v36  ;;  %v9558_v52 = vsel %vm3329_vm4, %v5107_v36, %v5109_v38  ;;  %10878 = vst [vmem:[#allocation5_spill] sm:$0xff] %v9565_v25  ;;  %v5124_v51 = vrot.slane %v9548_v26, 2  ;;  %v9635_v26 = vld [vmem:[#allocation3 + $0x130] sm:$0x3] }
 0x3a3   : > { %10873 = vst [vmem:[#allocation74_spill] sm:$0xff] %v9555_v16  ;;  %10874 = vst [vmem:[#allocation75_spill] sm:$0xff] %v9558_v52  ;;  %v5131_v52 = vrot.slane %v9567_v17, 2  ;;  %v7865_v16 = vld [vmem:[%s10571_s3 + $0x10] sm:$0xff]   ;;  %v5136_v17 = vrot.slane %v9585_v20, 2  ;;  %v9649_v20 = vld [vmem:[#allocation3 + $0x138] sm:$0xff] }
 0x3a4   : > { %10897 = vst [vmem:[#allocation93_spill] sm:$0xff] %v9635_v26  ;;  %10900 = vst [vmem:[#allocation96_spill] sm:$0xff] %v9649_v20 }
 0x3a6   : > { %4252 = vmatmul.mubr.bf16.gmra.mrb[56].mxu1 %v3903_v62  ;;  %v9512_v62 = vld [vmem:[#allocation3 + $0x78] sm:$0xff] }
 0x3a7   : > { %7258 = vmatprep.mubr.bf16.mxu1 %v3860_v12  ;;  %10863 = vst [vmem:[#allocation51_spill] sm:$0xff] %v9512_v62  ;;  %v9514_v12 = vld [vmem:[#allocation3 + $0x80] sm:$0xff]  ;;  %v5111_v53 = vrot.slane %v9512_v62, 2  ;;  %v5117_v62 = vrot.slane %v9521_v4, 2 }
 0x3a8   : > { %10864 = vst [vmem:[#allocation49_spill] sm:$0xff] %v9514_v12  ;;  %v5112_v6 = vrot.slane %v9514_v12, 2  ;;  %v5119_v12 = vrot.slane %v9523_v46, 2  ;;  %v5121_v46 = vrot.slane %v9532_v56, 2  ;;  %v5132_v56 = vrot.slane %v9569_v7, 2  ;;  %v9631_v7 = vld [vmem:[#allocation3 + $0x120] sm:$0xff] }
 0x3a9   : > { %10895 = vst [vmem:[#allocation91_spill] sm:$0xff] %v9631_v7 }
 0x3aa   : > { %v9574_v38 = vsel %vm3329_vm4, %v5111_v53, %v5112_v6  ;;  %v9577_v36 = vsel %vm3329_vm4, %v5112_v6, %v5114_v29  ;;  %v9590_v53 = vsel %vm3329_vm4, %v5116_v47, %v5117_v62  ;;  %v9593_v6 = vsel %vm3329_vm4, %v5117_v62, %v5119_v12  ;;  %v9606_v62 = vld [vmem:[#allocation3 + $0x100] sm:$0x3]  ;;  %v9608_v12 = vld [vmem:[#allocation3 + $0x108] sm:$0xff] }
 0x3ab   : > { %10881 = vst [vmem:[#allocation77_spill] sm:$0xff] %v9574_v38  ;;  %10882 = vst [vmem:[#allocation78_spill] sm:$0xff] %v9577_v36  ;;  %v5122_v29 = vrot.slane %v9542_v3, 2  ;;  %v5126_v47 = vrot.slane %v9550_v31, 2  ;;  %v5127_v38 = vrot.slane %v9552_v8, 2  ;;  %v5129_v36 = vrot.slane %v9565_v25, 2 }
 0x3ac   : > { %10885 = vst [vmem:[#allocation81_spill] sm:$0xff] %v9590_v53  ;;  %10886 = vst [vmem:[#allocation82_spill] sm:$0xff] %v9593_v6  ;;  %v9619_v53 = vld [vmem:[#allocation3 + $0x110] sm:$0xff]  ;;  %v9621_v6 = vld [vmem:[#allocation3 + $0x118] sm:$0x3]  ;;  %v5134_v25 = vrot.slane %v9583_v41, 2 }
 0x3ad   : > { %10888 = vst [vmem:[#allocation84_spill] sm:$0xff] %v9606_v62  ;;  %10889 = vst [vmem:[#allocation85_spill] sm:$0xff] %v9608_v12  ;;  %v9624_v31 = vsel %vm3329_vm4, %v5122_v29, %v5124_v51  ;;  %v9633_v8 = vld [vmem:[#allocation3 + $0x128] sm:$0xff]  ;;  %v9640_v51 = vsel %vm3329_vm4, %v5127_v38, %v5129_v36 }
 0x3ae   : > { %7259 = vmatmul.mubr.bf16.vlgmr.msra.gmra.mrb[60].mxu1 %v10877_v2  ;;  %v7863_v2 = vld [vmem:[%s10571_s3 + $0x8] sm:$0xff]   ;;  %10891 = vst [vmem:[#allocation87_spill] sm:$0xff] %v9619_v53  ;;  %10892 = vst [vmem:[#allocation88_spill] sm:$0xff] %v9621_v6  ;;  %v9654_v3 = vsel %vm3329_vm4, %v5132_v56, %v5134_v25  ;;  %v7867_v36 = vld [vmem:[%s10571_s3 + $0x18] sm:$0xff]   ;;  %v5144_v25 = vrot.slane %v9621_v6, 2 }
 0x3af   : > { %6665 = vmatpush3.bf16.msra.mxu1 %v7861_v42  ;;  %7262 = vmatprep.mubr.bf16.mxu1 %v3866_v39  ;;  %v7864_v39 = vld [vmem:[%s10571_s3 + $0x50] sm:$0xff]   ;;  %v9599_v42 = vld [vmem:[#allocation3 + $0xf8] sm:$0xff]  ;;  %10893 = vst [vmem:[#allocation89_spill] sm:$0xff] %v9624_v31  ;;  %10896 = vst [vmem:[#allocation92_spill] sm:$0xff] %v9633_v8  ;;  %v5146_v31 = vrot.slane %v9631_v7, 2 }
 0x3b0   : > { %6666 = vmatprep.subr.bf16.mxu1 %v7862_v0  ;;  %10887 = vst [vmem:[#allocation83_spill] sm:$0xff] %v9599_v42  ;;  %v9611_v0 = vsel %vm3329_vm4, %v5121_v46, %v5122_v29  ;;  %v9627_v46 = vsel %vm3329_vm4, %v5126_v47, %v5127_v38  ;;  %10898 = vst [vmem:[#allocation94_spill] sm:$0xff] %v9640_v51  ;;  %v9643_v29 = vsel %vm3329_vm4, %v5131_v52, %v5132_v56 }
 0x3b1   : > { %10890 = vst [vmem:[#allocation86_spill] sm:$0xff] %v9611_v0  ;;  %10894 = vst [vmem:[#allocation90_spill] sm:$0xff] %v9627_v46  ;;  %v5137_v47 = vrot.slane %v9599_v42, 2  ;;  %v5139_v38 = vrot.slane %v9606_v62, 2  ;;  %v5141_v52 = vrot.slane %v9608_v12, 2  ;;  %v9663_v0 = vld [vmem:[#allocation3 + $0x150] sm:$0xff] }
 0x3b2   : > { %10899 = vst [vmem:[#allocation95_spill] sm:$0xff] %v9643_v29  ;;  %10901 = vst [vmem:[#allocation97_spill] sm:$0xff] %v9654_v3  ;;  %v5142_v56 = vrot.slane %v9619_v53, 2  ;;  %v10903_v46 = vld [vmem:[#allocation13_spill] sm:$0xff]  ;;  %v9675_v12 = vld [vmem:[#allocation3 + $0x148] sm:$0x3] }
 0x3b3   : > { %6667 = vmatpush3.bf16.msra.mxu1 %v7863_v2  ;;  %v7866_v2 = vld [vmem:[%s10571_s3 + $0x58] sm:$0xff]   ;;  %v9668_v41 = vsel %vm3329_vm4, %v5136_v17, %v5137_v47  ;;  %v10904_v51 = vpack.c.bf16 %v10903_v46, %v8780_v5  ;;  %v9677_v62 = vld [vmem:[#allocation3 + $0x158] sm:$0xff]  ;;  %v9680_v42 = vsel %vm3329_vm4, %v5137_v47, %v5139_v38  ;;  %v5147_v17 = vrot.slane %v9633_v8, 2  ;;  %v9688_v46 = vld [vmem:[#allocation3 + $0x160] sm:$0x3] }
 0x3b4   : > { %6668 = vmatprep.subr.bf16.mxu1 %v7864_v39  ;;  %v9661_v39 = vld [vmem:[#allocation3 + $0x140] sm:$0xff]  ;;  %10902 = vst [vmem:[#allocation98_spill] sm:$0xff] %v9668_v41  ;;  %10905 = vst [vmem:[#allocation13_spill] sm:$0xff] %v9680_v42  ;;  %v5149_v29 = vrot.slane %v9635_v26, 2  ;;  %v10906_v3 = vld [vmem:[#allocation19_spill] sm:$0xff]  ;;  %v9697_v38 = vsel %vm3329_vm4, %v5141_v52, %v5142_v56  ;;  %v9700_v7 = vsel %vm3329_vm4, %v5142_v56, %v5144_v25  ;;  %v5151_v26 = vrot.slane %v9649_v20, 2 }
 0x3b5   : > { %v10907_v6 = vpack.c.bf16 %v10906_v3, %v8830_v59  ;;  %v9692_v53 = vld [vmem:[#allocation3 + $0x170] sm:$0xff]  ;;  %10910 = vst [vmem:[#allocation100_spill] sm:$0xff] %v9697_v38  ;;  %10911 = vst [vmem:[#allocation101_spill] sm:$0xff] %v9700_v7  ;;  %v9706_v3 = vld [vmem:[#allocation3 + $0x178] sm:$0x3]  ;;  %v9713_v52 = vsel %vm3329_vm4, %v5146_v31, %v5147_v17  ;;  %v5152_v25 = vrot.slane %v9661_v39, 2 }
 0x3b6   : > { %7263 = vmatmul.mubr.bf16.gmra.mrb[64].mxu1 %v10904_v51  ;;  %v9690_v51 = vld [vmem:[#allocation3 + $0x168] sm:$0xff]  ;;  %10909 = vst [vmem:[#allocation99_spill] sm:$0xff] %v9692_v53  ;;  %10912 = vst [vmem:[#allocation102_spill] sm:$0xff] %v9706_v3  ;;  %v9716_v56 = vsel %vm3329_vm4, %v5147_v17, %v5149_v29  ;;  %v5154_v42 = vrot.slane %v9675_v12, 2  ;;  %v5156_v20 = vrot.slane %v9663_v0, 2  ;;  %v5157_v8 = vrot.slane %v9677_v62, 2 }
 0x3b7   : > { %7266 = vmatprep.mubr.bf16.mxu1 %v10907_v6  ;;  %6669 = vmatpush3.bf16.msra.mxu1 %v7865_v16  ;;  %10908 = vst [vmem:[#allocation19_spill] sm:$0xff] %v9690_v51  ;;  %v7868_v16 = vld [vmem:[%s10571_s3 + $0x60] sm:$0xff]   ;;  %v9708_v6 = vld [vmem:[#allocation3 + $0x180] sm:$0xff]  ;;  %10914 = vst [vmem:[#allocation104_spill] sm:$0xff] %v9713_v52  ;;  %v9729_v31 = vsel %vm3329_vm4, %v5151_v26, %v5152_v25  ;;  %v5159_v29 = vrot.slane %v9688_v46, 2  ;;  %v5161_v17 = vrot.slane %v9690_v51, 2 }
 0x3b8   : > { %6670 = vmatprep.subr.bf16.mxu1 %v7866_v2  ;;  %10913 = vst [vmem:[#allocation103_spill] sm:$0xff] %v9708_v6  ;;  %10915 = vst [vmem:[#allocation105_spill] sm:$0xff] %v9716_v56  ;;  %v9719_v2 = vld [vmem:[#allocation3 + $0x188] sm:$0xff]  ;;  %v9726_v47 = vld [vmem:[#allocation3 + $0x190] sm:$0x3]  ;;  %v5162_v38 = vrot.slane %v9692_v53, 2  ;;  %v9738_v52 = vsel %vm3329_vm4, %v5152_v25, %v5154_v42  ;;  %v9741_v56 = vsel %vm3329_vm4, %v5156_v20, %v5157_v8 }
 0x3b9   : > { %10916 = vst [vmem:[#allocation106_spill] sm:$0xff] %v9729_v31  ;;  %v7869_v41 = vld [vmem:[%s10571_s3 + $0x20] sm:$0xff]   ;;  %10917 = vst [vmem:[#allocation107_spill] sm:$0xff] %v9738_v52  ;;  %v5164_v26 = vrot.slane %v9706_v3, 2  ;;  %v5166_v7 = vrot.slane %v9708_v6, 2  ;;  %v7870_v51 = vld [vmem:[%s10571_s3 + $0x68] sm:$0xff]   ;;  %v9751_v53 = vsel %vm3329_vm4, %v5157_v8, %v5159_v29  ;;  %v10922_v3 = vpack.c.bf16 %v9501_v61, %v9498_v37 }
 0x3ba   : > { %10918 = vst [vmem:[#allocation108_spill] sm:$0xff] %v9741_v56  ;;  %10919 = vst [vmem:[#allocation109_spill] sm:$0xff] %v9751_v53  ;;  %v9754_v42 = vsel %vm3329_vm4, %v5161_v17, %v5162_v38  ;;  %v5167_v20 = vrot.slane %v9719_v2, 2  ;;  %v5169_v6 = vrot.slane %v9726_v47, 2  ;;  %v10924_v17 = vld [vmem:[#allocation22_spill] sm:$0xff]  ;;  %v10944_v25 = vld [vmem:[#allocation57_spill] sm:$0xff] }
 0x3bb   : > { %6671 = vmatpush3.bf16.msra.mxu1 %v7867_v36  ;;  %10920 = vst [vmem:[#allocation110_spill] sm:$0xff] %v9754_v42  ;;  %v10925_v36 = vpack.c.bf16 %v10924_v17, %v8876_v14  ;;  %v7872_v37 = vld [vmem:[%s10571_s3 + $0x70] sm:$0xff]   ;;  %v7876_v17 = vld [vmem:[%s10571_s3 + $0x80] sm:$0xff]  }
 0x3bc   : > { %6672 = vmatprep.subr.bf16.mxu1 %v7868_v16  ;;  %v9760_v16 = vsel %vm3329_vm4, %v5162_v38, %v5164_v26  ;;  %v9769_v29 = vsel %vm3329_vm4, %v5166_v7, %v5167_v20  ;;  %v7871_v38 = vld [vmem:[%s10571_s3 + $0x28] sm:$0xff]   ;;  %v9778_v26 = vsel %vm3329_vm4, %v5167_v20, %v5169_v6  ;;  %v7873_v61 = vld [vmem:[%s10571_s3 + $0x30] sm:$0xff]   ;;  %v10929_v6 = vld [vmem:[#allocation28_spill] sm:$0xff] }
 0x3bd   : > { %10921 = vst [vmem:[#allocation111_spill] sm:$0xff] %v9760_v16  ;;  %10923 = vst [vmem:[#allocation112_spill] sm:$0xff] %v9769_v29  ;;  %v7875_v20 = vld [vmem:[%s10571_s3 + $0x38] sm:$0xff]   ;;  %v9815_v7 = vld [vmem:[#allocation3 + $0x10] sm:$0x3] }
 0x3be   : > { %7267 = vmatmul.mubr.bf16.gmra.mrb[68].mxu1 %v10922_v3  ;;  %10926 = vst [vmem:[#allocation22_spill] sm:$0xff] %v9778_v26  ;;  %v10927_v3 = vld [vmem:[#allocation26_spill] sm:$0xff]  ;;  %v10977_v16 = vld [vmem:[#allocation59_spill] sm:$0xff] }
 0x3bf   : > { %7270 = vmatprep.mubr.bf16.mxu1 %v10925_v36  ;;  %6673 = vmatpush3.bf16.msra.mxu1 %v7869_v41  ;;  %v7874_v41 = vld [vmem:[%s10571_s3 + $0x78] sm:$0xff]   ;;  %v10930_v36 = vpack.c.bf16 %v10929_v6, %v10819_v27 }
 0x3c0   : > { %6674 = vmatprep.subr.bf16.mxu1 %v7870_v51  ;;  %v10928_v51 = vpack.c.bf16 %v10927_v3, %v10816_v58  ;;  %v10933_v3 = vld [vmem:[#allocation36_spill] sm:$0xff] }
 0x3c3   : > { %6675 = vmatpush3.bf16.msra.mxu1 %v7871_v38  ;;  %v10931_v38 = vld [vmem:[#allocation33_spill] sm:$0xff] }
 0x3c4   : > { %6676 = vmatprep.subr.bf16.mxu1 %v7872_v37  ;;  %v10932_v37 = vpack.c.bf16 %v10931_v38, %v10822_v15  ;;  %v3220_v38 = vrot.slane %v9815_v7, 1 }
 0x3c6   : > { %7271 = vmatmul.mubr.bf16.gmra.mrb[72].mxu1 %v10928_v51  ;;  %v10934_v51 = vpack.c.bf16 %v10933_v3, %v10825_v49 }
 0x3c7   : > { %7274 = vmatprep.mubr.bf16.mxu1 %v10930_v36  ;;  %6677 = vmatpush3.bf16.msra.mxu1 %v7873_v61  ;;  %v10935_v61 = vld [vmem:[#allocation42_spill] sm:$0xff]  ;;  %v10937_v36 = vld [vmem:[#allocation44_spill] sm:$0xff] }
 0x3c8   : > { %6678 = vmatprep.subr.bf16.mxu1 %v7874_v41  ;;  %v10936_v6 = vpack.c.bf16 %v10935_v61, %v10828_v34  ;;  %v10938_v41 = vpack.c.bf16 %v10937_v36, %v10831_v10 }
 0x3cb   : > { %6679 = vmatpush3.bf16.msra.mxu1 %v7875_v20  ;;  %v9817_v20 = vld [vmem:[#allocation3] sm:$0xff] }
 0x3cc   : > { %7290 = vmatprep.subr.bf16.mxu1 %v7876_v17  ;;  %v9820_v8 = vrot.slane %v9817_v20, 1  ;;  %v9837_v26 = vpack.c.bf16 %v9817_v20, %v9817_v20 }
 0x3ce   : > { %7275 = vmatmul.mubr.bf16.gmra.mrb[76].mxu1 %v10932_v37  ;;  %v10939_v37 = vld [vmem:[#allocation53_spill] sm:$0xff]  ;;  %10946 = vst [vmem:[#allocation26_spill] sm:$0xff] %v9837_v26 }
 0x3cf   : > { %7278 = vmatprep.mubr.bf16.mxu1 %v10934_v51  ;;  %v10940_v3 = vpack.c.bf16 %v10939_v37, %v10835_v48  ;;  %v10941_v51 = vld [vmem:[#allocation56_spill] sm:$0xff]  ;;  %v7877_v37 = vld [vmem:[%s10571_s3 + $0x88] sm:$0xff]  }
 0x3d0   : > { %v10942_v61 = vpack.c.bf16 %v10941_v51, %v10838_v21  ;;  %v10948_v51 = vld [vmem:[#allocation6_spill] sm:$0xff] }
 0x3d6   : > { %7279 = vmatmul.mubr.bf16.gmra.mrb[80].mxu1 %v10936_v6  ;;  %v3221_v6 = vsel %vm3216_vm3, %v9820_v8, %v3220_v38  ;;  %v10947_v38 = vld [vmem:[#allocation60_spill] sm:$0xff] }
 0x3d7   : > { %7282 = vmatprep.mubr.bf16.mxu1 %v10938_v41  ;;  %v3443_v36 = vpack.c.bf16 %v3221_v6, %v9820_v8  ;;  %v10943_v41 = vld [vmem:[#allocation58_spill] sm:$0xff]  ;;  %v7879_v6 = vld [vmem:[%s10571_s3 + $0x98] sm:$0xff]  }
 0x3d8   : > { %v10945_v29 = vpack.c.bf16 %v10943_v41, %v10944_v25  ;;  %v7878_v25 = vld [vmem:[%s10571_s3 + $0x90] sm:$0xff]   ;;  %v7881_v41 = vld [vmem:[%s10571_s3 + $0xa8] sm:$0xff]  }
 0x3de   : > { %7283 = vmatmul.mubr.bf16.gmra.mrb[84].mxu1 %v10940_v3  ;;  %v3230_v3 = vrot.slane %v9281_v18, 1 }
 0x3df   : > { %7286 = vmatprep.mubr.bf16.mxu1 %v10942_v61  ;;  %v10949_v61 = vpack.c.bf16 %v10947_v38, %v10948_v51  ;;  %v10953_v38 = vpack.c.bf16 %v9222_v24, %v8747_v32 }
 0x3e6   : > { %7287 = vmatmul.mubr.bf16.gmra.mrb[88].mxu1 %v10945_v29  ;;  %v3231_v29 = vsel %vm3216_vm3, %v9376_v11, %v3230_v3  ;;  %v9862_v11 = vpack.c.bf16 %v9279_v28, %v8989_v54  ;;  %v7882_v3 = vld [vmem:[%s10571_s3 + $0xb0] sm:$0xff]   ;;  %v7883_v54 = vld [vmem:[%s10571_s3 + $0xb8] sm:$0xff]   ;;  %v10952_v28 = vld [vmem:[#allocation12_spill] sm:$0xff] }
 0x3e7   : > { %4597 = vmatprep.mubr.bf16.mxu1 %v3443_v36  ;;  %v3449_v18 = vpack.c.bf16 %v3231_v29, %v9436_v33  ;;  %v7880_v36 = vld [vmem:[%s10571_s3 + $0xa0] sm:$0xff]  }
 0x3ee   : > { %4598 = vmatmul.mubr.bf16.vlgmr.msra.gmra.mrb[92].mxu1 %v9837_v26 }
 0x3ef   : > { %7291 = vmatpush3.bf16.msra.mxu1 %v7876_v17  ;;  %4605 = vmatprep.mubr.bf16.mxu1 %v10949_v61  ;;  %v10950_v17 = vld [vmem:[#allocation9_spill] sm:$0xff] }
 0x3f0   : > { %7292 = vmatprep.subr.bf16.mxu1 %v7877_v37 }
 0x3f3   : > { %7293 = vmatpush3.bf16.msra.mxu1 %v7877_v37  ;;  %v10951_v37 = vpack.c.bf16 %v9218_v55, %v8752_v50  ;;  %v7884_v55 = vld [vmem:[%s10571_s3 + $0x1c0] sm:$0xff]  }
 0x3f4   : > { %7294 = vmatprep.subr.bf16.mxu1 %v7878_v25 }
 0x3f6   : > { %4606 = vmatmul.mubr.bf16.gmra.mrb[96].mxu1 %v10950_v17 }
 0x3f7   : > { %4613 = vmatprep.mubr.bf16.mxu1 %v3449_v18  ;;  %7295 = vmatpush3.bf16.msra.mxu1 %v7878_v25 }
 0x3f8   : > { %7296 = vmatprep.subr.bf16.mxu1 %v7879_v6 }
 0x3fb   : > { %7297 = vmatpush3.bf16.msra.mxu1 %v7879_v6 }
 0x3fc   : > { %7298 = vmatprep.subr.bf16.mxu1 %v7880_v36 }
 0x3fe   : > { %4614 = vmatmul.mubr.bf16.gmra.mrb[100].mxu1 %v9862_v11 }
 0x3ff   : > { %4621 = vmatprep.mubr.bf16.mxu1 %v10951_v37  ;;  %7299 = vmatpush3.bf16.msra.mxu1 %v7880_v36 }
 0x400   : > { %7300 = vmatprep.subr.bf16.mxu1 %v7881_v41 }
 0x403   : > { %7301 = vmatpush3.bf16.msra.mxu1 %v7881_v41  ;;  %v10954_v41 = vld [vmem:[#allocation17_spill] sm:$0xff] }
 0x404   : > { %7302 = vmatprep.subr.bf16.mxu1 %v7882_v3 }
 0x406   : > { %4622 = vmatmul.mubr.bf16.gmra.mrb[104].mxu1 %v10952_v28 }
 0x407   : > { %4629 = vmatprep.mubr.bf16.mxu1 %v10953_v38  ;;  %7303 = vmatpush3.bf16.msra.mxu1 %v7882_v3  ;;  %v10955_v3 = vld [vmem:[#allocation14_spill] sm:$0xff] }
 0x408   : > { %v6550_v50 = vpop.f32.mrb[0].mxu1  ;;  %7304 = vmatprep.subr.bf16.mxu1 %v7883_v54  ;;  %v10956_v28 = vpack.c.bf16 %v9226_v60, %v10955_v3 }
 0x409   : > { %v6551_v51 = vpop.f32.mrb[1].mxu1 }
 0x40a   : > { %v9884_v61 = vadd.f32 %v6551_v51, %v6550_v50  ;;  %v6553_v25 = vpop.f32.mrb[2].mxu1 }
 0x40b   : > { %v6544_v29 = vpop.f32.mrb[32].mxu0  ;;  %v6554_v6 = vpop.f32.mrb[3].mxu1  ;;  %7305 = vmatpush3.bf16.msra.mxu1 %v7883_v54 }
 0x40c   : > { %v6545_v18 = vpop.f32.mrb[33].mxu0  ;;  %v9886_v17 = vadd.f32 %v6554_v6, %v6553_v25  ;;  %6800 = vmatprep.subr.bf16.mxu1 %v7884_v55  ;;  %v10957_v55 = vld [vmem:[#allocation21_spill] sm:$0xff] }
 0x40d   : > { %v9888_v32 = vadd.f32 %v6545_v18, %v6544_v29  ;;  %v6547_v24 = vpop.f32.mrb[34].mxu0  ;;  %v10958_v29 = vld [vmem:[#allocation62_spill] sm:$0xff]  ;;  %v10959_v18 = vld [vmem:[#allocation20_spill] sm:$0xff] }
 0x40e   : > { %v6548_v36 = vpop.f32.mrb[35].mxu0  ;;  %4630 = vmatmul.mubr.bf16.gmra.mrb[108].mxu1 %v10954_v41  ;;  %v10960_v42 = vpack.c.bf16 %v10958_v29, %v10959_v18 }
 0x40f   : > { %v9891_v37 = vadd.f32 %v6548_v36, %v6547_v24  ;;  %4637 = vmatprep.mubr.bf16.mxu1 %v10956_v28 }
 0x411   : > { %v6556_v38 = vpop.f32.mrb[4].mxu1 }
 0x412   : > { %v6557_v50 = vpop.f32.mrb[5].mxu1 }
 0x413   : > { %v9896_v51 = vadd.f32 %v6557_v50, %v6556_v38  ;;  %v6559_v54 = vpop.f32.mrb[6].mxu1  ;;  %v10961_v38 = vld [vmem:[#allocation23_spill] sm:$0xff]  ;;  %v10962_v50 = vpack.c.bf16 %v9256_v43, %v8901_v13 }
 0x414   : > { %v6560_v25 = vpop.f32.mrb[7].mxu1 }
 0x415   : > { %v9898_v6 = vadd.f32 %v6560_v25, %v6559_v54 }
 0x416   : > { %4638 = vmatmul.mubr.bf16.gmra.mrb[112].mxu1 %v10957_v55 }
 0x417   : > { %4645 = vmatprep.mubr.bf16.mxu1 %v10960_v42 }
 0x419   : > { %v6562_v24 = vpop.f32.mrb[8].mxu1 }
 0x41a   : > { %v6563_v36 = vpop.f32.mrb[9].mxu1 }
 0x41b   : > { %v9904_v41 = vadd.f32 %v6563_v36, %v6562_v24  ;;  %v6565_v60 = vpop.f32.mrb[10].mxu1  ;;  %v10963_v24 = vld [vmem:[#allocation29_spill] sm:$0xff]  ;;  %v10964_v36 = vpack.c.bf16 %v9260_v40, %v8935_v19 }
 0x41c   : > { %v6566_v3 = vpop.f32.mrb[11].mxu1 }
 0x41d   : > { %v9906_v28 = vadd.f32 %v6566_v3, %v6565_v60 }
 0x41e   : > { %4646 = vmatmul.mubr.bf16.gmra.mrb[116].mxu1 %v10961_v38 }
 0x41f   : > { %4653 = vmatprep.mubr.bf16.mxu1 %v10962_v50 }
 0x421   : > { %v6568_v54 = vpop.f32.mrb[12].mxu1 }
 0x422   : > { %v6569_v25 = vpop.f32.mrb[13].mxu1 }
 0x423   : > { %v9912_v55 = vadd.f32 %v6569_v25, %v6568_v54  ;;  %v6571_v29 = vpop.f32.mrb[14].mxu1  ;;  %v10965_v54 = vld [vmem:[#allocation34_spill] sm:$0xff]  ;;  %v10966_v25 = vpack.c.bf16 %v9264_v23, %v9024_v9 }
 0x424   : > { %v6572_v42 = vpop.f32.mrb[15].mxu1 }
 0x425   : > { %v9914_v18 = vadd.f32 %v6572_v42, %v6571_v29 }
 0x426   : > { %4654 = vmatmul.mubr.bf16.gmra.mrb[120].mxu1 %v10963_v24 }
 0x427   : > { %4661 = vmatprep.mubr.bf16.mxu1 %v10964_v36 }
 0x429   : > { %v6574_v60 = vpop.f32.mrb[16].mxu1 }
 0x42a   : > { %v6575_v3 = vpop.f32.mrb[17].mxu1 }
 0x42b   : > { %v9920_v38 = vadd.f32 %v6575_v3, %v6574_v60  ;;  %v6577_v13 = vpop.f32.mrb[18].mxu1  ;;  %v10967_v60 = vld [vmem:[#allocation48_spill] sm:$0xff]  ;;  %v10968_v3 = vpack.c.bf16 %v9275_v1, %v9030_v57 }
 0x42c   : > { %v6578_v43 = vpop.f32.mrb[19].mxu1 }
 0x42d   : > { %v9922_v50 = vadd.f32 %v6578_v43, %v6577_v13 }
 0x42e   : > { %4662 = vmatmul.mubr.bf16.gmra.mrb[124].mxu1 %v10965_v54 }
 0x42f   : > { %4669 = vmatprep.mubr.bf16.mxu1 %v10966_v25 }
 0x431   : > { %v6580_v29 = vpop.f32.mrb[20].mxu1 }
 0x432   : > { %v6581_v42 = vpop.f32.mrb[21].mxu1 }
 0x433   : > { %v9928_v24 = vadd.f32 %v6581_v42, %v6580_v29  ;;  %v6583_v40 = vpop.f32.mrb[22].mxu1  ;;  %v10969_v29 = vld [vmem:[#allocation45_spill] sm:$0xff]  ;;  %v10970_v42 = vpack.c.bf16 %v9287_v63, %v9119_v22 }
 0x434   : > { %v6584_v19 = vpop.f32.mrb[23].mxu1 }
 0x435   : > { %v9930_v36 = vadd.f32 %v6584_v19, %v6583_v40 }
 0x436   : > { %4670 = vmatmul.mubr.bf16.gmra.mrb[128].mxu1 %v10967_v60 }
 0x437   : > { %4677 = vmatprep.mubr.bf16.mxu1 %v10968_v3 }
 0x439   : > { %v6586_v13 = vpop.f32.mrb[24].mxu1 }
 0x43a   : > { %v6587_v43 = vpop.f32.mrb[25].mxu1 }
 0x43b   : > { %v9936_v54 = vadd.f32 %v6587_v43, %v6586_v13  ;;  %v6589_v23 = vpop.f32.mrb[26].mxu1  ;;  %v10971_v13 = vpack.c.bf16 %v9291_v35, %v9175_v45 }
 0x43c   : > { %v6590_v9 = vpop.f32.mrb[27].mxu1 }
 0x43d   : > { %v9938_v25 = vadd.f32 %v6590_v9, %v6589_v23 }
 0x43e   : > { %4678 = vmatmul.mubr.bf16.gmra.mrb[132].mxu1 %v10969_v29 }
 0x43f   : > { %4685 = vmatprep.mubr.bf16.mxu1 %v10970_v42  ;;  %v10972_v42 = vld [vmem:[#allocation63_spill] sm:$0xff] }
 0x441   : > { %v6592_v40 = vpop.f32.mrb[28].mxu1 }
 0x442   : > { %v6593_v19 = vpop.f32.mrb[29].mxu1 }
 0x443   : > { %v9944_v60 = vadd.f32 %v6593_v19, %v6592_v40  ;;  %v6595_v57 = vpop.f32.mrb[30].mxu1  ;;  %v10973_v40 = vld [vmem:[#allocation61_spill] sm:$0xff] }
 0x444   : > { %v6596_v1 = vpop.f32.mrb[31].mxu1  ;;  %v10974_v19 = vpack.c.bf16 %v10972_v42, %v10973_v40 }
 0x445   : > { %v9946_v3 = vadd.f32 %v6596_v1, %v6595_v57 }
 0x446   : > { %4686 = vmatmul.mubr.bf16.gmra.mrb[136].mxu1 %v9123_v30 }
 0x447   : > { %4693 = vmatprep.mubr.bf16.mxu1 %v10971_v13 }
 0x449   : > { %v6598_v43 = vpop.f32.mrb[32].mxu1 }
 0x44a   : > { %v6599_v23 = vpop.f32.mrb[33].mxu1 }
 0x44b   : > { %v9952_v9 = vadd.f32 %v6599_v23, %v6598_v43  ;;  %v6601_v63 = vpop.f32.mrb[34].mxu1  ;;  %v10975_v43 = vld [vmem:[#allocation70_spill] sm:$0xff]  ;;  %v10976_v23 = vld [vmem:[#allocation64_spill] sm:$0xff] }
 0x44c   : > { %v6602_v22 = vpop.f32.mrb[35].mxu1 }
 0x44d   : > { %v9954_v29 = vadd.f32 %v6602_v22, %v6601_v63  ;;  %v10978_v63 = vpack.c.bf16 %v10976_v23, %v10977_v16 }
 0x44e   : > { %4694 = vmatmul.mubr.bf16.gmra.mrb[140].mxu1 %v9352_v44 }
 0x44f   : > { %4701 = vmatprep.mubr.bf16.mxu1 %v10974_v19  ;;  %v3330_v19 = vrot.slane %v9817_v20, 2  ;;  %v7911_v20 = vld [vmem:[#allocation3 + $0x28] sm:$0x3] }
 0x450   : > { %v3338_v26 = vrot.slane %v7911_v20, 2 }
 0x451   : > { %v6604_v57 = vpop.f32.mrb[36].mxu1 }
 0x452   : > { %v6605_v30 = vpop.f32.mrb[37].mxu1 }
 0x453   : > { %v9960_v1 = vadd.f32 %v6605_v30, %v6604_v57  ;;  %v6607_v45 = vpop.f32.mrb[38].mxu1  ;;  %v3333_v57 = vrot.slane %v9815_v7, 2 }
 0x454   : > { %v6608_v35 = vpop.f32.mrb[39].mxu1 }
 0x455   : > { %v9962_v13 = vadd.f32 %v6608_v35, %v6607_v45  ;;  %v10979_v45 = vld [vmem:[#allocation41_spill] sm:$0xff]  ;;  %v10980_v35 = vld [vmem:[#allocation66_spill] sm:$0xff]  ;;  %v3334_v16 = vsel %vm3329_vm4, %v3330_v19, %v3333_v57 }
 0x456   : > { %4702 = vmatmul.mubr.bf16.gmra.mrb[144].mxu1 %v10975_v43  ;;  %v10981_v43 = vld [vmem:[#allocation65_spill] sm:$0xff]  ;;  %v3444_v31 = vpack.c.bf16 %v3334_v16, %v3330_v19  ;;  %v7885_v19 = vld [vmem:[%s10571_s3 + $0x180] sm:$0xff]  }
 0x457   : > { %4709 = vmatprep.mubr.bf16.mxu1 %v10978_v63  ;;  %v10982_v53 = vpack.c.bf16 %v10980_v35, %v10981_v43 }
 0x459   : > { %v6610_v22 = vpop.f32.mrb[40].mxu1 }
 0x45a   : > { %v6611_v44 = vpop.f32.mrb[41].mxu1 }
 0x45b   : > { %v9968_v56 = vadd.f32 %v6611_v44, %v6610_v22  ;;  %v6613_v42 = vpop.f32.mrb[42].mxu1 }
 0x45c   : > { %v6614_v40 = vpop.f32.mrb[43].mxu1 }
 0x45d   : > { %v9972_v30 = vadd.f32 %v6614_v40, %v6613_v42  ;;  %v10983_v42 = vld [vmem:[#allocation38_spill] sm:$0xff] }
 0x45e   : > { %4710 = vmatmul.mubr.bf16.gmra.mrb[148].mxu1 %v10979_v45  ;;  %v10984_v45 = vld [vmem:[#allocation43_spill] sm:$0xff] }
 0x45f   : > { %4717 = vmatprep.mubr.bf16.mxu1 %v10982_v53  ;;  %v3339_v53 = vsel %vm3329_vm4, %v10984_v45, %v3338_v26  ;;  %v10988_v26 = vld [vmem:[#allocation68_spill] sm:$0xff]  ;;  %v7887_v45 = vld [vmem:[%s10571_s3 + $0x188] sm:$0xff]  }
 0x461   : > { %v6616_v23 = vpop.f32.mrb[44].mxu1 }
 0x462   : > { %v6617_v63 = vpop.f32.mrb[45].mxu1 }
 0x463   : > { %v9979_v22 = vadd.f32 %v6617_v63, %v6616_v23  ;;  %v6619_v44 = vpop.f32.mrb[46].mxu1  ;;  %v10986_v23 = vld [vmem:[#allocation47_spill] sm:$0xff] }
 0x464   : > { %v6620_v52 = vpop.f32.mrb[47].mxu1  ;;  %v3447_v63 = vpack.c.bf16 %v3339_v53, %v10986_v23  ;;  %v7888_v53 = vld [vmem:[%s10571_s3 + $0x1d0] sm:$0xff]  }
 0x465   : > { %v9981_v7 = vadd.f32 %v6620_v52, %v6619_v44  ;;  %v7886_v52 = vld [vmem:[%s10571_s3 + $0x1c8] sm:$0xff]  }
 0x466   : > { %4718 = vmatmul.mubr.bf16.gmra.mrb[152].mxu1 %v10983_v42  ;;  %v7912_v44 = vld [vmem:[#allocation3 + $0x58] sm:$0x3]  ;;  %v10989_v42 = vld [vmem:[#allocation67_spill] sm:$0xff] }
 0x467   : > { %7306 = vmatprep.mubr.bf16.mxu1 %v3444_v31  ;;  %v3348_v20 = vrot.slane %v7912_v44, 2  ;;  %v7889_v44 = vld [vmem:[%s10571_s3 + $0x190] sm:$0xff]  }
 0x469   : > { %v6622_v40 = vpop.f32.mrb[48].mxu1 }
 0x46a   : > { %v6623_v35 = vpop.f32.mrb[49].mxu1 }
 0x46b   : > { %v9986_v57 = vadd.f32 %v6623_v35, %v6622_v40  ;;  %v6625_v43 = vpop.f32.mrb[50].mxu1  ;;  %v10990_v40 = vpack.c.bf16 %v10988_v26, %v10989_v42 }
 0x46c   : > { %v6626_v16 = vpop.f32.mrb[51].mxu1 }
 0x46d   : > { %10985 = vst [vmem:[#allocation28_spill] sm:$0xff] %v9986_v57  ;;  %v9995_v31 = vadd.f32 %v6626_v16, %v6625_v43  ;;  %v10991_v43 = vld [vmem:[#allocation52_spill] sm:$0xff] }
 0x46e   : > { %7307 = vmatmul.mubr.bf16.vlgmr.msra.gmra.mrb[60].mxu1 %v3447_v63  ;;  %v3349_v16 = vsel %vm3329_vm4, %v10991_v43, %v3348_v20  ;;  %v7913_v20 = vld [vmem:[#allocation3 + $0x98] sm:$0xff]  ;;  %v7914_v43 = vld [vmem:[#allocation3 + $0xa0] sm:$0x3] }
 0x46f   : > { %10987 = vst [vmem:[#allocation33_spill] sm:$0xff] %v9995_v31  ;;  %6801 = vmatpush3.bf16.msra.mxu1 %v7885_v19  ;;  %7310 = vmatprep.mubr.bf16.mxu1 %v10990_v40  ;;  %v10993_v40 = vld [vmem:[#allocation54_spill] sm:$0xff]  ;;  %v7890_v31 = vld [vmem:[%s10571_s3 + $0x1d8] sm:$0xff]  }
 0x470   : > { %6802 = vmatprep.subr.bf16.mxu1 %v7886_v52  ;;  %v3453_v52 = vpack.c.bf16 %v3349_v16, %v10993_v40  ;;  %v7915_v16 = vld [vmem:[#allocation3 + $0x90] sm:$0xff] }
 0x471   : > { %v6628_v35 = vpop.f32.mrb[52].mxu1  ;;  %v3360_v40 = vrot.slane %v7915_v16, 2 }
 0x472   : > { %v6629_v23 = vpop.f32.mrb[53].mxu1 }
 0x473   : > { %v10008_v63 = vadd.f32 %v6629_v23, %v6628_v35  ;;  %v6631_v19 = vpop.f32.mrb[54].mxu1  ;;  %6803 = vmatpush3.bf16.msra.mxu1 %v7887_v45  ;;  %v3361_v35 = vrot.slane %v7913_v20, 2  ;;  %v3363_v23 = vrot.slane %v7914_v43, 2  ;;  %v10995_v45 = vld [vmem:[#allocation69_spill] sm:$0xff] }
 0x474   : > { %v6632_v26 = vpop.f32.mrb[55].mxu1  ;;  %6804 = vmatprep.subr.bf16.mxu1 %v7888_v53  ;;  %v7891_v53 = vld [vmem:[%s10571_s3 + $0x198] sm:$0xff]  }
 0x475   : > { %10992 = vst [vmem:[#allocation36_spill] sm:$0xff] %v10008_v63  ;;  %v10017_v57 = vadd.f32 %v6632_v26, %v6631_v19  ;;  %v10996_v63 = vpack.c.bf16 %v10995_v45, %v8780_v5  ;;  %v7892_v19 = vld [vmem:[%s10571_s3 + $0x1e0] sm:$0xff]   ;;  %v3362_v20 = vsel %vm3329_vm4, %v3360_v40, %v3361_v35  ;;  %v3364_v43 = vsel %vm3329_vm4, %v3361_v35, %v3363_v23  ;;  %v10997_v40 = vld [vmem:[#allocation71_spill] sm:$0xff]  ;;  %v7895_v23 = vld [vmem:[%s10571_s3 + $0x1a8] sm:$0xff]  }
 0x476   : > { %7311 = vmatmul.mubr.bf16.gmra.mrb[64].mxu1 %v3453_v52  ;;  %v10998_v35 = vpack.c.bf16 %v10997_v40, %v8830_v59  ;;  %v7898_v59 = vld [vmem:[%s10571_s3 + $0x1f8] sm:$0xff]  }
 0x477   : > { %10994 = vst [vmem:[#allocation42_spill] sm:$0xff] %v10017_v57  ;;  %7314 = vmatprep.mubr.bf16.mxu1 %v10996_v63  ;;  %6805 = vmatpush3.bf16.msra.mxu1 %v7889_v44  ;;  %v7893_v44 = vld [vmem:[%s10571_s3 + $0x1a0] sm:$0xff]   ;;  %v3462_v57 = vpack.c.bf16 %v3364_v43, %v3362_v20  ;;  %v7899_v43 = vld [vmem:[%s10571_s3 + $0x1b8] sm:$0xff]  }
 0x478   : > { %6806 = vmatprep.subr.bf16.mxu1 %v7890_v31  ;;  %v7894_v31 = vld [vmem:[%s10571_s3 + $0x1e8] sm:$0xff]  }
 0x479   : > { %v6634_v26 = vpop.f32.mrb[56].mxu1 }
 0x47a   : > { %v6635_v52 = vpop.f32.mrb[57].mxu1 }
 0x47b   : > { %v10030_v5 = vadd.f32 %v6635_v52, %v6634_v26  ;;  %v6637_v63 = vpop.f32.mrb[58].mxu1  ;;  %6807 = vmatpush3.bf16.msra.mxu1 %v7891_v53  ;;  %v7896_v53 = vld [vmem:[%s10571_s3 + $0x1f0] sm:$0xff]   ;;  %v11001_v52 = vld [vmem:[#allocation73_spill] sm:$0xff] }
 0x47c   : > { %v6638_v45 = vpop.f32.mrb[59].mxu1  ;;  %6808 = vmatprep.subr.bf16.mxu1 %v7892_v19  ;;  %v7897_v19 = vld [vmem:[%s10571_s3 + $0x1b0] sm:$0xff]   ;;  %v11002_v20 = vpack.c.bf16 %v11001_v52, %v10816_v58 }
 0x47d   : > { %v10038_v16 = vadd.f32 %v6638_v45, %v6637_v63  ;;  %v7900_v63 = vld [vmem:[%s10571_s3 + $0x200] sm:$0xff]   ;;  %v11005_v45 = vld [vmem:[#allocation25_spill] sm:$0xff] }
 0x47e   : > { %7315 = vmatmul.mubr.bf16.gmra.mrb[68].mxu1 %v10998_v35  ;;  %v11006_v58 = vpack.c.bf16 %v11005_v45, %v10822_v15  ;;  %v11009_v35 = vld [vmem:[#allocation30_spill] sm:$0xff]  ;;  %v10087_v15 = vld [vmem:[#allocation3 + $0x58] sm:$0x3] }
 0x47f   : > { %7318 = vmatprep.mubr.bf16.mxu1 %v3462_v57  ;;  %6809 = vmatpush3.bf16.msra.mxu1 %v7893_v44  ;;  %v10999_v57 = vld [vmem:[#allocation72_spill] sm:$0xff]  ;;  %v7901_v45 = vld [vmem:[%s10571_s3 + $0x208] sm:$0xff]  }
 0x480   : > { %6810 = vmatprep.subr.bf16.mxu1 %v7894_v31  ;;  %v11000_v26 = vpack.c.bf16 %v10999_v57, %v8876_v14  ;;  %v11003_v44 = vld [vmem:[#allocation24_spill] sm:$0xff]  ;;  %v11007_v31 = vld [vmem:[#allocation27_spill] sm:$0xff] }
 0x481   : > { %v11004_v14 = vpack.c.bf16 %v11003_v44, %v10819_v27  ;;  %v11008_v40 = vpack.c.bf16 %v11007_v31, %v10825_v49  ;;  %v10085_v57 = vld [vmem:[#allocation3 + $0x50] sm:$0xff]  ;;  %v11015_v49 = vld [vmem:[#allocation35_spill] sm:$0xff] }
 0x482   : > { %v11016_v52 = vpack.c.bf16 %v11015_v49, %v10838_v21  ;;  %v11022_v49 = vld [vmem:[#allocation49_spill] sm:$0xff] }
 0x483   : > { %6811 = vmatpush3.bf16.msra.mxu1 %v7895_v23  ;;  %v11010_v23 = vpack.c.bf16 %v11009_v35, %v10828_v34  ;;  %v4990_v34 = vrot.slane %v10085_v57, 1 }
 0x484   : > { %6812 = vmatprep.subr.bf16.mxu1 %v7896_v53  ;;  %v11011_v53 = vld [vmem:[#allocation31_spill] sm:$0xff] }
 0x486   : > { %7319 = vmatmul.mubr.bf16.gmra.mrb[72].mxu1 %v11000_v26  ;;  %v10089_v26 = vld [vmem:[#allocation3 + $0x48] sm:$0xff] }
 0x487   : > { %7322 = vmatprep.mubr.bf16.mxu1 %v11002_v20  ;;  %6813 = vmatpush3.bf16.msra.mxu1 %v7897_v19  ;;  %v11012_v19 = vpack.c.bf16 %v11011_v53, %v10831_v10  ;;  %v4992_v20 = vrot.slane %v10087_v15, 1  ;;  %v11017_v10 = vld [vmem:[#allocation37_spill] sm:$0xff]  ;;  %v7902_v53 = vld [vmem:[%s10571_s3 + $0x210] sm:$0xff]  }
 0x488   : > { %6814 = vmatprep.subr.bf16.mxu1 %v7898_v59  ;;  %v11013_v59 = vld [vmem:[#allocation32_spill] sm:$0xff] }
 0x489   : > { %v11014_v27 = vpack.c.bf16 %v11013_v59, %v10835_v48  ;;  %v4989_v48 = vrot.slane %v10089_v26, 1 }
 0x48b   : > { %6815 = vmatpush3.bf16.msra.mxu1 %v7899_v43  ;;  %v11018_v43 = vpack.c.bf16 %v11017_v10, %v9436_v33  ;;  %v4991_v44 = vsel %vm3216_vm3, %v4989_v48, %v4990_v34  ;;  %v11021_v33 = vld [vmem:[#allocation55_spill] sm:$0xff]  ;;  %v7904_v48 = vld [vmem:[%s10571_s3 + $0x220] sm:$0xff]  }
 0x48c   : > { %7338 = vmatprep.subr.bf16.mxu1 %v7900_v63  ;;  %v11024_v10 = vld [vmem:[#allocation51_spill] sm:$0xff] }
 0x48e   : > { %7323 = vmatmul.mubr.bf16.gmra.mrb[76].mxu1 %v11004_v14  ;;  %v4993_v14 = vsel %vm3216_vm3, %v4990_v34, %v4992_v20  ;;  %v11023_v34 = vld [vmem:[#allocation46_spill] sm:$0xff] }
 0x48f   : > { %7326 = vmatprep.mubr.bf16.mxu1 %v11006_v58  ;;  %v5212_v21 = vpack.c.bf16 %v4993_v14, %v4991_v44  ;;  %v11019_v58 = vld [vmem:[#allocation39_spill] sm:$0xff]  ;;  %v5002_v20 = vrot.slane %v11023_v34, 1 }
 0x490   : > { %v4995_v31 = vrot.slane %v11019_v58, 1 }
 0x496   : > { %7327 = vmatmul.mubr.bf16.gmra.mrb[80].mxu1 %v11008_v40  ;;  %v11020_v40 = vld [vmem:[#allocation40_spill] sm:$0xff] }
 0x497   : > { %7330 = vmatprep.mubr.bf16.mxu1 %v11010_v23  ;;  %v4997_v35 = vrot.slane %v11020_v40, 1  ;;  %v4994_v23 = vrot.slane %v11021_v33, 1  ;;  %v5005_v40 = vrot.slane %v9521_v4, 1 }
 0x499   : > { %v4998_v59 = vsel %vm3216_vm3, %v4995_v31, %v4997_v35  ;;  %v11025_v35 = vld [vmem:[#allocation4_spill] sm:$0xff] }
 0x49e   : > { %7331 = vmatmul.mubr.bf16.gmra.mrb[84].mxu1 %v11012_v19  ;;  %v4996_v19 = vsel %vm3216_vm3, %v4994_v23, %v4995_v31  ;;  %v5007_v23 = vrot.slane %v11025_v35, 1 }
 0x49f   : > { %7334 = vmatprep.mubr.bf16.mxu1 %v11014_v27  ;;  %v5215_v27 = vpack.c.bf16 %v4998_v59, %v4996_v19 }
 0x4a6   : > { %7335 = vmatmul.mubr.bf16.gmra.mrb[88].mxu1 %v11016_v52  ;;  %v5000_v52 = vrot.slane %v11022_v49, 1 }
 0x4a7   : > { %5481 = vmatprep.mubr.bf16.mxu1 %v11018_v43  ;;  %v4999_v43 = vrot.slane %v11024_v10, 1 }
 0x4a8   : > { %v5003_v14 = vsel %vm3216_vm3, %v5000_v52, %v5002_v20  ;;  %v5217_v20 = vpack.c.bf16 %v11022_v49, %v11024_v10  ;;  %v11029_v49 = vld [vmem:[#allocation11_spill] sm:$0xff] }
 0x4a9   : > { %v5001_v44 = vsel %vm3216_vm3, %v4999_v43, %v5000_v52  ;;  %v7907_v43 = vld [vmem:[%s10571_s3 + $0x238] sm:$0xff]   ;;  %v5009_v10 = vrot.slane %v11029_v49, 1 }
 0x4aa   : > { %v5218_v31 = vpack.c.bf16 %v5003_v14, %v5001_v44 }
 0x4ae   : > { %5482 = vmatmul.mubr.bf16.vlgmr.msra.gmra.mrb[156].mxu1 %v9862_v11  ;;  %v5211_v11 = vpack.c.bf16 %v10085_v57, %v10089_v26 }
 0x4af   : > { %7339 = vmatpush3.bf16.msra.mxu1 %v7900_v63  ;;  %5489 = vmatprep.mubr.bf16.mxu1 %v5212_v21  ;;  %v7903_v63 = vld [vmem:[%s10571_s3 + $0x218] sm:$0xff]   ;;  %v7905_v21 = vld [vmem:[%s10571_s3 + $0x228] sm:$0xff]  }
 0x4b0   : > { %7340 = vmatprep.subr.bf16.mxu1 %v7901_v45 }
 0x4b3   : > { %7341 = vmatpush3.bf16.msra.mxu1 %v7901_v45  ;;  %v5214_v45 = vpack.c.bf16 %v11019_v58, %v11021_v33  ;;  %v7906_v58 = vld [vmem:[%s10571_s3 + $0x230] sm:$0xff]  }
 0x4b4   : > { %7342 = vmatprep.subr.bf16.mxu1 %v7902_v53 }
 0x4b6   : > { %5490 = vmatmul.mubr.bf16.gmra.mrb[160].mxu1 %v5211_v11 }
 0x4b7   : > { %5497 = vmatprep.mubr.bf16.mxu1 %v5215_v27  ;;  %7343 = vmatpush3.bf16.msra.mxu1 %v7902_v53  ;;  %v11026_v53 = vld [vmem:[#allocation50_spill] sm:$0xff] }
 0x4b8   : > { %7344 = vmatprep.subr.bf16.mxu1 %v7903_v63  ;;  %v5004_v19 = vrot.slane %v11026_v53, 1 }
 0x4ba   : > { %v5006_v11 = vsel %vm3216_vm3, %v5004_v19, %v5005_v40 }
 0x4bb   : > { %7345 = vmatpush3.bf16.msra.mxu1 %v7903_v63  ;;  %v5008_v63 = vsel %vm3216_vm3, %v5005_v40, %v5007_v23  ;;  %v11028_v40 = vld [vmem:[#allocation16_spill] sm:$0xff] }
 0x4bc   : > { %7346 = vmatprep.subr.bf16.mxu1 %v7904_v48  ;;  %v5221_v14 = vpack.c.bf16 %v5008_v63, %v5006_v11  ;;  %v5012_v35 = vrot.slane %v11028_v40, 1 }
 0x4be   : > { %5498 = vmatmul.mubr.bf16.gmra.mrb[164].mxu1 %v5214_v45  ;;  %v11027_v45 = vld [vmem:[#allocation15_spill] sm:$0xff] }
 0x4bf   : > { %5505 = vmatprep.mubr.bf16.mxu1 %v5218_v31  ;;  %7347 = vmatpush3.bf16.msra.mxu1 %v7904_v48  ;;  %v5010_v31 = vrot.slane %v11027_v45, 1 }
 0x4c0   : > { %7348 = vmatprep.subr.bf16.mxu1 %v7905_v21 }
 0x4c1   : > { %v6680_v33 = vpop.f32.mrb[92].mxu1 }
 0x4c2   : > { %v6681_v59 = vpop.f32.mrb[93].mxu1 }
 0x4c3   : > { %v6682_v27 = vadd.f32 %v6681_v59, %v6680_v33  ;;  %v6683_v52 = vpop.f32.mrb[94].mxu1  ;;  %7349 = vmatpush3.bf16.msra.mxu1 %v7905_v21  ;;  %v5013_v33 = vsel %vm3216_vm3, %v5010_v31, %v5012_v35 }
 0x4c4   : > { %v6684_v34 = vpop.f32.mrb[95].mxu1  ;;  %7350 = vmatprep.subr.bf16.mxu1 %v7906_v58 }
 0x4c5   : > { %v10146_v48 = vadd.f32 %v6682_v27, %v9888_v32  ;;  %v6685_v44 = vadd.f32 %v6684_v34, %v6683_v52  ;;  %v5011_v32 = vsel %vm3216_vm3, %v5009_v10, %v5010_v31  ;;  %v5220_v27 = vpack.c.bf16 %v9521_v4, %v11026_v53  ;;  %v11030_v34 = vld [vmem:[#allocation18_spill] sm:$0xff]  ;;  %v11032_v31 = vld [vmem:[#allocation8_spill] sm:$0xff] }
 0x4c6   : > { %5506 = vmatmul.mubr.bf16.gmra.mrb[168].mxu1 %v5217_v20  ;;  %v5224_v52 = vpack.c.bf16 %v5013_v33, %v5011_v32  ;;  %v5015_v20 = vrot.slane %v11030_v34, 1  ;;  %v5223_v32 = vpack.c.bf16 %v11027_v45, %v11029_v49 }
 0x4c7   : > { %v10151_v21 = vadd.f32 %v6685_v44, %v9891_v37  ;;  %5513 = vmatprep.mubr.bf16.mxu1 %v5221_v14  ;;  %7351 = vmatpush3.bf16.msra.mxu1 %v7906_v58  ;;  %v11031_v44 = vld [vmem:[#allocation5_spill] sm:$0xff] }
 0x4c8   : > { %7352 = vmatprep.subr.bf16.mxu1 %v7907_v43  ;;  %v5017_v14 = vrot.slane %v11031_v44, 1 }
 0x4c9   : > { %v6686_v23 = vpop.f32.mrb[96].mxu1 }
 0x4ca   : > { %v6687_v19 = vpop.f32.mrb[97].mxu1 }
 0x4cb   : > { %v6688_v59 = vadd.f32 %v6687_v19, %v6686_v23  ;;  %v6689_v11 = vpop.f32.mrb[98].mxu1  ;;  %7353 = vmatpush3.bf16.msra.mxu1 %v7907_v43  ;;  %v5014_v43 = vrot.slane %v11032_v31, 1 }
 0x4cc   : > { %v6690_v63 = vpop.f32.mrb[99].mxu1 }
 0x4cd   : > { %v10159_v37 = vadd.f32 %v6688_v59, %v9884_v61  ;;  %v6691_v58 = vadd.f32 %v6690_v63, %v6689_v11  ;;  %v5016_v4 = vsel %vm3216_vm3, %v5014_v43, %v5015_v20  ;;  %v5018_v61 = vsel %vm3216_vm3, %v5015_v20, %v5017_v14  ;;  %v11033_v11 = vld [vmem:[#allocation76_spill] sm:$0xff]  ;;  %v11035_v20 = vld [vmem:[#allocation7_spill] sm:$0xff] }
 0x4ce   : > { %5514 = vmatmul.mubr.bf16.gmra.mrb[172].mxu1 %v5220_v27  ;;  %v5227_v59 = vpack.c.bf16 %v5018_v61, %v5016_v4  ;;  %v5020_v63 = vrot.slane %v11033_v11, 1  ;;  %v11034_v27 = vld [vmem:[#allocation79_spill] sm:$0xff]  ;;  %v5019_v44 = vrot.slane %v11035_v20, 1  ;;  %v5226_v4 = vpack.c.bf16 %v11030_v34, %v11032_v31 }
 0x4cf   : > { %v10164_v40 = vadd.f32 %v6691_v58, %v9886_v17  ;;  %5521 = vmatprep.mubr.bf16.mxu1 %v5224_v52  ;;  %v5022_v58 = vrot.slane %v11034_v27, 1 }
 0x4d0   : > { %v5021_v45 = vsel %vm3216_vm3, %v5019_v44, %v5020_v63 }
 0x4d1   : > { %v6692_v35 = vpop.f32.mrb[100].mxu1 }
 0x4d2   : > { %v6693_v10 = vpop.f32.mrb[101].mxu1 }
 0x4d3   : > { %v6694_v53 = vadd.f32 %v6693_v10, %v6692_v35  ;;  %v6695_v23 = vpop.f32.mrb[102].mxu1 }
 0x4d4   : > { %v6696_v19 = vpop.f32.mrb[103].mxu1 }
 0x4d5   : > { %v10172_v33 = vadd.f32 %v6694_v53, %v9896_v51  ;;  %v6697_v17 = vadd.f32 %v6696_v19, %v6695_v23  ;;  %v5023_v51 = vsel %vm3216_vm3, %v5020_v63, %v5022_v58  ;;  %v11036_v23 = vld [vmem:[#allocation83_spill] sm:$0xff]  ;;  %v11038_v63 = vld [vmem:[#allocation80_spill] sm:$0xff] }
 0x4d6   : > { %5522 = vmatmul.mubr.bf16.gmra.mrb[176].mxu1 %v5223_v32  ;;  %v5230_v53 = vpack.c.bf16 %v5023_v51, %v5021_v45  ;;  %v5025_v19 = vrot.slane %v11036_v23, 1  ;;  %v11037_v32 = vld [vmem:[#allocation84_spill] sm:$0xff]  ;;  %v5024_v27 = vrot.slane %v11038_v63, 1  ;;  %v5229_v45 = vpack.c.bf16 %v11033_v11, %v11035_v20 }
 0x4d7   : > { %v10177_v52 = vadd.f32 %v6697_v17, %v9898_v6  ;;  %5529 = vmatprep.mubr.bf16.mxu1 %v5227_v59  ;;  %v5027_v17 = vrot.slane %v11037_v32, 1 }
 0x4d8   : > { %v5026_v34 = vsel %vm3216_vm3, %v5024_v27, %v5025_v19 }
 0x4d9   : > { %v6698_v14 = vpop.f32.mrb[104].mxu1 }
 0x4da   : > { %v6699_v43 = vpop.f32.mrb[105].mxu1 }
 0x4db   : > { %v6700_v49 = vadd.f32 %v6699_v43, %v6698_v14  ;;  %v6701_v35 = vpop.f32.mrb[106].mxu1 }
 0x4dc   : > { %v6702_v10 = vpop.f32.mrb[107].mxu1 }
 0x4dd   : > { %v10185_v61 = vadd.f32 %v6700_v49, %v9904_v41  ;;  %v6703_v6 = vadd.f32 %v6702_v10, %v6701_v35  ;;  %v5028_v41 = vsel %vm3216_vm3, %v5025_v19, %v5027_v17  ;;  %v11039_v35 = vld [vmem:[#allocation87_spill] sm:$0xff]  ;;  %v11041_v19 = vld [vmem:[#allocation85_spill] sm:$0xff] }
 0x4de   : > { %5530 = vmatmul.mubr.bf16.gmra.mrb[180].mxu1 %v5226_v4  ;;  %v5233_v49 = vpack.c.bf16 %v5028_v41, %v5026_v34  ;;  %v5030_v10 = vrot.slane %v11039_v35, 1  ;;  %v11040_v4 = vld [vmem:[#allocation88_spill] sm:$0xff]  ;;  %v5029_v32 = vrot.slane %v11041_v19, 1  ;;  %v5232_v34 = vpack.c.bf16 %v11036_v23, %v11038_v63 }
 0x4df   : > { %v10190_v59 = vadd.f32 %v6703_v6, %v9906_v28  ;;  %5537 = vmatprep.mubr.bf16.mxu1 %v5230_v53  ;;  %v5032_v6 = vrot.slane %v11040_v4, 1 }
 0x4e0   : > { %v5031_v11 = vsel %vm3216_vm3, %v5029_v32, %v5030_v10 }
 0x4e1   : > { %v6704_v58 = vpop.f32.mrb[108].mxu1 }
 0x4e2   : > { %v6705_v44 = vpop.f32.mrb[109].mxu1 }
 0x4e3   : > { %v6706_v31 = vadd.f32 %v6705_v44, %v6704_v58  ;;  %v6707_v14 = vpop.f32.mrb[110].mxu1 }
 0x4e4   : > { %v6708_v43 = vpop.f32.mrb[111].mxu1 }
 0x4e5   : > { %v10198_v51 = vadd.f32 %v6706_v31, %v9912_v55  ;;  %v6709_v28 = vadd.f32 %v6708_v43, %v6707_v14  ;;  %v5033_v55 = vsel %vm3216_vm3, %v5030_v10, %v5032_v6  ;;  %v11042_v14 = vld [vmem:[#allocation92_spill] sm:$0xff]  ;;  %v11044_v10 = vld [vmem:[#allocation91_spill] sm:$0xff] }
 0x4e6   : > { %5538 = vmatmul.mubr.bf16.gmra.mrb[184].mxu1 %v5229_v45  ;;  %v5236_v31 = vpack.c.bf16 %v5033_v55, %v5031_v11  ;;  %v5035_v43 = vrot.slane %v11042_v14, 1  ;;  %v11043_v45 = vld [vmem:[#allocation93_spill] sm:$0xff]  ;;  %v5034_v4 = vrot.slane %v11044_v10, 1  ;;  %v5235_v11 = vpack.c.bf16 %v11039_v35, %v11041_v19 }
 0x4e7   : > { %v10203_v53 = vadd.f32 %v6709_v28, %v9914_v18  ;;  %5545 = vmatprep.mubr.bf16.mxu1 %v5233_v49  ;;  %v5037_v28 = vrot.slane %v11043_v45, 1 }
 0x4e8   : > { %v5036_v23 = vsel %vm3216_vm3, %v5034_v4, %v5035_v43 }
 0x4e9   : > { %v6710_v17 = vpop.f32.mrb[112].mxu1 }
 0x4ea   : > { %v6711_v27 = vpop.f32.mrb[113].mxu1 }
 0x4eb   : > { %v6712_v20 = vadd.f32 %v6711_v27, %v6710_v17  ;;  %v6713_v58 = vpop.f32.mrb[114].mxu1 }
 0x4ec   : > { %v6714_v44 = vpop.f32.mrb[115].mxu1 }
 0x4ed   : > { %v10211_v41 = vadd.f32 %v6712_v20, %v9920_v38  ;;  %v6715_v18 = vadd.f32 %v6714_v44, %v6713_v58  ;;  %v5038_v38 = vsel %vm3216_vm3, %v5035_v43, %v5037_v28  ;;  %v5040_v58 = vrot.slane %v9661_v39, 1 }
 0x4ee   : > { %5546 = vmatmul.mubr.bf16.gmra.mrb[188].mxu1 %v5232_v34  ;;  %v5239_v20 = vpack.c.bf16 %v5038_v38, %v5036_v23  ;;  %v5042_v44 = vrot.slane %v9675_v12, 1  ;;  %v5045_v23 = vrot.slane %v9677_v62, 1  ;;  %v5047_v38 = vrot.slane %v9688_v46, 1 }
 0x4ef   : > { %v10216_v49 = vadd.f32 %v6715_v18, %v9922_v50  ;;  %5553 = vmatprep.mubr.bf16.mxu1 %v5236_v31  ;;  %v11045_v18 = vld [vmem:[#allocation96_spill] sm:$0xff] }
 0x4f0   : > { %v5039_v31 = vrot.slane %v11045_v18, 1  ;;  %v11046_v18 = vld [vmem:[#allocation99_spill] sm:$0xff] }
 0x4f1   : > { %v6716_v6 = vpop.f32.mrb[116].mxu1 }
 0x4f2   : > { %v6717_v32 = vpop.f32.mrb[117].mxu1  ;;  %v5041_v35 = vsel %vm3216_vm3, %v5039_v31, %v5040_v58  ;;  %v11047_v31 = vld [vmem:[#allocation102_spill] sm:$0xff] }
 0x4f3   : > { %v6718_v63 = vadd.f32 %v6717_v32, %v6716_v6  ;;  %v6719_v17 = vpop.f32.mrb[118].mxu1  ;;  %v5238_v6 = vpack.c.bf16 %v11042_v14, %v11044_v10 }
 0x4f4   : > { %v6720_v27 = vpop.f32.mrb[119].mxu1 }
 0x4f5   : > { %v10224_v55 = vadd.f32 %v6718_v63, %v9928_v24  ;;  %v6721_v50 = vadd.f32 %v6720_v27, %v6719_v17  ;;  %v5043_v24 = vsel %vm3216_vm3, %v5040_v58, %v5042_v44  ;;  %v5044_v17 = vrot.slane %v9663_v0, 1  ;;  %v7916_v58 = vld [vmem:[#allocation3 + $0x138] sm:$0xff] }
 0x4f6   : > { %5554 = vmatmul.mubr.bf16.gmra.mrb[192].mxu1 %v5235_v11  ;;  %v5242_v32 = vpack.c.bf16 %v5043_v24, %v5041_v35  ;;  %v5241_v62 = vpack.c.bf16 %v9661_v39, %v7916_v58  ;;  %v5050_v0 = vrot.slane %v11046_v18, 1  ;;  %v11048_v35 = vld [vmem:[#allocation19_spill] sm:$0xff] }
 0x4f7   : > { %v10229_v34 = vadd.f32 %v6721_v50, %v9930_v36  ;;  %5561 = vmatprep.mubr.bf16.mxu1 %v5239_v20  ;;  %v5046_v14 = vsel %vm3216_vm3, %v5044_v17, %v5045_v23  ;;  %v5049_v24 = vrot.slane %v11048_v35, 1  ;;  %v10268_v58 = vld [vmem:[#allocation3 + $0x1a8] sm:$0x3] }
 0x4f9   : > { %v6722_v43 = vpop.f32.mrb[120].mxu1  ;;  %v5051_v39 = vsel %vm3216_vm3, %v5049_v24, %v5050_v0 }
 0x4fa   : > { %v6723_v45 = vpop.f32.mrb[121].mxu1 }
 0x4fb   : > { %v6724_v19 = vadd.f32 %v6723_v45, %v6722_v43  ;;  %v6725_v28 = vpop.f32.mrb[122].mxu1  ;;  %v5052_v43 = vrot.slane %v11047_v31, 1  ;;  %v7920_v31 = vld [vmem:[#allocation3 + $0x170] sm:$0xff] }
 0x4fc   : > { %v6726_v4 = vpop.f32.mrb[123].mxu1 }
 0x4fd   : > { %v10237_v12 = vadd.f32 %v6724_v19, %v9936_v54  ;;  %v6727_v36 = vadd.f32 %v6726_v4, %v6725_v28  ;;  %v5048_v54 = vsel %vm3216_vm3, %v5045_v23, %v5047_v38  ;;  %v7918_v23 = vld [vmem:[#allocation3 + $0x158] sm:$0xff] }
 0x4fe   : > { %5562 = vmatmul.mubr.bf16.gmra.mrb[196].mxu1 %v5238_v6  ;;  %v5245_v44 = vpack.c.bf16 %v5048_v54, %v5046_v14  ;;  %v5057_v14 = vrot.slane %v9726_v47, 1 }
 0x4ff   : > { %v10242_v63 = vadd.f32 %v6727_v36, %v9938_v25  ;;  %5569 = vmatprep.mubr.bf16.mxu1 %v5242_v32  ;;  %v7917_v32 = vld [vmem:[#allocation3 + $0x150] sm:$0xff] }
 0x500   : > { %v5244_v38 = vpack.c.bf16 %v7918_v23, %v7917_v32  ;;  %v7921_v23 = vld [vmem:[#allocation3 + $0x180] sm:$0xff] }
 0x501   : > { %v6728_v27 = vpop.f32.mrb[124].mxu1 }
 0x502   : > { %v6729_v11 = vpop.f32.mrb[125].mxu1 }
 0x503   : > { %v6730_v10 = vadd.f32 %v6729_v11, %v6728_v27  ;;  %v6731_v50 = vpop.f32.mrb[126].mxu1  ;;  %v5055_v11 = vrot.slane %v9719_v2, 1  ;;  %v7919_v2 = vld [vmem:[#allocation3 + $0x168] sm:$0xff] }
 0x504   : > { %v6732_v20 = vpop.f32.mrb[127].mxu1  ;;  %v5247_v47 = vpack.c.bf16 %v7920_v31, %v7919_v2 }
 0x505   : > { %v10249_v46 = vadd.f32 %v6730_v10, %v9944_v60  ;;  %v6733_v25 = vadd.f32 %v6732_v20, %v6731_v50  ;;  %v5053_v60 = vsel %vm3216_vm3, %v5050_v0, %v5052_v43  ;;  %v11049_v10 = vld [vmem:[#allocation103_spill] sm:$0xff] }
 0x506   : > { %5570 = vmatmul.mubr.bf16.gmra.mrb[200].mxu1 %v5241_v62  ;;  %v5248_v27 = vpack.c.bf16 %v5053_v60, %v5051_v39  ;;  %v5054_v50 = vrot.slane %v11049_v10, 1 }
 0x507   : > { %v10254_v45 = vadd.f32 %v6733_v25, %v9946_v3  ;;  %5577 = vmatprep.mubr.bf16.mxu1 %v5245_v44  ;;  %v5058_v25 = vsel %vm3216_vm3, %v5055_v11, %v5057_v14 }
 0x509   : > { %v6734_v19 = vpop.f32.mrb[128].mxu1 }
 0x50a   : > { %v6735_v28 = vpop.f32.mrb[129].mxu1 }
 0x50b   : > { %v6736_v4 = vadd.f32 %v6735_v28, %v6734_v19  ;;  %v6737_v6 = vpop.f32.mrb[130].mxu1 }
 0x50c   : > { %v6738_v36 = vpop.f32.mrb[131].mxu1 }
 0x50d   : > { %v10260_v17 = vadd.f32 %v6736_v4, %v9952_v9  ;;  %v6739_v3 = vadd.f32 %v6738_v36, %v6737_v6  ;;  %v5056_v9 = vsel %vm3216_vm3, %v5054_v50, %v5055_v11 }
 0x50e   : > { %5578 = vmatmul.mubr.bf16.gmra.mrb[204].mxu1 %v5244_v38  ;;  %v5251_v24 = vpack.c.bf16 %v5058_v25, %v5056_v9  ;;  %v11050_v25 = vld [vmem:[#allocation26_spill] sm:$0xff] }
 0x50f   : > { %v10265_v54 = vadd.f32 %v6739_v3, %v9954_v29  ;;  %5585 = vmatprep.mubr.bf16.mxu1 %v5248_v27  ;;  %v5062_v29 = vrot.slane %v10268_v58, 1 }
 0x511   : > { %v6740_v20 = vpop.f32.mrb[132].mxu1  ;;  %v5063_v28 = vsel %vm3216_vm3, %v9820_v8, %v5062_v29 }
 0x512   : > { %v6741_v62 = vpop.f32.mrb[133].mxu1  ;;  %v5254_v36 = vpack.c.bf16 %v5063_v28, %v9820_v8  ;;  %v5102_v8 = vrot.slane %v10085_v57, 2 }
 0x513   : > { %v6742_v44 = vadd.f32 %v6741_v62, %v6740_v20  ;;  %v6743_v18 = vpop.f32.mrb[134].mxu1  ;;  %v5104_v62 = vrot.slane %v10087_v15, 2 }
 0x514   : > { %v6744_v0 = vpop.f32.mrb[135].mxu1 }
 0x515   : > { %v10274_v43 = vadd.f32 %v6742_v44, %v9960_v1  ;;  %v6745_v35 = vadd.f32 %v6744_v0, %v6743_v18  ;;  %v7922_v1 = vld [vmem:[#allocation3 + $0x188] sm:$0xff]  ;;  %v5101_v44 = vrot.slane %v10089_v26, 2  ;;  %v11051_v18 = vld [vmem:[#allocation10_spill] sm:$0xff]  ;;  %v5105_v15 = vsel %vm3329_vm4, %v5102_v8, %v5104_v62 }
 0x516   : > { %5586 = vmatmul.mubr.bf16.gmra.mrb[208].mxu1 %v5247_v47  ;;  %v5250_v38 = vpack.c.bf16 %v7922_v1, %v7921_v23  ;;  %v11052_v0 = vpack.c.bf16 %v11051_v18, %v10989_v42  ;;  %v11055_v42 = vld [vmem:[#allocation75_spill] sm:$0xff]  ;;  %v11063_v62 = vld [vmem:[#allocation82_spill] sm:$0xff] }
 0x517   : > { %v10277_v19 = vadd.f32 %v6745_v35, %v9962_v13  ;;  %5593 = vmatprep.mubr.bf16.mxu1 %v5251_v24  ;;  %v5103_v57 = vsel %vm3329_vm4, %v5101_v44, %v5102_v8  ;;  %v11053_v24 = vld [vmem:[#allocation28_spill] sm:$0xff] }
 0x518   : > { %v5213_v35 = vpack.c.bf16 %v5105_v15, %v5103_v57 }
 0x519   : > { %v6746_v39 = vpop.f32.mrb[136].mxu1 }
 0x51a   : > { %v6747_v60 = vpop.f32.mrb[137].mxu1 }
 0x51b   : > { %v6748_v4 = vadd.f32 %v6747_v60, %v6746_v39  ;;  %v6749_v6 = vpop.f32.mrb[138].mxu1  ;;  %v11056_v60 = vld [vmem:[#allocation74_spill] sm:$0xff] }
 0x51c   : > { %v6750_v32 = vpop.f32.mrb[139].mxu1 }
 0x51d   : > { %v10283_v3 = vadd.f32 %v6748_v4, %v9968_v56  ;;  %v6751_v27 = vadd.f32 %v6750_v32, %v6749_v6  ;;  %v11057_v4 = vpack.c.bf16 %v11055_v42, %v11056_v60  ;;  %v11072_v42 = vld [vmem:[#allocation97_spill] sm:$0xff]  ;;  %v11073_v60 = vld [vmem:[#allocation95_spill] sm:$0xff] }
 0x51e   : > { %5594 = vmatmul.mubr.bf16.gmra.mrb[212].mxu1 %v5250_v38  ;;  %v11058_v38 = vld [vmem:[#allocation36_spill] sm:$0xff] }
 0x51f   : > { %v10286_v13 = vadd.f32 %v6751_v27, %v9972_v30  ;;  %5601 = vmatprep.mubr.bf16.mxu1 %v5254_v36 }
 0x521   : > { %v6752_v11 = vpop.f32.mrb[140].mxu1 }
 0x522   : > { %v6753_v14 = vpop.f32.mrb[141].mxu1 }
 0x523   : > { %v6754_v10 = vadd.f32 %v6753_v14, %v6752_v11  ;;  %v6755_v50 = vpop.f32.mrb[142].mxu1  ;;  %v11059_v14 = vld [vmem:[#allocation78_spill] sm:$0xff] }
 0x524   : > { %v6756_v20 = vpop.f32.mrb[143].mxu1 }
 0x525   : > { %v10291_v9 = vadd.f32 %v6754_v10, %v9979_v22  ;;  %v6757_v56 = vadd.f32 %v6756_v20, %v6755_v50  ;;  %v11060_v10 = vld [vmem:[#allocation77_spill] sm:$0xff]  ;;  %v11062_v20 = vld [vmem:[#allocation42_spill] sm:$0xff] }
 0x526   : > { %5602 = vmatmul.mubr.bf16.gmra.mrb[216].mxu1 %v11050_v25  ;;  %v11061_v50 = vpack.c.bf16 %v11059_v14, %v11060_v10  ;;  %v11084_v14 = vld [vmem:[#allocation107_spill] sm:$0xff]  ;;  %v11085_v10 = vld [vmem:[#allocation106_spill] sm:$0xff] }
 0x527   : > { %v10296_v30 = vadd.f32 %v6757_v56, %v9981_v7  ;;  %7354 = vmatprep.mubr.bf16.mxu1 %v11052_v0  ;;  %v11054_v7 = vld [vmem:[#allocation33_spill] sm:$0xff] }
 0x528   : > { %v11064_v56 = vld [vmem:[#allocation81_spill] sm:$0xff] }
 0x529   : > { %v6758_v2 = vpop.f32.mrb[144].mxu1  ;;  %v11065_v25 = vpack.c.bf16 %v11063_v62, %v11064_v56  ;;  %v11088_v62 = vld [vmem:[#allocation108_spill] sm:$0xff] }
 0x52a   : > { %v6759_v31 = vpop.f32.mrb[145].mxu1 }
 0x52b   : > { %v6760_v22 = vadd.f32 %v6759_v31, %v6758_v2  ;;  %v6761_v47 = vpop.f32.mrb[146].mxu1 }
 0x52c   : > { %v6762_v29 = vpop.f32.mrb[147].mxu1 }
 0x52d   : > { %v10304_v28 = vadd.f32 %v6760_v22, %v11053_v24  ;;  %v6763_v26 = vadd.f32 %v6762_v29, %v6761_v47  ;;  %v11066_v22 = vld [vmem:[#allocation89_spill] sm:$0xff]  ;;  %v11067_v47 = vld [vmem:[#allocation86_spill] sm:$0xff] }
 0x52e   : > { %7355 = vmatmul.mubr.bf16.vlgmr.msra.gmra.mrb[60].mxu1 %v5213_v35  ;;  %v11068_v29 = vpack.c.bf16 %v11066_v22, %v11067_v47  ;;  %v11069_v24 = vld [vmem:[#allocation94_spill] sm:$0xff]  ;;  %v11094_v22 = vld [vmem:[#allocation112_spill] sm:$0xff] }
 0x52f   : > { %v10307_v39 = vadd.f32 %v6763_v26, %v11054_v7  ;;  %7358 = vmatprep.mubr.bf16.mxu1 %v11057_v4  ;;  %v11070_v26 = vld [vmem:[#allocation90_spill] sm:$0xff]  ;;  %v11074_v4 = vpack.c.bf16 %v11072_v42, %v11073_v60 }
 0x530   : > { %v11071_v7 = vpack.c.bf16 %v11069_v24, %v11070_v26 }
 0x531   : > { %v6764_v6 = vpop.f32.mrb[148].mxu1 }
 0x532   : > { %v6765_v36 = vpop.f32.mrb[149].mxu1 }
 0x533   : > { %v6766_v32 = vadd.f32 %v6765_v36, %v6764_v6  ;;  %v6767_v23 = vpop.f32.mrb[150].mxu1  ;;  %v11075_v6 = vld [vmem:[#allocation13_spill] sm:$0xff]  ;;  %v11076_v36 = vld [vmem:[#allocation98_spill] sm:$0xff] }
 0x534   : > { %v6768_v1 = vpop.f32.mrb[151].mxu1 }
 0x535   : > { %v10313_v27 = vadd.f32 %v6766_v32, %v11058_v38  ;;  %v6769_v11 = vadd.f32 %v6768_v1, %v6767_v23  ;;  %v11078_v32 = vld [vmem:[#allocation101_spill] sm:$0xff]  ;;  %v11079_v23 = vld [vmem:[#allocation100_spill] sm:$0xff] }
 0x536   : > { %7359 = vmatmul.mubr.bf16.gmra.mrb[64].mxu1 %v11061_v50  ;;  %v11080_v1 = vpack.c.bf16 %v11078_v32, %v11079_v23  ;;  %v11081_v38 = vld [vmem:[#allocation105_spill] sm:$0xff]  ;;  %v11086_v50 = vpack.c.bf16 %v11084_v14, %v11085_v10 }
 0x537   : > { %v10319_v8 = vadd.f32 %v6769_v11, %v11062_v20  ;;  %7362 = vmatprep.mubr.bf16.mxu1 %v11065_v25  ;;  %v11082_v11 = vld [vmem:[#allocation104_spill] sm:$0xff]  ;;  %v11087_v20 = vld [vmem:[#allocation109_spill] sm:$0xff]  ;;  %v7923_v25 = vld [vmem:[#allocation3] sm:$0xff] }
 0x538   : > { %v11089_v56 = vpack.c.bf16 %v11087_v20, %v11088_v62 }
 0x539   : > { %v6770_v44 = vpop.f32.mrb[152].mxu1 }
 0x53a   : > { %v6771_v18 = vpop.f32.mrb[153].mxu1 }
 0x53b   : > { %v6772_v0 = vadd.f32 %v6771_v18, %v6770_v44  ;;  %v6773_v2 = vpop.f32.mrb[154].mxu1  ;;  %v5171_v44 = vrot.slane %v7923_v25, 2  ;;  %v5174_v18 = vrot.slane %v10268_v58, 2 }
 0x53c   : > { %v6774_v57 = vpop.f32.mrb[155].mxu1 }
 0x53d   : > { %v10325_v15 = vadd.f32 %v6772_v0, %v10030_v5  ;;  %v6775_v31 = vadd.f32 %v6774_v57, %v6773_v2  ;;  %v11077_v5 = vpack.c.bf16 %v11075_v6, %v11076_v36  ;;  %v11090_v0 = vld [vmem:[#allocation111_spill] sm:$0xff]  ;;  %v11091_v2 = vld [vmem:[#allocation110_spill] sm:$0xff] }
 0x53e   : > { %7363 = vmatmul.mubr.bf16.gmra.mrb[68].mxu1 %v11068_v29  ;;  %v11092_v57 = vpack.c.bf16 %v11090_v0, %v11091_v2  ;;  %v5175_v29 = vsel %vm3329_vm4, %v5171_v44, %v5174_v18 }
 0x53f   : > { %v10331_v35 = vadd.f32 %v6775_v31, %v10038_v16  ;;  %7366 = vmatprep.mubr.bf16.mxu1 %v11071_v7  ;;  %v11083_v16 = vpack.c.bf16 %v11081_v38, %v11082_v11  ;;  %v11093_v31 = vld [vmem:[#allocation22_spill] sm:$0xff]  ;;  %v5255_v24 = vpack.c.bf16 %v5175_v29, %v5171_v44 }
 0x540   : > { %v11095_v47 = vpack.c.bf16 %v11093_v31, %v11094_v22 }
 0x546   : > { %7367 = vmatmul.mubr.bf16.gmra.mrb[72].mxu1 %v11074_v4 }
 0x547   : > { %7370 = vmatprep.mubr.bf16.mxu1 %v11077_v5 }
 0x54e   : > { %7371 = vmatmul.mubr.bf16.gmra.mrb[76].mxu1 %v11080_v1 }
 0x54f   : > { %7374 = vmatprep.mubr.bf16.mxu1 %v11083_v16 }
 0x556   : > { %7375 = vmatmul.mubr.bf16.gmra.mrb[80].mxu1 %v11086_v50 }
 0x557   : > { %7378 = vmatprep.mubr.bf16.mxu1 %v11089_v56 }
 0x55e   : > { %7379 = vmatmul.mubr.bf16.gmra.mrb[84].mxu1 %v11092_v57 }
 0x55f   : > { %7382 = vmatprep.mubr.bf16.mxu1 %v11095_v47 }
 0x566   : > { %7383 = vmatmul.mubr.bf16.gmra.mrb[88].mxu1 %v5255_v24 }
 0x581   : > { %v6816_v26 = vpop.f32.mrb[156].mxu1 }
 0x582   : > { %v6817_v7 = vpop.f32.mrb[157].mxu1 }
 0x583   : > { %v6818_v42 = vadd.f32 %v6817_v7, %v6816_v26  ;;  %v6819_v60 = vpop.f32.mrb[158].mxu1 }
 0x584   : > { %v6820_v4 = vpop.f32.mrb[159].mxu1 }
 0x585   : > { %v6821_v6 = vadd.f32 %v6820_v4, %v6819_v60  ;;  %v10363_v58 = vadd.f32 %v10146_v48, %v6818_v42 }
 0x587   : > { %v10366_v36 = vadd.f32 %v10151_v21, %v6821_v6 }
 0x589   : > { %v6822_v5 = vpop.f32.mrb[160].mxu1 }
 0x58a   : > { %v6823_v32 = vpop.f32.mrb[161].mxu1 }
 0x58b   : > { %v6824_v23 = vadd.f32 %v6823_v32, %v6822_v5  ;;  %v6825_v1 = vpop.f32.mrb[162].mxu1 }
 0x58c   : > { %v6826_v38 = vpop.f32.mrb[163].mxu1 }
 0x58d   : > { %v6827_v11 = vadd.f32 %v6826_v38, %v6825_v1  ;;  %v10369_v16 = vadd.f32 %v10159_v37, %v6824_v23 }
 0x58f   : > { %v10372_v14 = vadd.f32 %v10164_v40, %v6827_v11 }
 0x591   : > { %v6828_v10 = vpop.f32.mrb[164].mxu1 }
 0x592   : > { %v6829_v50 = vpop.f32.mrb[165].mxu1 }
 0x593   : > { %v6830_v20 = vadd.f32 %v6829_v50, %v6828_v10  ;;  %v6831_v48 = vpop.f32.mrb[166].mxu1 }
 0x594   : > { %v6832_v62 = vpop.f32.mrb[167].mxu1 }
 0x595   : > { %v6833_v56 = vadd.f32 %v6832_v62, %v6831_v48  ;;  %v10375_v21 = vadd.f32 %v10172_v33, %v6830_v20 }
 0x597   : > { %v10378_v25 = vadd.f32 %v10177_v52, %v6833_v56 }
 0x599   : > { %v6834_v44 = vpop.f32.mrb[168].mxu1 }
 0x59a   : > { %v6835_v18 = vpop.f32.mrb[169].mxu1 }
 0x59b   : > { %v6836_v0 = vadd.f32 %v6835_v18, %v6834_v44  ;;  %v6837_v37 = vpop.f32.mrb[170].mxu1 }
 0x59c   : > { %v6838_v2 = vpop.f32.mrb[171].mxu1 }
 0x59d   : > { %v6839_v57 = vadd.f32 %v6838_v2, %v6837_v37  ;;  %v10381_v40 = vadd.f32 %v10185_v61, %v6836_v0 }
 0x59f   : > { %v10384_v31 = vadd.f32 %v10190_v59, %v6839_v57 }
 0x5a1   : > { %v6840_v22 = vpop.f32.mrb[172].mxu1 }
 0x5a2   : > { %v6841_v47 = vpop.f32.mrb[173].mxu1 }
 0x5a3   : > { %v6842_v29 = vadd.f32 %v6841_v47, %v6840_v22  ;;  %v6843_v33 = vpop.f32.mrb[174].mxu1 }
 0x5a4   : > { %v6844_v24 = vpop.f32.mrb[175].mxu1 }
 0x5a5   : > { %v6845_v26 = vadd.f32 %v6844_v24, %v6843_v33  ;;  %v10387_v52 = vadd.f32 %v10198_v51, %v6842_v29 }
 0x5a7   : > { %v10390_v7 = vadd.f32 %v10203_v53, %v6845_v26 }
 0x5a9   : > { %v6846_v42 = vpop.f32.mrb[176].mxu1 }
 0x5aa   : > { %v6847_v60 = vpop.f32.mrb[177].mxu1 }
 0x5ab   : > { %v6848_v4 = vadd.f32 %v6847_v60, %v6846_v42  ;;  %v6849_v61 = vpop.f32.mrb[178].mxu1 }
 0x5ac   : > { %v6850_v6 = vpop.f32.mrb[179].mxu1 }
 0x5ad   : > { %v6851_v5 = vadd.f32 %v6850_v6, %v6849_v61  ;;  %v10393_v59 = vadd.f32 %v10211_v41, %v6848_v4 }
 0x5af   : > { %v10396_v32 = vadd.f32 %v10216_v49, %v6851_v5 }
 0x5b1   : > { %v6852_v23 = vpop.f32.mrb[180].mxu1 }
 0x5b2   : > { %v6853_v1 = vpop.f32.mrb[181].mxu1 }
 0x5b3   : > { %v6854_v38 = vadd.f32 %v6853_v1, %v6852_v23  ;;  %v6855_v51 = vpop.f32.mrb[182].mxu1 }
 0x5b4   : > { %v6856_v11 = vpop.f32.mrb[183].mxu1 }
 0x5b5   : > { %v6857_v10 = vadd.f32 %v6856_v11, %v6855_v51  ;;  %v10399_v53 = vadd.f32 %v10224_v55, %v6854_v38 }
 0x5b7   : > { %v10402_v50 = vadd.f32 %v10229_v34, %v6857_v10 }
 0x5b9   : > { %v6858_v20 = vpop.f32.mrb[184].mxu1 }
 0x5ba   : > { %v6859_v48 = vpop.f32.mrb[185].mxu1 }
 0x5bb   : > { %v6860_v62 = vadd.f32 %v6859_v48, %v6858_v20  ;;  %v6861_v41 = vpop.f32.mrb[186].mxu1 }
 0x5bc   : > { %v6862_v56 = vpop.f32.mrb[187].mxu1 }
 0x5bd   : > { %v6863_v44 = vadd.f32 %v6862_v56, %v6861_v41  ;;  %v10405_v49 = vadd.f32 %v10237_v12, %v6860_v62 }
 0x5bf   : > { %v10408_v18 = vadd.f32 %v10242_v63, %v6863_v44 }
 0x5c1   : > { %v6864_v0 = vpop.f32.mrb[188].mxu1 }
 0x5c2   : > { %v6865_v37 = vpop.f32.mrb[189].mxu1 }
 0x5c3   : > { %v6866_v2 = vadd.f32 %v6865_v37, %v6864_v0  ;;  %v6867_v55 = vpop.f32.mrb[190].mxu1 }
 0x5c4   : > { %v6868_v57 = vpop.f32.mrb[191].mxu1 }
 0x5c5   : > { %v6869_v22 = vadd.f32 %v6868_v57, %v6867_v55  ;;  %v10411_v34 = vadd.f32 %v10249_v46, %v6866_v2 }
 0x5c7   : > { %v10414_v47 = vadd.f32 %v10254_v45, %v6869_v22 }
 0x5c9   : > { %v6870_v29 = vpop.f32.mrb[192].mxu1 }
 0x5ca   : > { %v6871_v33 = vpop.f32.mrb[193].mxu1 }
 0x5cb   : > { %v6872_v24 = vadd.f32 %v6871_v33, %v6870_v29  ;;  %v6873_v12 = vpop.f32.mrb[194].mxu1 }
 0x5cc   : > { %v6874_v26 = vpop.f32.mrb[195].mxu1 }
 0x5cd   : > { %v6875_v42 = vadd.f32 %v6874_v26, %v6873_v12  ;;  %v10417_v63 = vadd.f32 %v10260_v17, %v6872_v24 }
 0x5cf   : > { %v10420_v60 = vadd.f32 %v10265_v54, %v6875_v42 }
 0x5d1   : > { %v6876_v4 = vpop.f32.mrb[196].mxu1 }
 0x5d2   : > { %v6877_v61 = vpop.f32.mrb[197].mxu1 }
 0x5d3   : > { %v6878_v6 = vadd.f32 %v6877_v61, %v6876_v4  ;;  %v6879_v46 = vpop.f32.mrb[198].mxu1 }
 0x5d4   : > { %v6880_v5 = vpop.f32.mrb[199].mxu1 }
 0x5d5   : > { %v6881_v23 = vadd.f32 %v6880_v5, %v6879_v46  ;;  %v10423_v45 = vadd.f32 %v10274_v43, %v6878_v6 }
 0x5d7   : > { %v10426_v1 = vadd.f32 %v10277_v19, %v6881_v23 }
 0x5d9   : > { %v6882_v38 = vpop.f32.mrb[200].mxu1 }
 0x5da   : > { %v6883_v51 = vpop.f32.mrb[201].mxu1 }
 0x5db   : > { %v6884_v11 = vadd.f32 %v6883_v51, %v6882_v38  ;;  %v6885_v17 = vpop.f32.mrb[202].mxu1 }
 0x5dc   : > { %v6886_v10 = vpop.f32.mrb[203].mxu1 }
 0x5dd   : > { %v6887_v20 = vadd.f32 %v6886_v10, %v6885_v17  ;;  %v10429_v54 = vadd.f32 %v10283_v3, %v6884_v11 }
 0x5df   : > { %v10432_v48 = vadd.f32 %v10286_v13, %v6887_v20 }
 0x5e1   : > { %v6888_v62 = vpop.f32.mrb[204].mxu1 }
 0x5e2   : > { %v6889_v41 = vpop.f32.mrb[205].mxu1 }
 0x5e3   : > { %v6890_v56 = vadd.f32 %v6889_v41, %v6888_v62  ;;  %v6891_v43 = vpop.f32.mrb[206].mxu1 }
 0x5e4   : > { %v6892_v44 = vpop.f32.mrb[207].mxu1 }
 0x5e5   : > { %v6893_v0 = vadd.f32 %v6892_v44, %v6891_v43  ;;  %v10435_v19 = vadd.f32 %v10291_v9, %v6890_v56 }
 0x5e7   : > { %v10438_v37 = vadd.f32 %v10296_v30, %v6893_v0 }
 0x5e9   : > { %v6894_v2 = vpop.f32.mrb[208].mxu1 }
 0x5ea   : > { %v6895_v55 = vpop.f32.mrb[209].mxu1 }
 0x5eb   : > { %v6896_v57 = vadd.f32 %v6895_v55, %v6894_v2  ;;  %v6897_v3 = vpop.f32.mrb[210].mxu1 }
 0x5ec   : > { %v6898_v22 = vpop.f32.mrb[211].mxu1 }
 0x5ed   : > { %v6899_v29 = vadd.f32 %v6898_v22, %v6897_v3  ;;  %v10441_v13 = vadd.f32 %v10304_v28, %v6896_v57 }
 0x5ef   : > { %v10444_v33 = vadd.f32 %v10307_v39, %v6899_v29 }
 0x5f1   : > { %v6900_v24 = vpop.f32.mrb[212].mxu1 }
 0x5f2   : > { %v6901_v12 = vpop.f32.mrb[213].mxu1 }
 0x5f3   : > { %v6902_v26 = vadd.f32 %v6901_v12, %v6900_v24  ;;  %v6903_v9 = vpop.f32.mrb[214].mxu1 }
 0x5f4   : > { %v6904_v42 = vpop.f32.mrb[215].mxu1 }
 0x5f5   : > { %v6905_v30 = vadd.f32 %v6904_v42, %v6903_v9  ;;  %v10447_v4 = vadd.f32 %v10313_v27, %v6902_v26  ;;  %v10461_v27 = vld [vmem:[%s10572_s4] ss:$0 sm:$0xff] }
 0x5f7   : > { %v10450_v61 = vadd.f32 %v10319_v8, %v6905_v30 }
 0x5f9   : > { %v6906_v6 = vpop.f32.mrb[216].mxu1 }
 0x5fa   : > { %v6907_v46 = vpop.f32.mrb[217].mxu1 }
 0x5fb   : > { %v6908_v28 = vadd.f32 %v6907_v46, %v6906_v6  ;;  %v6909_v5 = vpop.f32.mrb[218].mxu1 }
 0x5fc   : > { %v6910_v23 = vpop.f32.mrb[219].mxu1 }
 0x5fd   : > { %v6911_v39 = vadd.f32 %v6910_v23, %v6909_v5  ;;  %v10453_v38 = vadd.f32 %v10325_v15, %v6908_v28 }
 0x5ff   : > { %v10456_v51 = vadd.f32 %v10331_v35, %v6911_v39 }
 0x601   : > { %v7356_v11 = vpop.f32.mrb[60].mxu1 }
 0x602   : > { %v7404_v8 = vadd.f32 %v10369_v16, %v7356_v11  ;;  %v5644_v17 = vpop.f32.mrb[61].mxu1 }
 0x603   : > { %v7407_v10 = vadd.f32 %v10363_v58, %v5644_v17  ;;  %v7357_v20 = vpop.f32.mrb[62].mxu1 }
 0x604   : > { %v5812_v62 = vadd.f32 %v7404_v8, %v10461_v27  ;;  %v7410_v15 = vadd.f32 %v10372_v14, %v7357_v20  ;;  %v5647_v41 = vpop.f32.mrb[63].mxu1 }
 0x605   : > { %v5810_v35 = vadd.f32 %v7407_v10, %v10461_v27  ;;  %v7413_v16 = vadd.f32 %v10366_v36, %v5647_v41 }
 0x606   : > { %v5844_v58 = vmax.f32 %v5812_v62, 0.0  ;;  %v5813_v56 = vadd.f32 %v7410_v15, %v10461_v27 }
 0x607   : > { %v5842_v43 = vmax.f32 %v5810_v35, 0.0  ;;  %v5811_v14 = vadd.f32 %v7413_v16, %v10461_v27 }
 0x608   : > { %5876 = vst [vmem:[%s10471_s7 + $0x10] sm:$0xff] %v5844_v58  ;;  %v5845_v44 = vmax.f32 %v5813_v56, 0.0 }
 0x609   : > { %5874 = vst [vmem:[%s10471_s7] sm:$0xff] %v5842_v43  ;;  %v5843_v0 = vmax.f32 %v5811_v14, 0.0  ;;  %v7360_v2 = vpop.f32.mrb[64].mxu1 }
 0x60a   : > { %5877 = vst [vmem:[%s10471_s7 + $0x18] sm:$0xff] %v5845_v44  ;;  %v7416_v55 = vadd.f32 %v10381_v40, %v7360_v2  ;;  %v5660_v57 = vpop.f32.mrb[65].mxu1 }
 0x60b   : > { %5875 = vst [vmem:[%s10471_s7 + $0x8] sm:$0xff] %v5843_v0  ;;  %v7419_v36 = vadd.f32 %v10375_v21, %v5660_v57  ;;  %v7361_v3 = vpop.f32.mrb[66].mxu1 }
 0x60c   : > { %v5816_v22 = vadd.f32 %v7416_v55, %v10461_v27  ;;  %v7422_v29 = vadd.f32 %v10384_v31, %v7361_v3  ;;  %v5663_v24 = vpop.f32.mrb[67].mxu1 }
 0x60d   : > { %v5814_v12 = vadd.f32 %v7419_v36, %v10461_v27  ;;  %v7425_v26 = vadd.f32 %v10378_v25, %v5663_v24 }
 0x60e   : > { %v5848_v9 = vmax.f32 %v5816_v22, 0.0  ;;  %v5817_v40 = vadd.f32 %v7422_v29, %v10461_v27 }
 0x60f   : > { %v5846_v42 = vmax.f32 %v5814_v12, 0.0  ;;  %v5815_v30 = vadd.f32 %v7425_v26, %v10461_v27 }
 0x610   : > { %5880 = vst [vmem:[%s10471_s7 + $0x30] sm:$0xff] %v5848_v9  ;;  %v5849_v21 = vmax.f32 %v5817_v40, 0.0 }
 0x611   : > { %5878 = vst [vmem:[%s10471_s7 + $0x20] sm:$0xff] %v5846_v42  ;;  %v5847_v6 = vmax.f32 %v5815_v30, 0.0  ;;  %v7364_v46 = vpop.f32.mrb[68].mxu1 }
 0x612   : > { %5881 = vst [vmem:[%s10471_s7 + $0x38] sm:$0xff] %v5849_v21  ;;  %v7428_v31 = vadd.f32 %v10393_v59, %v7364_v46  ;;  %v5676_v28 = vpop.f32.mrb[69].mxu1 }
 0x613   : > { %5879 = vst [vmem:[%s10471_s7 + $0x28] sm:$0xff] %v5847_v6  ;;  %v7431_v25 = vadd.f32 %v10387_v52, %v5676_v28  ;;  %v7365_v5 = vpop.f32.mrb[70].mxu1 }
 0x614   : > { %v5820_v23 = vadd.f32 %v7428_v31, %v10461_v27  ;;  %v7434_v39 = vadd.f32 %v10396_v32, %v7365_v5  ;;  %v5679_v11 = vpop.f32.mrb[71].mxu1 }
 0x615   : > { %v5818_v8 = vadd.f32 %v7431_v25, %v10461_v27  ;;  %v7437_v17 = vadd.f32 %v10390_v7, %v5679_v11 }
 0x616   : > { %v5852_v10 = vmax.f32 %v5820_v23, 0.0  ;;  %v5821_v59 = vadd.f32 %v7434_v39, %v10461_v27 }
 0x617   : > { %v5850_v20 = vmax.f32 %v5818_v8, 0.0  ;;  %v5819_v62 = vadd.f32 %v7437_v17, %v10461_v27 }
 0x618   : > { %5884 = vst [vmem:[%s10471_s7 + $0x50] sm:$0xff] %v5852_v10  ;;  %v5853_v52 = vmax.f32 %v5821_v59, 0.0 }
 0x619   : > { %5882 = vst [vmem:[%s10471_s7 + $0x40] sm:$0xff] %v5850_v20  ;;  %v5851_v15 = vmax.f32 %v5819_v62, 0.0  ;;  %v7368_v41 = vpop.f32.mrb[72].mxu1 }
 0x61a   : > { %5885 = vst [vmem:[%s10471_s7 + $0x58] sm:$0xff] %v5853_v52  ;;  %v7440_v32 = vadd.f32 %v10405_v49, %v7368_v41  ;;  %v5692_v35 = vpop.f32.mrb[73].mxu1 }
 0x61b   : > { %5883 = vst [vmem:[%s10471_s7 + $0x48] sm:$0xff] %v5851_v15  ;;  %v7443_v7 = vadd.f32 %v10399_v53, %v5692_v35  ;;  %v7369_v16 = vpop.f32.mrb[74].mxu1 }
 0x61c   : > { %v5824_v58 = vadd.f32 %v7440_v32, %v10461_v27  ;;  %v7446_v56 = vadd.f32 %v10408_v18, %v7369_v16  ;;  %v5695_v43 = vpop.f32.mrb[75].mxu1 }
 0x61d   : > { %v5822_v14 = vadd.f32 %v7443_v7, %v10461_v27  ;;  %v7449_v44 = vadd.f32 %v10402_v50, %v5695_v43 }
 0x61e   : > { %v5856_v0 = vmax.f32 %v5824_v58, 0.0  ;;  %v5825_v49 = vadd.f32 %v7446_v56, %v10461_v27 }
 0x61f   : > { %v5854_v2 = vmax.f32 %v5822_v14, 0.0  ;;  %v5823_v55 = vadd.f32 %v7449_v44, %v10461_v27 }
 0x620   : > { %5888 = vst [vmem:[%s10471_s7 + $0x70] sm:$0xff] %v5856_v0  ;;  %v5857_v53 = vmax.f32 %v5825_v49, 0.0 }
 0x621   : > { %5886 = vst [vmem:[%s10471_s7 + $0x60] sm:$0xff] %v5854_v2  ;;  %v5855_v57 = vmax.f32 %v5823_v55, 0.0  ;;  %v7372_v36 = vpop.f32.mrb[76].mxu1 }
 0x622   : > { %5889 = vst [vmem:[%s10471_s7 + $0x78] sm:$0xff] %v5857_v53  ;;  %v7452_v18 = vadd.f32 %v10417_v63, %v7372_v36  ;;  %v5708_v3 = vpop.f32.mrb[77].mxu1 }
 0x623   : > { %5887 = vst [vmem:[%s10471_s7 + $0x68] sm:$0xff] %v5855_v57  ;;  %v7455_v50 = vadd.f32 %v10411_v34, %v5708_v3  ;;  %v7373_v22 = vpop.f32.mrb[78].mxu1 }
 0x624   : > { %v5828_v29 = vadd.f32 %v7452_v18, %v10461_v27  ;;  %v7458_v24 = vadd.f32 %v10420_v60, %v7373_v22  ;;  %v5711_v12 = vpop.f32.mrb[79].mxu1 }
 0x625   : > { %v5826_v26 = vadd.f32 %v7455_v50, %v10461_v27  ;;  %v7461_v9 = vadd.f32 %v10414_v47, %v5711_v12 }
 0x626   : > { %v5860_v40 = vmax.f32 %v5828_v29, 0.0  ;;  %v5829_v63 = vadd.f32 %v7458_v24, %v10461_v27 }
 0x627   : > { %v5858_v42 = vmax.f32 %v5826_v26, 0.0  ;;  %v5827_v30 = vadd.f32 %v7461_v9, %v10461_v27 }
 0x628   : > { %5892 = vst [vmem:[%s10471_s7 + $0x90] sm:$0xff] %v5860_v40  ;;  %v5861_v34 = vmax.f32 %v5829_v63, 0.0 }
 0x629   : > { %5890 = vst [vmem:[%s10471_s7 + $0x80] sm:$0xff] %v5858_v42  ;;  %v5859_v21 = vmax.f32 %v5827_v30, 0.0  ;;  %v7376_v6 = vpop.f32.mrb[80].mxu1 }
 0x62a   : > { %5893 = vst [vmem:[%s10471_s7 + $0x98] sm:$0xff] %v5861_v34  ;;  %v7464_v60 = vadd.f32 %v10429_v54, %v7376_v6  ;;  %v5724_v46 = vpop.f32.mrb[81].mxu1 }
 0x62b   : > { %5891 = vst [vmem:[%s10471_s7 + $0x88] sm:$0xff] %v5859_v21  ;;  %v7467_v47 = vadd.f32 %v10423_v45, %v5724_v46  ;;  %v7377_v31 = vpop.f32.mrb[82].mxu1 }
 0x62c   : > { %v5832_v28 = vadd.f32 %v7464_v60, %v10461_v27  ;;  %v7470_v25 = vadd.f32 %v10432_v48, %v7377_v31  ;;  %v5727_v5 = vpop.f32.mrb[83].mxu1 }
 0x62d   : > { %v5830_v23 = vadd.f32 %v7467_v47, %v10461_v27  ;;  %v7473_v39 = vadd.f32 %v10426_v1, %v5727_v5 }
 0x62e   : > { %v5864_v11 = vmax.f32 %v5832_v28, 0.0  ;;  %v5833_v54 = vadd.f32 %v7470_v25, %v10461_v27 }
 0x62f   : > { %v5862_v8 = vmax.f32 %v5830_v23, 0.0  ;;  %v5831_v17 = vadd.f32 %v7473_v39, %v10461_v27 }
 0x630   : > { %5896 = vst [vmem:[%s10471_s7 + $0xb0] sm:$0xff] %v5864_v11  ;;  %v5865_v45 = vmax.f32 %v5833_v54, 0.0 }
 0x631   : > { %5894 = vst [vmem:[%s10471_s7 + $0xa0] sm:$0xff] %v5862_v8  ;;  %v5863_v10 = vmax.f32 %v5831_v17, 0.0  ;;  %v7380_v59 = vpop.f32.mrb[84].mxu1 }
 0x632   : > { %5897 = vst [vmem:[%s10471_s7 + $0xb8] sm:$0xff] %v5865_v45  ;;  %v7476_v48 = vadd.f32 %v10441_v13, %v7380_v59  ;;  %v5740_v20 = vpop.f32.mrb[85].mxu1 }
 0x633   : > { %5895 = vst [vmem:[%s10471_s7 + $0xa8] sm:$0xff] %v5863_v10  ;;  %v7479_v1 = vadd.f32 %v10435_v19, %v5740_v20  ;;  %v7381_v62 = vpop.f32.mrb[86].mxu1 }
 0x634   : > { %v5836_v52 = vadd.f32 %v7476_v48, %v10461_v27  ;;  %v7482_v15 = vadd.f32 %v10444_v33, %v7381_v62  ;;  %v5743_v41 = vpop.f32.mrb[87].mxu1 }
 0x635   : > { %v5834_v32 = vadd.f32 %v7479_v1, %v10461_v27  ;;  %v7485_v35 = vadd.f32 %v10438_v37, %v5743_v41 }
 0x636   : > { %v5868_v7 = vmax.f32 %v5836_v52, 0.0  ;;  %v5837_v13 = vadd.f32 %v7482_v15, %v10461_v27 }
 0x637   : > { %v5866_v16 = vmax.f32 %v5834_v32, 0.0  ;;  %v5835_v58 = vadd.f32 %v7485_v35, %v10461_v27 }
 0x638   : > { %5900 = vst [vmem:[%s10471_s7 + $0xd0] sm:$0xff] %v5868_v7  ;;  %v5869_v19 = vmax.f32 %v5837_v13, 0.0 }
 0x639   : > { %5898 = vst [vmem:[%s10471_s7 + $0xc0] sm:$0xff] %v5866_v16  ;;  %v5867_v56 = vmax.f32 %v5835_v58, 0.0  ;;  %v7384_v43 = vpop.f32.mrb[88].mxu1 }
 0x63a   : > { %5901 = vst [vmem:[%s10471_s7 + $0xd8] sm:$0xff] %v5869_v19  ;;  %v7488_v33 = vadd.f32 %v10453_v38, %v7384_v43  ;;  %v5756_v14 = vpop.f32.mrb[89].mxu1 }
 0x63b   : > { %5899 = vst [vmem:[%s10471_s7 + $0xc8] sm:$0xff] %v5867_v56  ;;  %v7491_v37 = vadd.f32 %v10447_v4, %v5756_v14  ;;  %v7385_v44 = vpop.f32.mrb[90].mxu1 }
 0x63c   : > { %v5840_v0 = vadd.f32 %v7488_v33, %v10461_v27  ;;  %v7494_v49 = vadd.f32 %v10456_v51, %v7385_v44  ;;  %v5759_v2 = vpop.f32.mrb[91].mxu1 }
 0x63d   : > { %v5838_v55 = vadd.f32 %v7491_v37, %v10461_v27  ;;  %v7497_v53 = vadd.f32 %v10450_v61, %v5759_v2 }
 0x63e   : > { %v5872_v57 = vmax.f32 %v5840_v0, 0.0  ;;  %v5841_v38 = vadd.f32 %v7494_v49, %v10461_v27 }
 0x63f   : > { %v5870_v36 = vmax.f32 %v5838_v55, 0.0  ;;  %v5839_v18 = vadd.f32 %v7497_v53, %v10461_v27 }
 0x640   : > { %5904 = vst [vmem:[%s10471_s7 + $0xf0] sm:$0xff] %v5872_v57  ;;  %v5873_v3 = vmax.f32 %v5841_v38, 0.0 }
 0x641   : > { %5902 = vst [vmem:[%s10471_s7 + $0xe0] sm:$0xff] %v5870_v36  ;;  %v5871_v4 = vmax.f32 %v5839_v18, 0.0 }
 0x642   : > { %5905 = vst [vmem:[%s10471_s7 + $0xf8] sm:$0xff] %v5873_v3 }
 0x643   : > { %5903 = vst [vmem:[%s10471_s7 + $0xe8] sm:$0xff] %v5871_v4 }
 0x644 PF: > { %s15_s18 = sadd.s32 1, %s7930_s18  }
 0x645   : > { %p12_p4 = scmp.ge.s32.totalorder %s15_s18, 4  }
 0x647   :  { %14 = sbr.rel (!%p12_p4) target bundleno = 1 (0x1), region = 84 }

</bundles_post_ra>
